<compile_context>
chip_gen: v6e
topology: v6e:2x2x1
jax: 0.10.0
libtpu: 0.0.40
codegen_flags: <defaults>
</compile_context>

<pallas_src>
import functools
import math

import jax
import jax.numpy as jnp
import numpy as np
from jax.experimental import pallas as pl
from jax.experimental.pallas import tpu as pltpu

LN_EPS = 1e-5  # PyTorch nn.LayerNorm default


def _layer_norm(v, gamma, beta):
    mu = jnp.mean(v, axis=-1, keepdims=True)
    var = jnp.mean(jnp.square(v - mu), axis=-1, keepdims=True)
    return (v - mu) * jax.lax.rsqrt(var + LN_EPS) * gamma + beta


def _bottleneck_kernel(proj_k,
                       x_ref,      # (1, C, L) f32  native NCHW (HW flattened)
                       vecs_ref,   # (9, C)    f32  stacked per-channel vectors
                       wkv_ref,    # (C, 2K)   f32  [Wk^T E^T | Wv^T F^T]
                       bkv_ref,    # (1, 2K)   f32  [bk E^T | bv F^T]
                       w1_ref,     # (C, 4C)   bf16
                       b1_ref,     # (1, 4C)   f32
                       w2_ref,     # (4C, C)   bf16
                       o_ref):     # (1, C, L) f32
    # Channel-major -> token-major on the XLU (folds the wrapper transpose).
    x = jnp.transpose(x_ref[0], (1, 0))                              # (L, C)

    vecs = vecs_ref[...]                                             # (9, C)
    g1, be1 = vecs[0:1], vecs[1:2]
    wq_row = vecs[2:3]       # colsum(Wq) / sqrt(C)
    bq_row = vecs[3:4]       # sum(bq)/sqrt(C)/C, replicated over C
    wo_row = vecs[4:5]       # rowsum(Wo)
    bo = vecs[5:6]
    g2, be2 = vecs[6:7], vecs[7:8]
    b2 = vecs[8:9]

    # ---- norm1
    xn = _layer_norm(x, g1, be1)

    # ---- fused Linformer K/V path: one lane-dense (L, 2K) matmul.
    # Kept in f32: scores feed exp(); bf16 rounding can flip near-tied
    # softmax winners (review correctness concern).  On v6e/v7x this could
    # be widened to 256 lanes to absorb rowsum(Q); not done here to keep one
    # code path that is also optimal on v5e's 128-wide MXU.
    kv = jnp.dot(xn, wkv_ref[...], preferred_element_type=jnp.float32) + bkv_ref[...]
    k_lin = kv[:, :proj_k]                                           # (L, K)
    v_lin = kv[:, proj_k:]                                           # (L, K)

    # ---- fused Q path: only rowsum(Q)/sqrt(C) is ever used by the module.
    rq = jnp.sum(xn * wq_row + bq_row, axis=-1, keepdims=True)       # (L, 1)

    # ---- softmax over k and weighted reduction to a per-token scalar.
    # TODO(synk): the module's einsum 'blk,blk->blc' is not valid einsum
    # (output label c never appears in the inputs); implemented under the
    # natural generalized reading: reduce over k, broadcast over c.
    scores = rq * k_lin                                              # (L, K)
    scores = scores - jnp.max(scores, axis=-1, keepdims=True)
    p = jnp.exp(scores)
    s = jnp.sum(p * v_lin, axis=-1, keepdims=True) * pl.reciprocal(
        jnp.sum(p, axis=-1, keepdims=True), approx=True)             # (L, 1)

    # ---- out_proj collapses to a rank-1 update (attn_out constant over C).
    x1 = x + s * wo_row + bo                                         # (L, C)

    # ---- norm2 + FFN (bf16 MXU operands, f32 accumulate) + residual.
    xn2 = _layer_norm(x1, g2, be2)
    h = jnp.dot(xn2.astype(jnp.bfloat16), w1_ref[...],
                preferred_element_type=jnp.float32) + b1_ref[...]
    h = jnp.maximum(h, 0.0)
    y = jnp.dot(h.astype(jnp.bfloat16), w2_ref[...],
                preferred_element_type=jnp.float32) + b2

    # Token-major -> channel-major; store back in the native (B, C, L) layout.
    o_ref[0] = jnp.transpose(x1 + y, (1, 0)).astype(o_ref.dtype)


def prepare_params(params):
    """One-time analytic weight fusion — call once, outside the jitted forward."""
    C = params["wq"].shape[0]
    K = params["E"].shape[0]
    inv_sqrt_c = 1.0 / math.sqrt(C)
    f32 = jnp.float32

    wq_row = jnp.sum(params["wq"], axis=0) * inv_sqrt_c              # (C,)
    bq_row = jnp.full((C,), jnp.sum(params["bq"]) * inv_sqrt_c / C)  # sums to sum(bq)/sqrt(C)
    wo_row = jnp.sum(params["wo"], axis=1)                           # (C,)
    vecs = jnp.stack([
        params["ln1_g"], params["ln1_b"],
        wq_row, bq_row, wo_row, params["bo"],
        params["ln2_g"], params["ln2_b"], params["b2"],
    ]).astype(f32)                                                   # (9, C)

    w_kv = jnp.concatenate(
        [params["wk"].T @ params["E"].T, params["wv"].T @ params["F"].T],
        axis=1).astype(f32)                                          # (C, 2K)
    b_kv = jnp.concatenate(
        [params["bk"] @ params["E"].T, params["bv"] @ params["F"].T]
    ).reshape(1, 2 * K).astype(f32)                                  # (1, 2K)

    return dict(
        vecs=vecs, w_kv=w_kv, b_kv=b_kv,
        w1=params["w1"].T.astype(jnp.bfloat16),                      # (C, 4C)
        b1=params["b1"].reshape(1, -1).astype(f32),                  # (1, 4C)
        w2=params["w2"].T.astype(jnp.bfloat16),                      # (4C, C)
    )


def transformer_bottleneck(x_nchw, fused):
    """x_nchw: (B, C, H, W) float32, C == embed_dim; fused = prepare_params(params)."""
    B, C, H, W = x_nchw.shape
    L = H * W
    K = fused["b_kv"].shape[-1] // 2
    f32 = jnp.float32

    # Pure reshape (no data movement): the layout transposes live in-kernel.
    x = x_nchw.reshape(B, C, L).astype(f32)

    flops = int(B * 2 * L * C * (2 * K + 8 * C))
    transc = int(B * L * (K + 4))
    bytes_acc = int(2 * B * L * C * 4 + fused["vecs"].size * 4
                    + fused["w_kv"].size * 4 + fused["b_kv"].size * 4
                    + fused["w1"].size * 2 + fused["b1"].size * 4
                    + fused["w2"].size * 2)

    # One 256-token step per batch element, marked "parallel" so v7x runs one
    # per TensorCore; v5e/v6e pay ~0.35us/step, small vs per-step work.
    # For larger H*W: add an L-tile grid axis and size it so the f32 FFN
    # hidden (tile_L x 4C) + double-buffered x/out blocks + weights stay
    # under ~24 MiB (v7x has 64 MiB physical VMEM), and set
    # pltpu.CompilerParams(vmem_limit_bytes=...) accordingly.
    out = pl.pallas_call(
        functools.partial(_bottleneck_kernel, K),
        out_shape=jax.ShapeDtypeStruct((B, C, L), f32),
        grid_spec=pltpu.PrefetchScalarGridSpec(
            num_scalar_prefetch=0,
            grid=(B,),
            in_specs=[
                pl.BlockSpec((1, C, L), lambda b: (b, 0, 0)),
                pl.BlockSpec((9, C), lambda b: (0, 0)),
                pl.BlockSpec((C, 2 * K), lambda b: (0, 0)),
                pl.BlockSpec((1, 2 * K), lambda b: (0, 0)),
                pl.BlockSpec((C, 4 * C), lambda b: (0, 0)),
                pl.BlockSpec((1, 4 * C), lambda b: (0, 0)),
                pl.BlockSpec((4 * C, C), lambda b: (0, 0)),
            ],
            out_specs=pl.BlockSpec((1, C, L), lambda b: (b, 0, 0)),
        ),
        compiler_params=pltpu.CompilerParams(
            dimension_semantics=("parallel",)),
        cost_estimate=pl.CostEstimate(
            flops=flops, transcendentals=transc, bytes_accessed=bytes_acc),
    )(x, fused["vecs"], fused["w_kv"], fused["b_kv"],
      fused["w1"], fused["b1"], fused["w2"])

    return out.reshape(B, C, H, W)


def reference_bottleneck(x_nchw, params):
    """Pure-JAX f32 reference with the module's (unfused) semantics."""
    B, C, H, W = x_nchw.shape
    L = H * W
    x = jnp.transpose(x_nchw.reshape(B, C, L), (0, 2, 1))

    xn = _layer_norm(x, params["ln1_g"], params["ln1_b"])
    q = xn @ params["wq"].T + params["bq"]
    k = xn @ params["wk"].T + params["bk"]
    v = xn @ params["wv"].T + params["bv"]
    k_lin = jnp.einsum("blc,kc->blk", k, params["E"])
    v_lin = jnp.einsum("blc,kc->blk", v, params["F"])
    scores = jnp.sum(q, axis=-1, keepdims=True) * k_lin / math.sqrt(C)
    attn_w = jax.nn.softmax(scores, axis=-1)
    s = jnp.sum(attn_w * v_lin, axis=-1, keepdims=True)
    attn_out = jnp.broadcast_to(s, x.shape)
    out = attn_out @ params["wo"].T + params["bo"]
    x = x + out
    xn2 = _layer_norm(x, params["ln2_g"], params["ln2_b"])
    h = jnp.maximum(xn2 @ params["w1"].T + params["b1"], 0.0)
    x = x + (h @ params["w2"].T + params["b2"])
    return jnp.transpose(x, (0, 2, 1)).reshape(B, C, H, W)


def init_params(key, embed_dim, proj_k):
    """Deterministic synthetic init mirroring the module's parameter shapes."""
    def linear(k, fan_in, fan_out):
        kw, kb = jax.random.split(k)
        bound = 1.0 / math.sqrt(fan_in)
        w = jax.random.uniform(kw, (fan_out, fan_in), jnp.float32, -bound, bound)
        b = jax.random.uniform(kb, (fan_out,), jnp.float32, -bound, bound)
        return w, b

    ks = jax.random.split(key, 8)
    wq, bq = linear(ks[0], embed_dim, embed_dim)
    wk, bk = linear(ks[1], embed_dim, embed_dim)
    wv, bv = linear(ks[2], embed_dim, embed_dim)
    wo, bo = linear(ks[3], embed_dim, embed_dim)
    w1, b1 = linear(ks[4], embed_dim, 4 * embed_dim)
    w2, b2 = linear(ks[5], 4 * embed_dim, embed_dim)
    E = jax.random.normal(ks[6], (proj_k, embed_dim), jnp.float32)
    F = jax.random.normal(ks[7], (proj_k, embed_dim), jnp.float32)
    ones = jnp.ones((embed_dim,), jnp.float32)
    zeros = jnp.zeros((embed_dim,), jnp.float32)
    return dict(ln1_g=ones, ln1_b=zeros, ln2_g=ones, ln2_b=zeros,
                wq=wq, bq=bq, wk=wk, bk=bk, wv=wv, bv=bv,
                wo=wo, bo=bo, w1=w1, b1=b1, w2=w2, b2=b2, E=E, F=F)


if __name__ == "__main__":
    B, C, H, W = 2, 128, 16, 16          # embed_dim = C = 128, L = 256
    PROJ_K = 64                          # NUM_HEADS=4 is defined but unused in forward

    root = jax.random.PRNGKey(0)
    kx, kp = jax.random.split(root)
    x = jax.random.normal(kx, (B, C, H, W), jnp.float32)
    params = init_params(kp, C, PROJ_K)

    # Weight fusion runs once, outside the per-call jitted forward.
    fused = prepare_params(params)

    fwd = jax.jit(transformer_bottleneck)
    y = jax.block_until_ready(fwd(x, fused))
    y_ref = jax.block_until_ready(reference_bottleneck(x, params))

    assert y.shape == (B, C, H, W)
    # Tolerance sized for the bf16-MXU FFN path + approx softmax reciprocal;
    # the attention/score path is kept in f32 and matches to ~1e-4.
    np.testing.assert_allclose(np.asarray(y), np.asarray(y_ref), rtol=2e-2, atol=2e-2)
    print("KERNEL_OK")
</pallas_src>

<mosaic_0001>
module attributes {stable_mosaic.version = 11 : i64} {
  func.func @_bottleneck_kernel(%arg0: i32, %arg1: memref<1x128x256xf32, #tpu.memory_space<vmem>>, %arg2: memref<9x128xf32, #tpu.memory_space<vmem>>, %arg3: memref<128x128xf32, #tpu.memory_space<vmem>>, %arg4: memref<1x128xf32, #tpu.memory_space<vmem>>, %arg5: memref<128x512xbf16, #tpu.memory_space<vmem>>, %arg6: memref<1x512xf32, #tpu.memory_space<vmem>>, %arg7: memref<512x128xbf16, #tpu.memory_space<vmem>>, %arg8: memref<1x128x256xf32, #tpu.memory_space<vmem>>) attributes {dimension_semantics = [#tpu.dimension_semantics<parallel>], iteration_bounds = array<i64: 2>, scalar_prefetch = 0 : i64, scratch_operands = 0 : i64, tpu.core_type = #tpu.core_type<tc>, window_params = [{transform_indices = @transform_0, window_bounds = array<i64: 1, 128, 256>}, {pipeline_mode = #tpu.pipeline_mode<synchronous>, transform_indices = @transform_1, window_bounds = array<i64: 9, 128>}, {pipeline_mode = #tpu.pipeline_mode<synchronous>, transform_indices = @transform_2, window_bounds = array<i64: 128, 128>}, {pipeline_mode = #tpu.pipeline_mode<synchronous>, transform_indices = @transform_3, window_bounds = array<i64: 1, 128>}, {pipeline_mode = #tpu.pipeline_mode<synchronous>, transform_indices = @transform_4, window_bounds = array<i64: 128, 512>}, {pipeline_mode = #tpu.pipeline_mode<synchronous>, transform_indices = @transform_5, window_bounds = array<i64: 1, 512>}, {pipeline_mode = #tpu.pipeline_mode<synchronous>, transform_indices = @transform_6, window_bounds = array<i64: 512, 128>}, {transform_indices = @transform_7, window_bounds = array<i64: 1, 128, 256>}]} {
    %c0 = arith.constant 0 : index
    %c0_0 = arith.constant 0 : index
    %c0_1 = arith.constant 0 : index
    %0 = vector.load %arg1[%c0, %c0_0, %c0_1] : memref<1x128x256xf32, #tpu.memory_space<vmem>>, vector<1x128x256xf32>
    %1 = vector.shape_cast %0 : vector<1x128x256xf32> to vector<128x256xf32>
    %2 = tpu.transpose %1, [1, 0] : vector<128x256xf32> -> vector<256x128xf32>
    %c0_2 = arith.constant 0 : index
    %c0_3 = arith.constant 0 : index
    %3 = vector.load %arg2[%c0_2, %c0_3] : memref<9x128xf32, #tpu.memory_space<vmem>>, vector<9x128xf32>
    %4 = vector.extract_strided_slice %3 {offsets = [0, 0], sizes = [1, 128], strides = [1, 1]} : vector<9x128xf32> to vector<1x128xf32>
    %5 = vector.extract_strided_slice %3 {offsets = [1, 0], sizes = [1, 128], strides = [1, 1]} : vector<9x128xf32> to vector<1x128xf32>
    %6 = vector.extract_strided_slice %3 {offsets = [2, 0], sizes = [1, 128], strides = [1, 1]} : vector<9x128xf32> to vector<1x128xf32>
    %7 = vector.extract_strided_slice %3 {offsets = [3, 0], sizes = [1, 128], strides = [1, 1]} : vector<9x128xf32> to vector<1x128xf32>
    %8 = vector.extract_strided_slice %3 {offsets = [4, 0], sizes = [1, 128], strides = [1, 1]} : vector<9x128xf32> to vector<1x128xf32>
    %9 = vector.extract_strided_slice %3 {offsets = [5, 0], sizes = [1, 128], strides = [1, 1]} : vector<9x128xf32> to vector<1x128xf32>
    %10 = vector.extract_strided_slice %3 {offsets = [6, 0], sizes = [1, 128], strides = [1, 1]} : vector<9x128xf32> to vector<1x128xf32>
    %11 = vector.extract_strided_slice %3 {offsets = [7, 0], sizes = [1, 128], strides = [1, 1]} : vector<9x128xf32> to vector<1x128xf32>
    %12 = vector.extract_strided_slice %3 {offsets = [8, 0], sizes = [1, 128], strides = [1, 1]} : vector<9x128xf32> to vector<1x128xf32>
    %cst = arith.constant dense<0.000000e+00> : vector<256xf32>
    %13 = vector.multi_reduction <add>, %2, %cst [1] : vector<256x128xf32> to vector<256xf32>
    %14 = vector.shape_cast %13 : vector<256xf32> to vector<256x1xf32>
    %cst_4 = arith.constant 1.280000e+02 : f32
    %15 = vector.broadcast %cst_4 : f32 to vector<256x1xf32>
    %16 = arith.divf %14, %15 : vector<256x1xf32>
    %17 = vector.broadcast %16 : vector<256x1xf32> to vector<256x128xf32>
    %18 = arith.subf %2, %17 : vector<256x128xf32>
    %19 = arith.mulf %18, %18 : vector<256x128xf32>
    %cst_5 = arith.constant dense<0.000000e+00> : vector<256xf32>
    %20 = vector.multi_reduction <add>, %19, %cst_5 [1] : vector<256x128xf32> to vector<256xf32>
    %21 = vector.shape_cast %20 : vector<256xf32> to vector<256x1xf32>
    %cst_6 = arith.constant 1.280000e+02 : f32
    %22 = vector.broadcast %cst_6 : f32 to vector<256x1xf32>
    %23 = arith.divf %21, %22 : vector<256x1xf32>
    %24 = vector.broadcast %16 : vector<256x1xf32> to vector<256x128xf32>
    %25 = arith.subf %2, %24 : vector<256x128xf32>
    %cst_7 = arith.constant 9.99999974E-6 : f32
    %26 = vector.broadcast %cst_7 : f32 to vector<256x1xf32>
    %27 = arith.addf %23, %26 : vector<256x1xf32>
    %28 = math.rsqrt %27 : vector<256x1xf32>
    %29 = vector.broadcast %28 : vector<256x1xf32> to vector<256x128xf32>
    %30 = arith.mulf %25, %29 : vector<256x128xf32>
    %31 = vector.broadcast %4 : vector<1x128xf32> to vector<256x128xf32>
    %32 = arith.mulf %30, %31 : vector<256x128xf32>
    %33 = vector.broadcast %5 : vector<1x128xf32> to vector<256x128xf32>
    %34 = arith.addf %32, %33 : vector<256x128xf32>
    %c0_8 = arith.constant 0 : index
    %c0_9 = arith.constant 0 : index
    %35 = vector.load %arg3[%c0_8, %c0_9] : memref<128x128xf32, #tpu.memory_space<vmem>>, vector<128x128xf32>
    %cst_10 = arith.constant dense<0.000000e+00> : vector<256x128xf32>
    %36 = tpu.matmul %34, %35, %cst_10 {dimension_numbers = #tpu.dot_dimension_numbers<[1], [0], [0], [1], [0, 0, 1, 1], [], []>} : vector<256x128xf32>, vector<128x128xf32>, vector<256x128xf32> -> vector<256x128xf32>
    %c0_11 = arith.constant 0 : index
    %c0_12 = arith.constant 0 : index
    %37 = vector.load %arg4[%c0_11, %c0_12] : memref<1x128xf32, #tpu.memory_space<vmem>>, vector<1x128xf32>
    %38 = vector.broadcast %37 : vector<1x128xf32> to vector<256x128xf32>
    %39 = arith.addf %36, %38 : vector<256x128xf32>
    %40 = vector.extract_strided_slice %39 {offsets = [0, 0], sizes = [256, 64], strides = [1, 1]} : vector<256x128xf32> to vector<256x64xf32>
    %41 = vector.extract_strided_slice %39 {offsets = [0, 64], sizes = [256, 64], strides = [1, 1]} : vector<256x128xf32> to vector<256x64xf32>
    %42 = vector.broadcast %6 : vector<1x128xf32> to vector<256x128xf32>
    %43 = arith.mulf %34, %42 : vector<256x128xf32>
    %44 = vector.broadcast %7 : vector<1x128xf32> to vector<256x128xf32>
    %45 = arith.addf %43, %44 : vector<256x128xf32>
    %cst_13 = arith.constant dense<0.000000e+00> : vector<256xf32>
    %46 = vector.multi_reduction <add>, %45, %cst_13 [1] : vector<256x128xf32> to vector<256xf32>
    %47 = vector.shape_cast %46 : vector<256xf32> to vector<256x1xf32>
    %48 = vector.broadcast %47 : vector<256x1xf32> to vector<256x64xf32>
    %49 = arith.mulf %48, %40 : vector<256x64xf32>
    %cst_14 = arith.constant dense<0xFF800000> : vector<256xf32>
    %50 = vector.multi_reduction <maximumf>, %49, %cst_14 [1] : vector<256x64xf32> to vector<256xf32>
    %51 = vector.shape_cast %50 : vector<256xf32> to vector<256x1xf32>
    %52 = vector.broadcast %51 : vector<256x1xf32> to vector<256x64xf32>
    %53 = arith.subf %49, %52 : vector<256x64xf32>
    %54 = math.exp %53 : vector<256x64xf32>
    %55 = arith.mulf %54, %41 : vector<256x64xf32>
    %cst_15 = arith.constant dense<0.000000e+00> : vector<256xf32>
    %56 = vector.multi_reduction <add>, %55, %cst_15 [1] : vector<256x64xf32> to vector<256xf32>
    %57 = vector.shape_cast %56 : vector<256xf32> to vector<256x1xf32>
    %cst_16 = arith.constant dense<0.000000e+00> : vector<256xf32>
    %58 = vector.multi_reduction <add>, %54, %cst_16 [1] : vector<256x64xf32> to vector<256xf32>
    %59 = vector.shape_cast %58 : vector<256xf32> to vector<256x1xf32>
    %60 = tpu.reciprocal %59 {approx = true} : vector<256x1xf32> -> vector<256x1xf32>
    %61 = arith.mulf %57, %60 : vector<256x1xf32>
    %62 = vector.broadcast %61 : vector<256x1xf32> to vector<256x128xf32>
    %63 = vector.broadcast %8 : vector<1x128xf32> to vector<256x128xf32>
    %64 = arith.mulf %62, %63 : vector<256x128xf32>
    %65 = arith.addf %2, %64 : vector<256x128xf32>
    %66 = vector.broadcast %9 : vector<1x128xf32> to vector<256x128xf32>
    %67 = arith.addf %65, %66 : vector<256x128xf32>
    %cst_17 = arith.constant dense<0.000000e+00> : vector<256xf32>
    %68 = vector.multi_reduction <add>, %67, %cst_17 [1] : vector<256x128xf32> to vector<256xf32>
    %69 = vector.shape_cast %68 : vector<256xf32> to vector<256x1xf32>
    %cst_18 = arith.constant 1.280000e+02 : f32
    %70 = vector.broadcast %cst_18 : f32 to vector<256x1xf32>
    %71 = arith.divf %69, %70 : vector<256x1xf32>
    %72 = vector.broadcast %71 : vector<256x1xf32> to vector<256x128xf32>
    %73 = arith.subf %67, %72 : vector<256x128xf32>
    %74 = arith.mulf %73, %73 : vector<256x128xf32>
    %cst_19 = arith.constant dense<0.000000e+00> : vector<256xf32>
    %75 = vector.multi_reduction <add>, %74, %cst_19 [1] : vector<256x128xf32> to vector<256xf32>
    %76 = vector.shape_cast %75 : vector<256xf32> to vector<256x1xf32>
    %cst_20 = arith.constant 1.280000e+02 : f32
    %77 = vector.broadcast %cst_20 : f32 to vector<256x1xf32>
    %78 = arith.divf %76, %77 : vector<256x1xf32>
    %79 = vector.broadcast %71 : vector<256x1xf32> to vector<256x128xf32>
    %80 = arith.subf %67, %79 : vector<256x128xf32>
    %cst_21 = arith.constant 9.99999974E-6 : f32
    %81 = vector.broadcast %cst_21 : f32 to vector<256x1xf32>
    %82 = arith.addf %78, %81 : vector<256x1xf32>
    %83 = math.rsqrt %82 : vector<256x1xf32>
    %84 = vector.broadcast %83 : vector<256x1xf32> to vector<256x128xf32>
    %85 = arith.mulf %80, %84 : vector<256x128xf32>
    %86 = vector.broadcast %10 : vector<1x128xf32> to vector<256x128xf32>
    %87 = arith.mulf %85, %86 : vector<256x128xf32>
    %88 = vector.broadcast %11 : vector<1x128xf32> to vector<256x128xf32>
    %89 = arith.addf %87, %88 : vector<256x128xf32>
    %90 = arith.truncf %89 : vector<256x128xf32> to vector<256x128xbf16>
    %c0_22 = arith.constant 0 : index
    %c0_23 = arith.constant 0 : index
    %91 = vector.load %arg5[%c0_22, %c0_23] : memref<128x512xbf16, #tpu.memory_space<vmem>>, vector<128x512xbf16>
    %cst_24 = arith.constant dense<0.000000e+00> : vector<256x512xf32>
    %92 = tpu.matmul %90, %91, %cst_24 {dimension_numbers = #tpu.dot_dimension_numbers<[1], [0], [0], [1], [0, 0, 1, 1], [], []>} : vector<256x128xbf16>, vector<128x512xbf16>, vector<256x512xf32> -> vector<256x512xf32>
    %c0_25 = arith.constant 0 : index
    %c0_26 = arith.constant 0 : index
    %93 = vector.load %arg6[%c0_25, %c0_26] : memref<1x512xf32, #tpu.memory_space<vmem>>, vector<1x512xf32>
    %94 = vector.broadcast %93 : vector<1x512xf32> to vector<256x512xf32>
    %95 = arith.addf %92, %94 : vector<256x512xf32>
    %cst_27 = arith.constant 0.000000e+00 : f32
    %96 = vector.broadcast %cst_27 : f32 to vector<256x512xf32>
    %97 = arith.maximumf %95, %96 : vector<256x512xf32>
    %98 = arith.truncf %97 : vector<256x512xf32> to vector<256x512xbf16>
    %c0_28 = arith.constant 0 : index
    %c0_29 = arith.constant 0 : index
    %99 = vector.load %arg7[%c0_28, %c0_29] : memref<512x128xbf16, #tpu.memory_space<vmem>>, vector<512x128xbf16>
    %cst_30 = arith.constant dense<0.000000e+00> : vector<256x128xf32>
    %100 = tpu.matmul %98, %99, %cst_30 {dimension_numbers = #tpu.dot_dimension_numbers<[1], [0], [0], [1], [0, 0, 1, 1], [], []>} : vector<256x512xbf16>, vector<512x128xbf16>, vector<256x128xf32> -> vector<256x128xf32>
    %101 = vector.broadcast %12 : vector<1x128xf32> to vector<256x128xf32>
    %102 = arith.addf %100, %101 : vector<256x128xf32>
    %103 = arith.addf %67, %102 : vector<256x128xf32>
    %104 = tpu.transpose %103, [1, 0] : vector<256x128xf32> -> vector<128x256xf32>
    %c0_31 = arith.constant 0 : index
    %c0_32 = arith.constant 0 : index
    %c0_33 = arith.constant 0 : index
    %105 = vector.load %arg8[%c0_31, %c0_32, %c0_33] : memref<1x128x256xf32, #tpu.memory_space<vmem>>, vector<1x128x256xf32>
    %106 = vector.shape_cast %105 : vector<1x128x256xf32> to vector<128x256xf32>
    %107 = vector.shape_cast %104 : vector<128x256xf32> to vector<1x128x256xf32>
    tpu.vector_store %arg8[%c0_31, %c0_32, %c0_33], %107 {strides = array<i32>} : memref<1x128x256xf32, #tpu.memory_space<vmem>>, vector<1x128x256xf32>,
    return
  }
  func.func @transform_0(%arg0: i32) -> (i32, i32, i32) {
    %c0_i32 = arith.constant 0 : i32
    %c0_i32_0 = arith.constant 0 : i32
    %c0_i32_1 = arith.constant 0 : i32
    return %arg0, %c0_i32, %c0_i32_0 : i32, i32, i32
  }
  func.func @transform_1(%arg0: i32) -> (i32, i32) {
    %c0_i32 = arith.constant 0 : i32
    %c0_i32_0 = arith.constant 0 : i32
    %c0_i32_1 = arith.constant 0 : i32
    return %c0_i32, %c0_i32_0 : i32, i32
  }
  func.func @transform_2(%arg0: i32) -> (i32, i32) {
    %c0_i32 = arith.constant 0 : i32
    %c0_i32_0 = arith.constant 0 : i32
    %c0_i32_1 = arith.constant 0 : i32
    return %c0_i32, %c0_i32_0 : i32, i32
  }
  func.func @transform_3(%arg0: i32) -> (i32, i32) {
    %c0_i32 = arith.constant 0 : i32
    %c0_i32_0 = arith.constant 0 : i32
    %c0_i32_1 = arith.constant 0 : i32
    return %c0_i32, %c0_i32_0 : i32, i32
  }
  func.func @transform_4(%arg0: i32) -> (i32, i32) {
    %c0_i32 = arith.constant 0 : i32
    %c0_i32_0 = arith.constant 0 : i32
    %c0_i32_1 = arith.constant 0 : i32
    return %c0_i32, %c0_i32_0 : i32, i32
  }
  func.func @transform_5(%arg0: i32) -> (i32, i32) {
    %c0_i32 = arith.constant 0 : i32
    %c0_i32_0 = arith.constant 0 : i32
    %c0_i32_1 = arith.constant 0 : i32
    return %c0_i32, %c0_i32_0 : i32, i32
  }
  func.func @transform_6(%arg0: i32) -> (i32, i32) {
    %c0_i32 = arith.constant 0 : i32
    %c0_i32_0 = arith.constant 0 : i32
    %c0_i32_1 = arith.constant 0 : i32
    return %c0_i32, %c0_i32_0 : i32, i32
  }
  func.func @transform_7(%arg0: i32) -> (i32, i32, i32) {
    %c0_i32 = arith.constant 0 : i32
    %c0_i32_0 = arith.constant 0 : i32
    %c0_i32_1 = arith.constant 0 : i32
    return %arg0, %c0_i32, %c0_i32_0 : i32, i32, i32
  }
}

</mosaic_0001>

<bundles_post_ra>
// kernel: transformer_bottleneck.1
= control target key start
LH: loop header
LB: loop body
LE: loop exit
PB: predicated region body
PF: predicated region fallthrough
CT: control target
= control target key end

     0   :  { %s4790_s24 = smov 0   ;;  %s6864_s0 = inlined_call_operand.vmem [shape: f32[2,128,256], index: 0, kind: input, shape index: {}]   ;;  %s6865_s1 = inlined_call_operand.vmem [shape: f32[9,128], index: 1, kind: input, shape index: {}]   ;;  %s6866_s2 = inlined_call_operand.vmem [shape: f32[128,128], index: 2, kind: input, shape index: {}]   ;;  %s6867_s3 = inlined_call_operand.vmem [shape: f32[1,128], index: 3, kind: input, shape index: {}]   ;;  %s6868_s4 = inlined_call_operand.vmem [shape: bf16[128,512], index: 4, kind: input, shape index: {}]   ;;  %s6869_s5 = inlined_call_operand.vmem [shape: f32[1,512], index: 5, kind: input, shape index: {}]   ;;  %s6870_s6 = inlined_call_operand.vmem [shape: bf16[512,128], index: 6, kind: input, shape index: {}]   ;;  %s6871_s7 = inlined_call_operand.vmem [shape: f32[2,128,256], index: 7, kind: output, shape index: {}]  }
   0x1 LB: > { %s3929_s25 = sadd.s32 4294967295, %s4746_s24   ;;  %p3933_p0 = scmp.ge.s32.totalorder %s4746_s24, 1  ;;  %s4746_s24 = sphi %s4790_s24, %s17_s24  }
   0x2   : > { %p237_p1 = scmp.lt.s32.totalorder %s4746_s24, 3 }
   0x4   : > { %p238_p2 = pnand %p3933_p0, %p237_p1 }
   0x6   : > { %241 = sbr.rel (%p238_p2) target bundleno = 2643 (0xa53), region = 48 }
   0xb   : > { %p269_p3 = scmp.lt.s32.totalorder %s3929_s25, 1  ;;  %s4748_s23 = smov 64   ;;  %vm1219_vm0 = vcmask 523264  }
   0xd   : > { %s7023_s25 = smov (!%p269_p3, %s3929_s25), 1 }
   0xe   : > { %s4006_s26 = sshll.u32 %s7023_s25, 8 }
   0xf   : > { %s4806_s29 = scalar_lea.vmem %s6864_s0, %s4006_s26  ;;  %s6808_s22 = scalar_lea.vmem %s6871_s7, %s4006_s26 }
  0x10   : > { %v281_v0 = vld [vmem:[%s4806_s29 + $0x8] sm:$0xff]  ;;  %v280_v1 = vld [vmem:[%s4806_s29] sm:$0xff]  ;;  %v283_v2 = vld [vmem:[%s4806_s29 + $0x18] sm:$0xff] }
  0x11   : > { %344 = vxpose.xlu1.b32.start [1/16] %v281_v0, 128  ;;  %312 = vxpose.xlu0.b32.start [1/16] %v280_v1, 128  ;;  %v282_v3 = vld [vmem:[%s4806_s29 + $0x10] sm:$0xff]  ;;  %v285_v4 = vld [vmem:[%s4806_s29 + $0x28] sm:$0xff]  ;;  %v284_v5 = vld [vmem:[%s4806_s29 + $0x20] sm:$0xff] }
  0x12   : > { %v287_v6 = vld [vmem:[%s4806_s29 + $0x38] sm:$0xff]  ;;  %v286_v7 = vld [vmem:[%s4806_s29 + $0x30] sm:$0xff]  ;;  %v289_v8 = vld [vmem:[%s4806_s29 + $0x48] sm:$0xff] }
  0x13   : > { %v288_v9 = vld [vmem:[%s4806_s29 + $0x40] sm:$0xff]  ;;  %v291_v10 = vld [vmem:[%s4806_s29 + $0x58] sm:$0xff]  ;;  %v290_v11 = vld [vmem:[%s4806_s29 + $0x50] sm:$0xff] }
  0x14   : > { %v293_v12 = vld [vmem:[%s4806_s29 + $0x68] sm:$0xff]  ;;  %v292_v13 = vld [vmem:[%s4806_s29 + $0x60] sm:$0xff]  ;;  %v295_v14 = vld [vmem:[%s4806_s29 + $0x78] sm:$0xff] }
  0x15   : > { %345 = vxpose.xlu1.b32.cont [2/16] %v283_v2, 128  ;;  %313 = vxpose.xlu0.b32.cont [2/16] %v282_v3, 128  ;;  %v294_v15 = vld [vmem:[%s4806_s29 + $0x70] sm:$0xff]  ;;  %v297_v16 = vld [vmem:[%s4806_s29 + $0x88] sm:$0xff]  ;;  %v296_v17 = vld [vmem:[%s4806_s29 + $0x80] sm:$0xff] }
  0x16   : > { %v299_v18 = vld [vmem:[%s4806_s29 + $0x98] sm:$0xff]  ;;  %v298_v19 = vld [vmem:[%s4806_s29 + $0x90] sm:$0xff]  ;;  %v301_v20 = vld [vmem:[%s4806_s29 + $0xa8] sm:$0xff] }
  0x17   : > { %v300_v21 = vld [vmem:[%s4806_s29 + $0xa0] sm:$0xff]  ;;  %v303_v22 = vld [vmem:[%s4806_s29 + $0xb8] sm:$0xff]  ;;  %v302_v23 = vld [vmem:[%s4806_s29 + $0xb0] sm:$0xff] }
  0x18   : > { %v305_v24 = vld [vmem:[%s4806_s29 + $0xc8] sm:$0xff]  ;;  %v304_v25 = vld [vmem:[%s4806_s29 + $0xc0] sm:$0xff]  ;;  %v307_v26 = vld [vmem:[%s4806_s29 + $0xd8] sm:$0xff] }
  0x19   : > { %346 = vxpose.xlu1.b32.cont [3/16] %v285_v4, 128  ;;  %314 = vxpose.xlu0.b32.cont [3/16] %v284_v5, 128  ;;  %v306_v27 = vld [vmem:[%s4806_s29 + $0xd0] sm:$0xff]  ;;  %v309_v28 = vld [vmem:[%s4806_s29 + $0xe8] sm:$0xff]  ;;  %v308_v29 = vld [vmem:[%s4806_s29 + $0xe0] sm:$0xff] }
  0x1a   : > { %v311_v30 = vld [vmem:[%s4806_s29 + $0xf8] sm:$0xff]  ;;  %v310_v31 = vld [vmem:[%s4806_s29 + $0xf0] sm:$0xff] }
  0x1b   : > { %v818_v0 = vld [vmem:[%s6866_s2 + $0x78] sm:$0xff]  ;;  %v817_v1 = vld [vmem:[%s6866_s2 + $0x70] sm:$0xff] }
  0x1c   : > { %4360 = vmatprep.subr.mxu1 %v818_v0  ;;  %4280 = vmatprep.subr.mxu0 %v818_v0 }
  0x1d   : > { %347 = vxpose.xlu1.b32.cont [4/16] %v287_v6, 128  ;;  %315 = vxpose.xlu0.b32.cont [4/16] %v286_v7, 128 }
  0x1e   : > { %4376 = vmatpush3.msra.mxu1 %v818_v0  ;;  %4281 = vmatpush3.msra.mxu0 %v818_v0 }
  0x1f   : > { %4361 = vmatprep.subr.mxu1 %v817_v1  ;;  %4282 = vmatprep.subr.mxu0 %v817_v1 }
  0x20   : > { %4377 = vmatpush3.msra.mxu1 %v817_v1  ;;  %4283 = vmatpush3.msra.mxu0 %v817_v1 }
  0x21   : > { %348 = vxpose.xlu1.b32.cont [5/16] %v289_v8, 128  ;;  %316 = vxpose.xlu0.b32.cont [5/16] %v288_v9, 128 }
  0x25   : > { %349 = vxpose.xlu1.b32.cont [6/16] %v291_v10, 128  ;;  %317 = vxpose.xlu0.b32.cont [6/16] %v290_v11, 128 }
  0x29   : > { %350 = vxpose.xlu1.b32.cont [7/16] %v293_v12, 128  ;;  %318 = vxpose.xlu0.b32.cont [7/16] %v292_v13, 128 }
  0x2d   : > { %351 = vxpose.xlu1.b32.cont [8/16] %v295_v14, 128  ;;  %319 = vxpose.xlu0.b32.cont [8/16] %v294_v15, 128 }
  0x31   : > { %352 = vxpose.xlu1.b32.cont [9/16] %v297_v16, 128  ;;  %320 = vxpose.xlu0.b32.cont [9/16] %v296_v17, 128 }
  0x35   : > { %353 = vxpose.xlu1.b32.cont [10/16] %v299_v18, 128  ;;  %321 = vxpose.xlu0.b32.cont [10/16] %v298_v19, 128 }
  0x39   : > { %354 = vxpose.xlu1.b32.cont [11/16] %v301_v20, 128  ;;  %322 = vxpose.xlu0.b32.cont [11/16] %v300_v21, 128 }
  0x3d   : > { %355 = vxpose.xlu1.b32.cont [12/16] %v303_v22, 128  ;;  %323 = vxpose.xlu0.b32.cont [12/16] %v302_v23, 128 }
  0x41   : > { %356 = vxpose.xlu1.b32.cont [13/16] %v305_v24, 128  ;;  %324 = vxpose.xlu0.b32.cont [13/16] %v304_v25, 128 }
  0x45   : > { %357 = vxpose.xlu1.b32.cont [14/16] %v307_v26, 128  ;;  %325 = vxpose.xlu0.b32.cont [14/16] %v306_v27, 128 }
  0x49   : > { %358 = vxpose.xlu1.b32.cont [15/16] %v309_v28, 128  ;;  %326 = vxpose.xlu0.b32.cont [15/16] %v308_v29, 128  ;;  %v816_v29 = vld [vmem:[%s6866_s2 + $0x68] sm:$0xff] }
  0x4a   : > { %4362 = vmatprep.subr.mxu1 %v816_v29  ;;  %4284 = vmatprep.subr.mxu0 %v816_v29 }
  0x4b   : > { %4378 = vmatpush3.msra.mxu1 %v816_v29  ;;  %4285 = vmatpush3.msra.mxu0 %v816_v29 }
  0x4d   : > { %359 = vxpose.xlu1.b32.end [16/16] %v311_v30, 128  ;;  %327 = vxpose.xlu0.b32.end [16/16] %v310_v31, 128  ;;  %v815_v30 = vld [vmem:[%s6866_s2 + $0x60] sm:$0xff] }
  0x4e   : > { %4363 = vmatprep.subr.mxu1 %v815_v30  ;;  %4286 = vmatprep.subr.mxu0 %v815_v30 }
  0x4f   : > { %4379 = vmatpush3.msra.mxu1 %v815_v30  ;;  %4287 = vmatpush3.msra.mxu0 %v815_v30  ;;  %v809_v30 = vld [vmem:[%s6866_s2 + $0x30] sm:$0xff] }
  0x8d   : > { %v4840_v32 = vpop.trf.xlu1  ;;  %v4842_v33 = vpop.trf.xlu0 }
  0x8e   : > { %6925 = vst [vmem:[#allocation2_spill] sm:$0xff] %v4840_v32  ;;  %6926 = vst [vmem:[#allocation3_spill] sm:$0xff] %v4842_v33  ;;  %410 = vadd.xlane.f32.xlu0 %v4840_v32  ;;  %378 = vadd.xlane.f32.xlu1 %v4842_v33 }
  0x91   : > { %v4846_v34 = vpop.trf.xlu1  ;;  %v4848_v35 = vpop.trf.xlu0 }
  0x92   : > { %6927 = vst [vmem:[#allocation4_spill] sm:$0xff] %v4846_v34  ;;  %6928 = vst [vmem:[#allocation5_spill] sm:$0xff] %v4848_v35  ;;  %412 = vadd.xlane.f32.xlu0 %v4846_v34  ;;  %380 = vadd.xlane.f32.xlu1 %v4848_v35 }
  0x95   : > { %v4852_v36 = vpop.trf.xlu1  ;;  %v4854_v37 = vpop.trf.xlu0 }
  0x96   : > { %6929 = vst [vmem:[#allocation6_spill] sm:$0xff] %v4852_v36  ;;  %6930 = vst [vmem:[#allocation7_spill] sm:$0xff] %v4854_v37  ;;  %382 = vadd.xlane.f32.xlu1 %v4854_v37 }
  0x99   : > { %v4857_v38 = vpop.trf.xlu1  ;;  %v4859_v39 = vpop.trf.xlu0 }
  0x9a   : > { %6931 = vst [vmem:[#allocation8_spill] sm:$0xff] %v4857_v38  ;;  %6932 = vst [vmem:[#allocation9_spill] sm:$0xff] %v4859_v39  ;;  %416 = vadd.xlane.f32.xlu0 %v4857_v38  ;;  %384 = vadd.xlane.f32.xlu1 %v4859_v39 }
  0x9d   : > { %v4863_v40 = vpop.trf.xlu1  ;;  %v4865_v41 = vpop.trf.xlu0 }
  0x9e   : > { %6933 = vst [vmem:[#allocation10_spill] sm:$0xff] %v4863_v40  ;;  %6934 = vst [vmem:[#allocation11_spill] sm:$0xff] %v4865_v41  ;;  %418 = vadd.xlane.f32.xlu0 %v4863_v40  ;;  %386 = vadd.xlane.f32.xlu1 %v4865_v41 }
  0xa1   : > { %v4869_v42 = vpop.trf.xlu1  ;;  %v4871_v43 = vpop.trf.xlu0 }
  0xa2   : > { %6935 = vst [vmem:[#allocation12_spill] sm:$0xff] %v4869_v42  ;;  %6936 = vst [vmem:[#allocation13_spill] sm:$0xff] %v4871_v43  ;;  %420 = vadd.xlane.f32.xlu0 %v4869_v42  ;;  %388 = vadd.xlane.f32.xlu1 %v4871_v43 }
  0xa5   : > { %v4875_v44 = vpop.trf.xlu1  ;;  %v4877_v45 = vpop.trf.xlu0 }
  0xa6   : > { %6937 = vst [vmem:[#allocation14_spill] sm:$0xff] %v4875_v44  ;;  %6938 = vst [vmem:[#allocation15_spill] sm:$0xff] %v4877_v45  ;;  %422 = vadd.xlane.f32.xlu0 %v4875_v44  ;;  %390 = vadd.xlane.f32.xlu1 %v4877_v45 }
  0xa9   : > { %v4881_v46 = vpop.trf.xlu1  ;;  %v4883_v47 = vpop.trf.xlu0 }
  0xaa   : > { %6939 = vst [vmem:[#allocation16_spill] sm:$0xff] %v4881_v46  ;;  %6940 = vst [vmem:[#allocation17_spill] sm:$0xff] %v4883_v47  ;;  %424 = vadd.xlane.f32.xlu0 %v4881_v46  ;;  %392 = vadd.xlane.f32.xlu1 %v4883_v47 }
  0xad   : > { %v4887_v48 = vpop.trf.xlu1  ;;  %v4889_v49 = vpop.trf.xlu0 }
  0xae   : > { %6941 = vst [vmem:[#allocation18_spill] sm:$0xff] %v4887_v48  ;;  %6942 = vst [vmem:[#allocation19_spill] sm:$0xff] %v4889_v49  ;;  %414 = vadd.xlane.f32.xlu1 %v4852_v36  ;;  %394 = vadd.xlane.f32.xlu0 %v4889_v49 }
  0xb1   : > { %v4893_v50 = vpop.trf.xlu1  ;;  %v4895_v51 = vpop.trf.xlu0 }
  0xb2   : > { %6943 = vst [vmem:[#allocation20_spill] sm:$0xff] %v4893_v50  ;;  %6944 = vst [vmem:[#allocation21_spill] sm:$0xff] %v4895_v51  ;;  %428 = vadd.xlane.f32.xlu1 %v4893_v50  ;;  %426 = vadd.xlane.f32.xlu0 %v4887_v48 }
  0xb5   : > { %v4899_v52 = vpop.trf.xlu1  ;;  %v4902_v53 = vpop.trf.xlu0 }
  0xb6   : > { %6945 = vst [vmem:[#allocation22_spill] sm:$0xff] %v4899_v52  ;;  %396 = vadd.xlane.f32.xlu0 %v4895_v51  ;;  %6946 = vst [vmem:[#allocation23_spill] sm:$0xff] %v4902_v53 }
  0xb9   : > { %v4904_v54 = vpop.trf.xlu1  ;;  %v4910_v56 = vpop.trf.xlu0 }
  0xba   : > { %6947 = vst [vmem:[#allocation24_spill] sm:$0xff] %v4904_v54  ;;  %432 = vadd.xlane.f32.xlu1 %v4904_v54  ;;  %398 = vadd.xlane.f32.xlu0 %v4902_v53  ;;  %6949 = vst [vmem:[#allocation26_spill] sm:$0xff] %v4910_v56 }
  0xbd   : > { %v4908_v55 = vpop.trf.xlu1  ;;  %v4917_v58 = vpop.trf.xlu0 }
  0xbe   : > { %6948 = vst [vmem:[#allocation25_spill] sm:$0xff] %v4908_v55  ;;  %430 = vadd.xlane.f32.xlu0 %v4899_v52  ;;  %6951 = vst [vmem:[#allocation28_spill] sm:$0xff] %v4917_v58 }
  0xc1   : > { %v4913_v57 = vpop.trf.xlu1  ;;  %v4924_v61 = vpop.trf.xlu0 }
  0xc2   : > { %6950 = vst [vmem:[#allocation27_spill] sm:$0xff] %v4913_v57  ;;  %436 = vadd.xlane.f32.xlu1 %v4913_v57  ;;  %400 = vadd.xlane.f32.xlu0 %v4910_v56  ;;  %6954 = vst [vmem:[#allocation31_spill] sm:$0xff] %v4924_v61 }
  0xc5   : > { %v4919_v59 = vpop.trf.xlu1  ;;  %v4929_v62 = vpop.trf.xlu0 }
  0xc6   : > { %6952 = vst [vmem:[#allocation29_spill] sm:$0xff] %v4919_v59  ;;  %402 = vadd.xlane.f32.xlu0 %v4917_v58  ;;  %6955 = vst [vmem:[#allocation32_spill] sm:$0xff] %v4929_v62 }
  0xc9   : > { %v4922_v60 = vpop.trf.xlu1  ;;  %v4933_v63 = vpop.trf.xlu0 }
  0xca   : > { %6953 = vst [vmem:[#allocation30_spill] sm:$0xff] %v4922_v60  ;;  %440 = vadd.xlane.f32.xlu1 %v4922_v60  ;;  %434 = vadd.xlane.f32.xlu0 %v4908_v55  ;;  %6956 = vst [vmem:[#allocation33_spill] sm:$0xff] %v4933_v63 }
  0xce   : > { %404 = vadd.xlane.f32.xlu0 %v4924_v61 }
  0xd2   : > { %406 = vadd.xlane.f32.xlu0 %v4929_v62 }
  0xd6   : > { %438 = vadd.xlane.f32.xlu0 %v4919_v59 }
  0xda   : > { %408 = vadd.xlane.f32.xlu0 %v4933_v63 }
 0x117   : > { %v379_v2 = vpop.xlane.xlu1 %378  ;;  %v411_v3 = vpop.xlane.xlu0 %410 }
 0x118   : > { %v443_v4 = vmul.f32 0.0078125, %v379_v2  ;;  %v459_v5 = vmul.f32 0.0078125, %v411_v3  ;;  %v814_v3 = vld [vmem:[%s6866_s2 + $0x58] sm:$0xff] }
 0x119   : > { %4364 = vmatprep.subr.mxu1 %v814_v3  ;;  %4288 = vmatprep.subr.mxu0 %v814_v3 }
 0x11a   : > { %v4943_v6 = vsub.f32 %v4842_v33, %v443_v4  ;;  %v4948_v12 = vsub.f32 %v4840_v32, %v459_v5  ;;  %4380 = vmatpush3.msra.mxu1 %v814_v3  ;;  %4289 = vmatpush3.msra.mxu0 %v814_v3  ;;  %v808_v3 = vld [vmem:[%s6866_s2 + $0x28] sm:$0xff] }
 0x11b   : > { %v381_v7 = vpop.xlane.xlu1 %380  ;;  %v413_v8 = vpop.xlane.xlu0 %412 }
 0x11c   : > { %v444_v9 = vmul.f32 0.0078125, %v381_v7  ;;  %v460_v10 = vmul.f32 0.0078125, %v413_v8  ;;  %v507_v11 = vmul.f32 %v4943_v6, %v4943_v6  ;;  %v523_v16 = vmul.f32 %v4948_v12, %v4948_v12  ;;  %v813_v8 = vld [vmem:[%s6866_s2 + $0x50] sm:$0xff] }
 0x11d   : > { %4365 = vmatprep.subr.mxu1 %v813_v8  ;;  %4290 = vmatprep.subr.mxu0 %v813_v8 }
 0x11e   : > { %539 = vadd.xlane.f32.xlu0 %v507_v11  ;;  %v4951_v13 = vsub.f32 %v4846_v34, %v460_v10  ;;  %v4958_v18 = vsub.f32 %v4848_v35, %v444_v9  ;;  %4381 = vmatpush3.msra.mxu1 %v813_v8  ;;  %v812_v11 = vld [vmem:[%s6866_s2 + $0x48] sm:$0xff] }
 0x11f   : > { %v383_v14 = vpop.xlane.xlu1 %382  ;;  %4291 = vmatpush3.msra.mxu0 %v813_v8  ;;  %4366 = vmatprep.subr.mxu1 %v812_v11  ;;  %v807_v8 = vld [vmem:[%s6866_s2 + $0x20] sm:$0xff] }
 0x120   : > { %v445_v15 = vmul.f32 0.0078125, %v383_v14  ;;  %v524_v17 = vmul.f32 %v4951_v13, %v4951_v13  ;;  %v508_v22 = vmul.f32 %v4958_v18, %v4958_v18  ;;  %4382 = vmatpush3.msra.mxu1 %v812_v11  ;;  %4292 = vmatprep.subr.mxu0 %v812_v11 }
 0x121   : > { %4293 = vmatpush3.msra.mxu0 %v812_v11 }
 0x122   : > { %571 = vadd.xlane.f32.xlu0 %v523_v16  ;;  %573 = vadd.xlane.f32.xlu1 %v524_v17  ;;  %v4965_v23 = vsub.f32 %v4854_v37, %v445_v15  ;;  %v811_v16 = vld [vmem:[%s6866_s2 + $0x40] sm:$0xff] }
 0x123   : > { %v4960_v19 = vpop.xlane.xlu1 %384  ;;  %v417_v20 = vpop.xlane.xlu0 %416  ;;  %4367 = vmatprep.subr.mxu1 %v811_v16  ;;  %4294 = vmatprep.subr.mxu0 %v811_v16 }
 0x124   : > { %v462_v21 = vmul.f32 0.0078125, %v417_v20  ;;  %v509_v27 = vmul.f32 %v4965_v23, %v4965_v23  ;;  %4383 = vmatpush3.msra.mxu1 %v811_v16  ;;  %4295 = vmatpush3.msra.mxu0 %v811_v16 }
 0x126   : > { %541 = vadd.xlane.f32.xlu0 %v508_v22  ;;  %v4968_v24 = vsub.f32 %v4857_v38, %v462_v21  ;;  %v810_v22 = vld [vmem:[%s6866_s2 + $0x38] sm:$0xff] }
 0x127   : > { %v4970_v25 = vpop.xlane.xlu1 %386  ;;  %v4972_v26 = vpop.xlane.xlu0 %418  ;;  %4368 = vmatprep.subr.mxu1 %v810_v22  ;;  %4296 = vmatprep.subr.mxu0 %v810_v22 }
 0x128   : > { %v526_v28 = vmul.f32 %v4968_v24, %v4968_v24  ;;  %4384 = vmatpush3.msra.mxu1 %v810_v22  ;;  %4297 = vmatpush3.msra.mxu0 %v810_v22  ;;  %v447_v11 = vmul.f32 0.0078125, %v4970_v25  ;;  %v463_v25 = vmul.f32 0.0078125, %v4972_v26  ;;  %v805_v22 = vld [vmem:[%s6866_s2 + $0x10] sm:$0xff]  ;;  %v804_v26 = vld [vmem:[%s6866_s2 + $0x8] sm:$0xff] }
 0x129   : > { %4369 = vmatprep.subr.mxu1 %v809_v30  ;;  %4298 = vmatprep.subr.mxu0 %v809_v30 }
 0x12a   : > { %543 = vadd.xlane.f32.xlu0 %v509_v27  ;;  %577 = vadd.xlane.f32.xlu1 %v526_v28 }
 0x12b   : > { %v389_v31 = vpop.xlane.xlu1 %388  ;;  %v421_v0 = vpop.xlane.xlu0 %420  ;;  %4385 = vmatpush3.msra.mxu1 %v809_v30  ;;  %4299 = vmatpush3.msra.mxu0 %v809_v30 }
 0x12c   : > { %v448_v1 = vmul.f32 0.0078125, %v389_v31  ;;  %v464_v2 = vmul.f32 0.0078125, %v421_v0  ;;  %v446_v31 = vmul.f32 0.0078125, %v4960_v19  ;;  %4370 = vmatprep.subr.mxu1 %v808_v3  ;;  %4300 = vmatprep.subr.mxu0 %v808_v3 }
 0x12d   : > { %4386 = vmatpush3.msra.mxu1 %v808_v3  ;;  %4301 = vmatpush3.msra.mxu0 %v808_v3 }
 0x12e   : > { %v4988_v4 = vsub.f32 %v4871_v43, %v448_v1  ;;  %v5000_v10 = vsub.f32 %v4869_v42, %v464_v2  ;;  %v5044_v16 = vsub.f32 %v4859_v39, %v446_v31  ;;  %4371 = vmatprep.subr.mxu1 %v807_v8  ;;  %4302 = vmatprep.subr.mxu0 %v807_v8 }
 0x12f   : > { %v4990_v5 = vpop.xlane.xlu1 %390  ;;  %v4992_v7 = vpop.xlane.xlu0 %422  ;;  %4387 = vmatpush3.msra.mxu1 %v807_v8  ;;  %4303 = vmatpush3.msra.mxu0 %v807_v8 }
 0x130   : > { %v512_v9 = vmul.f32 %v4988_v4, %v4988_v4  ;;  %v528_v21 = vmul.f32 %v5000_v10, %v5000_v10  ;;  %v510_v31 = vmul.f32 %v5044_v16, %v5044_v16 }
 0x132   : > { %549 = vadd.xlane.f32.xlu1 %v512_v9 }
 0x133   : > { %v393_v14 = vpop.xlane.xlu1 %392  ;;  %v425_v15 = vpop.xlane.xlu0 %424 }
 0x134   : > { %v450_v17 = vmul.f32 0.0078125, %v393_v14  ;;  %v466_v20 = vmul.f32 0.0078125, %v425_v15 }
 0x136   : > { %581 = vadd.xlane.f32.xlu1 %v528_v21  ;;  %v5014_v27 = vsub.f32 %v4883_v47, %v450_v17  ;;  %v5025_v2 = vsub.f32 %v4881_v46, %v466_v20  ;;  %v806_v20 = vld [vmem:[%s6866_s2 + $0x18] sm:$0xff] }
 0x137   : > { %v415_v28 = vpop.xlane.xlu1 %414  ;;  %v5016_v29 = vpop.xlane.xlu0 %394  ;;  %4372 = vmatprep.subr.mxu1 %v806_v20  ;;  %4304 = vmatprep.subr.mxu0 %v806_v20 }
 0x138   : > { %v461_v0 = vmul.f32 0.0078125, %v415_v28  ;;  %v514_v1 = vmul.f32 %v5014_v27, %v5014_v27  ;;  %v530_v15 = vmul.f32 %v5025_v2, %v5025_v2  ;;  %4388 = vmatpush3.msra.mxu1 %v806_v20  ;;  %4305 = vmatpush3.msra.mxu0 %v806_v20 }
 0x139   : > { %4373 = vmatprep.subr.mxu1 %v805_v22  ;;  %4306 = vmatprep.subr.mxu0 %v805_v22 }
 0x13a   : > { %553 = vadd.xlane.f32.xlu1 %v514_v1  ;;  %v5034_v19 = vsub.f32 %v4852_v36, %v461_v0  ;;  %v5056_v0 = vsub.f32 %v4865_v41, %v447_v11  ;;  %4389 = vmatpush3.msra.mxu1 %v805_v22  ;;  %v449_v11 = vmul.f32 0.0078125, %v4990_v5  ;;  %v465_v5 = vmul.f32 0.0078125, %v4992_v7 }
 0x13b   : > { %v5036_v9 = vpop.xlane.xlu0 %426  ;;  %v429_v17 = vpop.xlane.xlu1 %428  ;;  %4374 = vmatprep.subr.mxu1 %v804_v26  ;;  %4307 = vmatpush3.msra.mxu0 %v805_v22 }
 0x13c   : > { %v525_v14 = vmul.f32 %v5034_v19, %v5034_v19  ;;  %v468_v28 = vmul.f32 0.0078125, %v429_v17  ;;  %v511_v8 = vmul.f32 %v5056_v0, %v5056_v0  ;;  %4390 = vmatpush3.msra.mxu1 %v804_v26  ;;  %4308 = vmatprep.subr.mxu0 %v804_v26  ;;  %v5087_v7 = vsub.f32 %v4875_v44, %v465_v5 }
 0x13d   : > { %4309 = vmatpush3.msra.mxu0 %v804_v26 }
 0x13e   : > { %575 = vadd.xlane.f32.xlu0 %v525_v14  ;;  %585 = vadd.xlane.f32.xlu1 %v530_v15  ;;  %v5065_v14 = vsub.f32 %v4863_v40, %v463_v25  ;;  %v5073_v17 = vsub.f32 %v4893_v50, %v468_v28  ;;  %v803_v25 = vld [vmem:[%s6866_s2] sm:$0xff] }
 0x13f   : > { %v397_v21 = vpop.xlane.xlu0 %396  ;;  %4375 = vmatprep.subr.mxu1 %v803_v25  ;;  %4310 = vmatprep.subr.mxu0 %v803_v25 }
 0x140   : > { %v452_v30 = vmul.f32 0.0078125, %v397_v21  ;;  %v527_v21 = vmul.f32 %v5065_v14, %v5065_v14  ;;  %v532_v28 = vmul.f32 %v5073_v17, %v5073_v17  ;;  %4391 = vmatpush3.msra.mxu1 %v803_v25  ;;  %4311 = vmatpush3.msra.mxu0 %v803_v25 }
 0x142   : > { %545 = vadd.xlane.f32.xlu0 %v510_v31  ;;  %v5062_v1 = vsub.f32 %v4895_v51, %v452_v30  ;;  %v5084_v30 = vsub.f32 %v4877_v45, %v449_v11 }
 0x143   : > { %v399_v3 = vpop.xlane.xlu0 %398  ;;  %v433_v31 = vpop.xlane.xlu1 %432 }
 0x144   : > { %v516_v15 = vmul.f32 %v5062_v1, %v5062_v1  ;;  %v513_v46 = vmul.f32 %v5084_v30, %v5084_v30 }
 0x146   : > { %547 = vadd.xlane.f32.xlu0 %v511_v8  ;;  %557 = vadd.xlane.f32.xlu1 %v516_v15  ;;  %v451_v8 = vmul.f32 0.0078125, %v5016_v29  ;;  %v470_v15 = vmul.f32 0.0078125, %v433_v31 }
 0x147   : > { %v431_v20 = vpop.xlane.xlu0 %430 }
 0x148   : > { %v5101_v29 = vsub.f32 %v4889_v49, %v451_v8  ;;  %v5104_v5 = vsub.f32 %v4904_v54, %v470_v15 }
 0x14a   : > { %579 = vadd.xlane.f32.xlu0 %v527_v21  ;;  %589 = vadd.xlane.f32.xlu1 %v532_v28  ;;  %v529_v21 = vmul.f32 %v5087_v7, %v5087_v7  ;;  %v467_v28 = vmul.f32 0.0078125, %v5036_v9  ;;  %v515_v31 = vmul.f32 %v5101_v29, %v5101_v29 }
 0x14b   : > { %v401_v22 = vpop.xlane.xlu0 %400  ;;  %v437_v44 = vpop.xlane.xlu1 %436 }
 0x14c   : > { %v454_v50 = vmul.f32 0.0078125, %v401_v22  ;;  %v534_v22 = vmul.f32 %v5104_v5, %v5104_v5  ;;  %v5111_v9 = vsub.f32 %v4887_v48, %v467_v28 }
 0x14e   : > { %551 = vadd.xlane.f32.xlu0 %v513_v46  ;;  %v5093_v11 = vsub.f32 %v4910_v56, %v454_v50  ;;  %v453_v46 = vmul.f32 0.0078125, %v399_v3  ;;  %v531_v54 = vmul.f32 %v5111_v9, %v5111_v9 }
 0x14f   : > { %v403_v26 = vpop.xlane.xlu0 %402 }
 0x150   : > { %v518_v25 = vmul.f32 %v5093_v11, %v5093_v11  ;;  %v5114_v15 = vsub.f32 %v4902_v53, %v453_v46 }
 0x152   : > { %583 = vadd.xlane.f32.xlu0 %v529_v21  ;;  %561 = vadd.xlane.f32.xlu1 %v518_v25  ;;  %v469_v21 = vmul.f32 0.0078125, %v431_v20  ;;  %v472_v25 = vmul.f32 0.0078125, %v437_v44  ;;  %v517_v28 = vmul.f32 %v5114_v15, %v5114_v15 }
 0x153   : > { %v435_v50 = vpop.xlane.xlu0 %434 }
 0x154   : > { %v5126_v46 = vsub.f32 %v4899_v52, %v469_v21  ;;  %v5129_v44 = vsub.f32 %v4913_v57, %v472_v25 }
 0x156   : > { %555 = vadd.xlane.f32.xlu0 %v515_v31  ;;  %593 = vadd.xlane.f32.xlu1 %v534_v22  ;;  %v455_v31 = vmul.f32 0.0078125, %v403_v26  ;;  %v533_v26 = vmul.f32 %v5126_v46, %v5126_v46  ;;  %v536_v48 = vmul.f32 %v5129_v44, %v5129_v44 }
 0x157   : > { %v405_v8 = vpop.xlane.xlu0 %404 }
 0x158   : > { %v456_v3 = vmul.f32 0.0078125, %v405_v8  ;;  %v5132_v20 = vsub.f32 %v4917_v58, %v455_v31  ;;  %v441_v8 = vpop.xlane.xlu1 %440 }
 0x159   : > { %v474_v21 = vmul.f32 0.0078125, %v441_v8 }
 0x15a   : > { %587 = vadd.xlane.f32.xlu0 %v531_v54  ;;  %v5119_v42 = vsub.f32 %v4924_v61, %v456_v3  ;;  %v471_v3 = vmul.f32 0.0078125, %v435_v50  ;;  %v519_v31 = vmul.f32 %v5132_v20, %v5132_v20 }
 0x15b   : > { %v407_v40 = vpop.xlane.xlu0 %406  ;;  %v5147_v57 = vsub.f32 %v4922_v60, %v474_v21 }
 0x15c   : > { %v520_v22 = vmul.f32 %v5119_v42, %v5119_v42  ;;  %v5139_v25 = vsub.f32 %v4908_v55, %v471_v3 }
 0x15d   : > { %v538_v21 = vmul.f32 %v5147_v57, %v5147_v57 }
 0x15e   : > { %559 = vadd.xlane.f32.xlu0 %v517_v28  ;;  %565 = vadd.xlane.f32.xlu1 %v520_v22  ;;  %v457_v28 = vmul.f32 0.0078125, %v407_v40  ;;  %v535_v8 = vmul.f32 %v5139_v25, %v5139_v25 }
 0x15f   : > { %v439_v54 = vpop.xlane.xlu0 %438 }
 0x162   : > { %591 = vadd.xlane.f32.xlu0 %v533_v26  ;;  %597 = vadd.xlane.f32.xlu1 %v536_v48  ;;  %v5150_v26 = vsub.f32 %v4929_v62, %v457_v28  ;;  %v473_v48 = vmul.f32 0.0078125, %v439_v54 }
 0x163   : > { %v409_v52 = vpop.xlane.xlu0 %408 }
 0x164   : > { %v458_v22 = vmul.f32 0.0078125, %v409_v52  ;;  %v5157_v52 = vsub.f32 %v4919_v59, %v473_v48  ;;  %v521_v3 = vmul.f32 %v5150_v26, %v5150_v26  ;;  %v731_v59 = vlaneseq }
 0x166   : > { %563 = vadd.xlane.f32.xlu0 %v519_v31  ;;  %v5144_v50 = vsub.f32 %v4933_v63, %v458_v22  ;;  %v537_v54 = vmul.f32 %v5157_v52, %v5157_v52 }
 0x168   : > { %v522_v40 = vmul.f32 %v5144_v50, %v5144_v50 }
 0x16a   : > { %595 = vadd.xlane.f32.xlu0 %v535_v8  ;;  %569 = vadd.xlane.f32.xlu1 %v522_v40 }
 0x16e   : > { %567 = vadd.xlane.f32.xlu0 %v521_v3  ;;  %601 = vadd.xlane.f32.xlu1 %v538_v21  ;;  %v5165_v3 = vshrl.u32 %v731_v59, 7 }
 0x170   : > { %6957 = vst [vmem:[#allocation34_spill] sm:$0xff] %v5165_v3  ;;  %v6896_v59 = vsub.s32 3, %v5165_v3 }
 0x172   : > { %599 = vadd.xlane.f32.xlu0 %v537_v54 }
 0x1a7   : > { %v540_v28 = vpop.xlane.xlu0 %539 }
 0x1a8   : > { %v603_v22 = vmul.f32 0.0078125, %v540_v28  ;;  %v6888_v28 = vsub.s32 0, %v5165_v3 }
 0x1aa   : > { %v635_v31 = vadd.f32 1e-05, %v603_v22  ;;  %v376_v22 = vld [vmem:[%s6865_s1] sm:$0xff] }
 0x1ab   : > { %v574_v8 = vpop.xlane.xlu1 %573  ;;  %v572_v40 = vpop.xlane.xlu0 %571 }
 0x1ac   : > { %4482 = vrsqrt.f32 %v635_v31  ;;  %v620_v48 = vmul.f32 0.0078125, %v574_v8  ;;  %v619_v60 = vmul.f32 0.0078125, %v572_v40  ;;  %v6890_v8 = vsub.s32 1, %v5165_v3 }
 0x1ae   : > { %v652_v55 = vadd.f32 1e-05, %v620_v48  ;;  %v651_v38 = vadd.f32 1e-05, %v619_v60 }
 0x1af   : > { %v542_v36 = vpop.xlane.xlu0 %541 }
 0x1b0   : > { %4484 = vrsqrt.f32 %v652_v55  ;;  %v604_v32 = vmul.f32 0.0078125, %v542_v36  ;;  %v5174_v36 = vrot.slane %v376_v22, %v6888_v28  ;;  %v5180_v55 = vrot.slane %v376_v22, %v6890_v8 }
 0x1b1   : > { %4486 = vrsqrt.f32 %v651_v38  ;;  %v6892_v38 = vsub.s32 2, %v5165_v3 }
 0x1b2   : > { %v636_v21 = vadd.f32 1e-05, %v604_v32 }
 0x1b3   : > { %v544_v34 = vpop.xlane.xlu0 %543  ;;  %v578_v60 = vpop.xlane.xlu1 %577 }
 0x1b4   : > { %4488 = vrsqrt.f32 %v636_v21  ;;  %v605_v54 = vmul.f32 0.0078125, %v544_v34  ;;  %v5186_v21 = vrot.slane %v376_v22, %v6892_v38  ;;  %v622_v62 = vmul.f32 0.0078125, %v578_v60 }
 0x1b6   : > { %v637_v31 = vadd.f32 1e-05, %v605_v54 }
 0x1b8   : > { %4490 = vrsqrt.f32 %v637_v31 }
 0x1b9   : > { %v4483_v32 = vpop.eup %4482 }
 0x1ba   : > { %v699_v34 = vmul.f32 %v4483_v32, %v4943_v6  ;;  %v5191_v6 = vrot.slane %v376_v22, %v6896_v59 }
 0x1bb   : > { %v550_v40 = vpop.xlane.xlu1 %549 }
 0x1bc   : > { %v735_v48 = vmul.f32 %v5174_v36, %v699_v34  ;;  %v608_v59 = vmul.f32 0.0078125, %v550_v40 }
 0x1bd   : > { %v4485_v54 = vpop.eup %4484 }
 0x1be   : > { %v4487_v28 = vpop.eup %4486  ;;  %v771_v63 = vadd.f32 %v5180_v55, %v735_v48  ;;  %v716_v31 = vmul.f32 %v4485_v54, %v4951_v13  ;;  %v654_v54 = vadd.f32 1e-05, %v622_v62 }
 0x1bf   : > { %v582_v32 = vpop.xlane.xlu1 %581  ;;  %v715_v8 = vmul.f32 %v4487_v28, %v4948_v12 }
 0x1c0   : > { %4312 = vmatprep.mubr.f32.mxu0 %v771_v63  ;;  %v1055_v34 = vmul.f32 %v5186_v21, %v771_v63  ;;  %v752_v38 = vmul.f32 %v5174_v36, %v716_v31  ;;  %v640_v31 = vadd.f32 1e-05, %v608_v59  ;;  %4492 = vrsqrt.f32 %v654_v54 }
 0x1c1   : > { %v4489_v61 = vpop.eup %4488  ;;  %v751_v58 = vmul.f32 %v5174_v36, %v715_v8 }
 0x1c2   : > { %v1091_v48 = vadd.f32 %v5191_v6, %v1055_v34  ;;  %v788_v56 = vadd.f32 %v5180_v55, %v752_v38  ;;  %v700_v22 = vmul.f32 %v4489_v61, %v4958_v18  ;;  %v624_v18 = vmul.f32 0.0078125, %v582_v32 }
 0x1c3   : > { %v787_v13 = vadd.f32 %v5180_v55, %v751_v58  ;;  %v554_v28 = vpop.xlane.xlu1 %553  ;;  %4494 = vrsqrt.f32 %v640_v31 }
 0x1c4   : > { %1123 = vadd.xlane.f32.xlu0 %v1091_v48  ;;  %v736_v12 = vmul.f32 %v5174_v36, %v700_v22 }
 0x1c5   : > { %4336 = vmatprep.mubr.f32.mxu1 %v787_v13  ;;  %v1071_v63 = vmul.f32 %v5186_v21, %v787_v13  ;;  %v4491_v60 = vpop.eup %4490  ;;  %v1072_v13 = vmul.f32 %v5186_v21, %v788_v56 }
 0x1c6   : > { %4337 = vmatmul.mubr.f32.vlgmr.msra.gmra.mxu1 %v788_v56  ;;  %v772_v8 = vadd.f32 %v5180_v55, %v736_v12  ;;  %v701_v61 = vmul.f32 %v4491_v60, %v4965_v23  ;;  %v610_v23 = vmul.f32 0.0078125, %v554_v28  ;;  %v656_v60 = vadd.f32 1e-05, %v624_v18 }
 0x1c7   : > { %v576_v34 = vpop.xlane.xlu0 %575  ;;  %v1107_v38 = vadd.f32 %v5191_v6, %v1071_v63  ;;  %v586_v59 = vpop.xlane.xlu1 %585 }
 0x1c8   : > { %v621_v58 = vmul.f32 0.0078125, %v576_v34  ;;  %4313 = vmatmul.mubr.f32.vlgmr.msra.gmra.mxu0 %v772_v8  ;;  %v1056_v62 = vmul.f32 %v5186_v21, %v772_v8  ;;  %v737_v40 = vmul.f32 %v5174_v36, %v701_v61  ;;  %v1108_v34 = vadd.f32 %v5191_v6, %v1072_v13 }
 0x1c9   : > { %1155 = vadd.xlane.f32.xlu0 %v1107_v38  ;;  %v626_v38 = vmul.f32 0.0078125, %v586_v59  ;;  %v642_v31 = vadd.f32 1e-05, %v610_v23 }
 0x1ca   : > { %v653_v48 = vadd.f32 1e-05, %v621_v58  ;;  %v1092_v22 = vadd.f32 %v5191_v6, %v1056_v62  ;;  %v773_v63 = vadd.f32 %v5180_v55, %v737_v40 }
 0x1cb   : > { %v546_v12 = vpop.xlane.xlu0 %545  ;;  %v658_v18 = vadd.f32 1e-05, %v626_v38 }
 0x1cc   : > { %v606_v54 = vmul.f32 0.0078125, %v546_v12  ;;  %1125 = vadd.xlane.f32.xlu1 %v1092_v22  ;;  %4496 = vrsqrt.f32 %v653_v48  ;;  %4315 = vmatprep.mubr.f32.mxu0 %v773_v63  ;;  %v1057_v32 = vmul.f32 %v5186_v21, %v773_v63 }
 0x1cd   : > { %v4493_v12 = vpop.eup %4492 }
 0x1ce   : > { %v638_v8 = vadd.f32 1e-05, %v606_v54  ;;  %v1093_v56 = vadd.f32 %v5191_v6, %v1057_v32 }
 0x1cf   : > { %v558_v61 = vpop.xlane.xlu1 %557  ;;  %v548_v58 = vpop.xlane.xlu0 %547 }
 0x1d0   : > { %4498 = vrsqrt.f32 %v638_v8  ;;  %v607_v62 = vmul.f32 0.0078125, %v548_v58  ;;  %1157 = vadd.xlane.f32.xlu1 %v1108_v34  ;;  %1127 = vadd.xlane.f32.xlu0 %v1093_v56  ;;  %v612_v63 = vmul.f32 0.0078125, %v558_v61  ;;  %v4495_v32 = vpop.eup %4494  ;;  %v718_v8 = vmul.f32 %v4493_v12, %v4968_v24 }
 0x1d1   : > { %4500 = vrsqrt.f32 %v656_v60  ;;  %v704_v61 = vmul.f32 %v4495_v32, %v4988_v4 }
 0x1d2   : > { %v639_v28 = vadd.f32 1e-05, %v607_v62  ;;  %4502 = vrsqrt.f32 %v642_v31  ;;  %v644_v34 = vadd.f32 1e-05, %v612_v63 }
 0x1d3   : > { %v580_v40 = vpop.xlane.xlu0 %579  ;;  %v590_v48 = vpop.xlane.xlu1 %589  ;;  %v740_v4 = vmul.f32 %v5174_v36, %v704_v61 }
 0x1d4   : > { %v623_v22 = vmul.f32 0.0078125, %v580_v40  ;;  %4504 = vrsqrt.f32 %v639_v28  ;;  %v628_v59 = vmul.f32 0.0078125, %v590_v48 }
 0x1d5   : > { %4506 = vrsqrt.f32 %v658_v18  ;;  %v754_v18 = vmul.f32 %v5174_v36, %v718_v8 }
 0x1d6   : > { %v655_v13 = vadd.f32 1e-05, %v623_v22  ;;  %v660_v38 = vadd.f32 1e-05, %v628_v59 }
 0x1d7   : > { %v552_v54 = vpop.xlane.xlu0 %551  ;;  %v790_v32 = vadd.f32 %v5180_v55, %v754_v18  ;;  %v776_v18 = vadd.f32 %v5180_v55, %v740_v4 }
 0x1d8   : > { %v609_v23 = vmul.f32 0.0078125, %v552_v54  ;;  %4508 = vrsqrt.f32 %v655_v13 }
 0x1d9   : > { %v4497_v60 = vpop.eup %4496 }
 0x1da   : > { %v641_v58 = vadd.f32 1e-05, %v609_v23  ;;  %v717_v62 = vmul.f32 %v4497_v60, %v5034_v19 }
 0x1db   : > { %v562_v56 = vpop.xlane.xlu1 %561  ;;  %v584_v31 = vpop.xlane.xlu0 %583 }
 0x1dc   : > { %4510 = vrsqrt.f32 %v641_v58  ;;  %v625_v28 = vmul.f32 0.0078125, %v584_v31  ;;  %v753_v48 = vmul.f32 %v5174_v36, %v717_v62  ;;  %v614_v22 = vmul.f32 0.0078125, %v562_v56 }
 0x1dd   : > { %v4499_v40 = vpop.eup %4498  ;;  %4512 = vrsqrt.f32 %v644_v34 }
 0x1de   : > { %v4501_v24 = vpop.eup %4500  ;;  %v657_v12 = vadd.f32 1e-05, %v625_v28  ;;  %v702_v63 = vmul.f32 %v4499_v40, %v5044_v16  ;;  %4514 = vrsqrt.f32 %v660_v38  ;;  %v789_v19 = vadd.f32 %v5180_v55, %v753_v48 }
 0x1df   : > { %v594_v13 = vpop.xlane.xlu1 %593  ;;  %v556_v59 = vpop.xlane.xlu0 %555  ;;  %v720_v16 = vmul.f32 %v4501_v24, %v5000_v10  ;;  %v646_v38 = vadd.f32 1e-05, %v614_v22 }
 0x1e0   : > { %v611_v54 = vmul.f32 0.0078125, %v556_v59  ;;  %v738_v23 = vmul.f32 %v5174_v36, %v702_v63  ;;  %v4503_v8 = vpop.eup %4502  ;;  %4516 = vrsqrt.f32 %v657_v12  ;;  %v630_v34 = vmul.f32 0.0078125, %v594_v13  ;;  %4339 = vmatprep.mubr.f32.mxu1 %v789_v19 }
 0x1e1   : > { %v1073_v60 = vmul.f32 %v5186_v21, %v789_v19  ;;  %v4505_v58 = vpop.eup %4504  ;;  %4340 = vmatmul.mubr.f32.gmra.mxu1 %v790_v32  ;;  %v706_v10 = vmul.f32 %v4503_v8, %v5014_v27  ;;  %v756_v63 = vmul.f32 %v5174_v36, %v720_v16  ;;  %v1074_v19 = vmul.f32 %v5186_v21, %v790_v32 }
 0x1e2   : > { %v643_v56 = vadd.f32 1e-05, %v611_v54  ;;  %v774_v31 = vadd.f32 %v5180_v55, %v738_v23  ;;  %v703_v28 = vmul.f32 %v4505_v58, %v5056_v0  ;;  %v4507_v40 = vpop.eup %4506  ;;  %v662_v24 = vadd.f32 1e-05, %v630_v34 }
 0x1e3   : > { %v588_v62 = vpop.xlane.xlu0 %587  ;;  %v1109_v61 = vadd.f32 %v5191_v6, %v1073_v60  ;;  %v1060_v8 = vmul.f32 %v5186_v21, %v776_v18  ;;  %v722_v34 = vmul.f32 %v4507_v40, %v5025_v2  ;;  %v742_v58 = vmul.f32 %v5174_v36, %v706_v10 }
 0x1e4   : > { %v627_v48 = vmul.f32 0.0078125, %v588_v62  ;;  %4316 = vmatmul.mubr.f32.gmra.mxu0 %v774_v31  ;;  %v1058_v12 = vmul.f32 %v5186_v21, %v774_v31  ;;  %4518 = vrsqrt.f32 %v643_v56  ;;  %v739_v22 = vmul.f32 %v5174_v36, %v703_v28 }
 0x1e5   : > { %1159 = vadd.xlane.f32.xlu0 %v1109_v61  ;;  %v4509_v13 = vpop.eup %4508  ;;  %4520 = vrsqrt.f32 %v646_v38  ;;  %v792_v31 = vadd.f32 %v5180_v55, %v756_v63  ;;  %v1110_v2 = vadd.f32 %v5191_v6, %v1074_v19 }
 0x1e6   : > { %v659_v59 = vadd.f32 1e-05, %v627_v48  ;;  %v1094_v0 = vadd.f32 %v5191_v6, %v1058_v12  ;;  %v775_v23 = vadd.f32 %v5180_v55, %v739_v22  ;;  %v719_v27 = vmul.f32 %v4509_v13, %v5065_v14 }
 0x1e7   : > { %v566_v4 = vpop.xlane.xlu1 %565  ;;  %v560_v54 = vpop.xlane.xlu0 %559  ;;  %v758_v22 = vmul.f32 %v5174_v36, %v722_v34  ;;  %v1076_v19 = vmul.f32 %v5186_v21, %v792_v31 }
 0x1e8   : > { %4522 = vrsqrt.f32 %v659_v59  ;;  %v616_v60 = vmul.f32 0.0078125, %v566_v4  ;;  %v613_v16 = vmul.f32 0.0078125, %v560_v54  ;;  %1129 = vadd.xlane.f32.xlu1 %v1094_v0  ;;  %4318 = vmatprep.mubr.f32.mxu0 %v775_v23  ;;  %v1059_v32 = vmul.f32 %v5186_v21, %v775_v23 }
 0x1e9   : > { %v4511_v38 = vpop.eup %4510  ;;  %4524 = vrsqrt.f32 %v662_v24  ;;  %v755_v56 = vmul.f32 %v5174_v36, %v719_v27  ;;  %4319 = vmatmul.mubr.f32.gmra.mxu0 %v776_v18  ;;  %v1096_v24 = vadd.f32 %v5191_v6, %v1060_v8  ;;  %v778_v0 = vadd.f32 %v5180_v55, %v742_v58 }
 0x1ea   : > { %v4513_v14 = vpop.eup %4512  ;;  %v648_v62 = vadd.f32 1e-05, %v616_v60  ;;  %v645_v61 = vadd.f32 1e-05, %v613_v16  ;;  %v705_v28 = vmul.f32 %v4511_v38, %v5084_v30  ;;  %v1095_v12 = vadd.f32 %v5191_v6, %v1059_v32 }
 0x1eb   : > { %v598_v40 = vpop.xlane.xlu1 %597  ;;  %v592_v48 = vpop.xlane.xlu0 %591  ;;  %v791_v10 = vadd.f32 %v5180_v55, %v755_v56  ;;  %v708_v4 = vmul.f32 %v4513_v14, %v5062_v1  ;;  %v794_v58 = vadd.f32 %v5180_v55, %v758_v22  ;;  %v1062_v56 = vmul.f32 %v5186_v21, %v778_v0 }
 0x1ec   : > { %v4515_v13 = vpop.eup %4514  ;;  %v632_v63 = vmul.f32 0.0078125, %v598_v40  ;;  %v629_v59 = vmul.f32 0.0078125, %v592_v48  ;;  %1161 = vadd.xlane.f32.xlu1 %v1110_v2  ;;  %v741_v18 = vmul.f32 %v5174_v36, %v705_v28  ;;  %4526 = vrsqrt.f32 %v645_v61  ;;  %1131 = vadd.xlane.f32.xlu0 %v1095_v12 }
 0x1ed   : > { %4342 = vmatprep.mubr.f32.mxu1 %v791_v10  ;;  %v1075_v30 = vmul.f32 %v5186_v21, %v791_v10  ;;  %v4517_v54 = vpop.eup %4516  ;;  %4528 = vrsqrt.f32 %v648_v62  ;;  %v724_v38 = vmul.f32 %v4515_v13, %v5073_v17  ;;  %v744_v14 = vmul.f32 %v5174_v36, %v708_v4 }
 0x1ee   : > { %v664_v23 = vadd.f32 1e-05, %v632_v63  ;;  %v661_v27 = vadd.f32 1e-05, %v629_v59  ;;  %4343 = vmatmul.mubr.f32.gmra.mxu1 %v792_v31  ;;  %v777_v8 = vadd.f32 %v5180_v55, %v741_v18  ;;  %v721_v16 = vmul.f32 %v4517_v54, %v5087_v7 }
 0x1ef   : > { %v564_v34 = vpop.xlane.xlu0 %563  ;;  %v1111_v60 = vadd.f32 %v5191_v6, %v1075_v30  ;;  %v1112_v61 = vadd.f32 %v5191_v6, %v1076_v19  ;;  %v1078_v10 = vmul.f32 %v5186_v21, %v794_v58  ;;  %v1098_v63 = vadd.f32 %v5191_v6, %v1062_v56 }
 0x1f0   : > { %v615_v32 = vmul.f32 0.0078125, %v564_v34  ;;  %1133 = vadd.xlane.f32.xlu1 %v1096_v24  ;;  %4321 = vmatprep.mubr.f32.mxu0 %v777_v8  ;;  %v1061_v1 = vmul.f32 %v5186_v21, %v777_v8  ;;  %4530 = vrsqrt.f32 %v661_v27  ;;  %v757_v31 = vmul.f32 %v5174_v36, %v721_v16 }
 0x1f1   : > { %1163 = vadd.xlane.f32.xlu0 %v1111_v60  ;;  %4322 = vmatmul.mubr.f32.gmra.mxu0 %v778_v0  ;;  %v4519_v62 = vpop.eup %4518  ;;  %4532 = vrsqrt.f32 %v664_v23  ;;  %v760_v24 = vmul.f32 %v5174_v36, %v724_v38  ;;  %v780_v30 = vadd.f32 %v5180_v55, %v744_v14  ;;  %v1114_v16 = vadd.f32 %v5191_v6, %v1078_v10 }
 0x1f2   : > { %v647_v7 = vadd.f32 1e-05, %v615_v32  ;;  %v1097_v17 = vadd.f32 %v5191_v6, %v1061_v1  ;;  %v4521_v2 = vpop.eup %4520  ;;  %v793_v48 = vadd.f32 %v5180_v55, %v757_v31  ;;  %v707_v12 = vmul.f32 %v4519_v62, %v5101_v29 }
 0x1f3   : > { %v570_v28 = vpop.xlane.xlu1 %569  ;;  %v596_v40 = vpop.xlane.xlu0 %595  ;;  %v710_v23 = vmul.f32 %v4521_v2, %v5093_v11  ;;  %v796_v38 = vadd.f32 %v5180_v55, %v760_v24 }
 0x1f4   : > { %4534 = vrsqrt.f32 %v647_v7  ;;  %v618_v22 = vmul.f32 0.0078125, %v570_v28  ;;  %v631_v13 = vmul.f32 0.0078125, %v596_v40  ;;  %1165 = vadd.xlane.f32.xlu1 %v1112_v61  ;;  %4345 = vmatprep.mubr.f32.mxu1 %v793_v48  ;;  %v1077_v18 = vmul.f32 %v5186_v21, %v793_v48 }
 0x1f5   : > { %v4523_v59 = vpop.eup %4522  ;;  %1135 = vadd.xlane.f32.xlu0 %v1097_v17  ;;  %v743_v0 = vmul.f32 %v5174_v36, %v707_v12  ;;  %4346 = vmatmul.mubr.f32.gmra.mxu1 %v794_v58  ;;  %v746_v61 = vmul.f32 %v5174_v36, %v710_v23  ;;  %v1080_v12 = vmul.f32 %v5186_v21, %v796_v38 }
 0x1f6   : > { %v4525_v29 = vpop.eup %4524  ;;  %v650_v19 = vadd.f32 1e-05, %v618_v22  ;;  %v663_v4 = vadd.f32 1e-05, %v631_v13  ;;  %v723_v54 = vmul.f32 %v4523_v59, %v5111_v9  ;;  %v1113_v34 = vadd.f32 %v5191_v6, %v1077_v18 }
 0x1f7   : > { %v602_v27 = vpop.xlane.xlu1 %601  ;;  %v568_v8 = vpop.xlane.xlu0 %567  ;;  %v779_v60 = vadd.f32 %v5180_v55, %v743_v0  ;;  %v1064_v9 = vmul.f32 %v5186_v21, %v780_v30  ;;  %v726_v56 = vmul.f32 %v4525_v29, %v5104_v5  ;;  %v782_v59 = vadd.f32 %v5180_v55, %v746_v61 }
 0x1f8   : > { %4536 = vrsqrt.f32 %v650_v19  ;;  %v634_v32 = vmul.f32 0.0078125, %v602_v27  ;;  %v617_v1 = vmul.f32 0.0078125, %v568_v8  ;;  %1137 = vadd.xlane.f32.xlu1 %v1098_v63  ;;  %v759_v58 = vmul.f32 %v5174_v36, %v723_v54 }
 0x1f9   : > { %4538 = vrsqrt.f32 %v663_v4  ;;  %1167 = vadd.xlane.f32.xlu0 %v1113_v34  ;;  %4324 = vmatprep.mubr.f32.mxu0 %v779_v60  ;;  %v1063_v11 = vmul.f32 %v5186_v21, %v779_v60  ;;  %v4527_v31 = vpop.eup %4526  ;;  %v1100_v10 = vadd.f32 %v5191_v6, %v1064_v9  ;;  %v762_v22 = vmul.f32 %v5174_v36, %v726_v56 }
 0x1fa   : > { %v666_v14 = vadd.f32 1e-05, %v634_v32  ;;  %v649_v62 = vadd.f32 1e-05, %v617_v1  ;;  %4325 = vmatmul.mubr.f32.gmra.mxu0 %v780_v30  ;;  %v795_v7 = vadd.f32 %v5180_v55, %v759_v58  ;;  %v4529_v17 = vpop.eup %4528  ;;  %v709_v40 = vmul.f32 %v4527_v31, %v5114_v15 }
 0x1fb   : > { %v600_v2 = vpop.xlane.xlu0 %599  ;;  %v1099_v28 = vadd.f32 %v5191_v6, %v1063_v11  ;;  %v712_v18 = vmul.f32 %v4529_v17, %v5119_v42  ;;  %v1116_v19 = vadd.f32 %v5191_v6, %v1080_v12  ;;  %v798_v27 = vadd.f32 %v5180_v55, %v762_v22 }
 0x1fc   : > { %4540 = vrsqrt.f32 %v666_v14  ;;  %v633_v48 = vmul.f32 0.0078125, %v600_v2  ;;  %1169 = vadd.xlane.f32.xlu1 %v1114_v16  ;;  %4348 = vmatprep.mubr.f32.mxu1 %v795_v7  ;;  %v1079_v5 = vmul.f32 %v5186_v21, %v795_v7  ;;  %v745_v24 = vmul.f32 %v5174_v36, %v709_v40 }
 0x1fd   : > { %4542 = vrsqrt.f32 %v649_v62  ;;  %1139 = vadd.xlane.f32.xlu0 %v1099_v28  ;;  %4349 = vmatmul.mubr.f32.gmra.mxu1 %v796_v38  ;;  %v4531_v13 = vpop.eup %4530  ;;  %v1066_v42 = vmul.f32 %v5186_v21, %v782_v59  ;;  %v1082_v58 = vmul.f32 %v5186_v21, %v798_v27 }
 0x1fe   : > { %v665_v63 = vadd.f32 1e-05, %v633_v48  ;;  %v1115_v15 = vadd.f32 %v5191_v6, %v1079_v5  ;;  %v4533_v0 = vpop.eup %4532  ;;  %v781_v30 = vadd.f32 %v5180_v55, %v745_v24  ;;  %v725_v29 = vmul.f32 %v4531_v13, %v5126_v46 }
 0x1ff   : > { %v748_v46 = vmul.f32 %v5174_v36, %v712_v18  ;;  %v728_v34 = vmul.f32 %v4533_v0, %v5129_v44  ;;  %v1118_v17 = vadd.f32 %v5191_v6, %v1082_v58 }
 0x200   : > { %4544 = vrsqrt.f32 %v665_v63  ;;  %1141 = vadd.xlane.f32.xlu1 %v1100_v10  ;;  %4327 = vmatprep.mubr.f32.mxu0 %v781_v30  ;;  %v1065_v54 = vmul.f32 %v5186_v21, %v781_v30  ;;  %v761_v23 = vmul.f32 %v5174_v36, %v725_v29 }
 0x201   : > { %v4535_v4 = vpop.eup %4534  ;;  %1171 = vadd.xlane.f32.xlu0 %v1115_v15  ;;  %4328 = vmatmul.mubr.f32.gmra.mxu0 %v782_v59  ;;  %v784_v9 = vadd.f32 %v5180_v55, %v748_v46  ;;  %v764_v56 = vmul.f32 %v5174_v36, %v728_v34  ;;  %v5353_v46 = vld [vmem:[%s6867_s3] ss:$0 sm:$0xff] }
 0x202   : > { %v711_v8 = vmul.f32 %v4535_v4, %v5132_v20  ;;  %v1101_v60 = vadd.f32 %v5191_v6, %v1065_v54  ;;  %v797_v16 = vadd.f32 %v5180_v55, %v761_v23  ;;  %v1102_v20 = vadd.f32 %v5191_v6, %v1066_v42 }
 0x203   : > { %v800_v48 = vadd.f32 %v5180_v55, %v764_v56 }
 0x204   : > { %1173 = vadd.xlane.f32.xlu1 %v1116_v19  ;;  %v747_v38 = vmul.f32 %v5174_v36, %v711_v8  ;;  %4351 = vmatprep.mubr.f32.mxu1 %v797_v16  ;;  %v1081_v1 = vmul.f32 %v5186_v21, %v797_v16 }
 0x205   : > { %v4537_v32 = vpop.eup %4536  ;;  %1143 = vadd.xlane.f32.xlu0 %v1101_v60  ;;  %4352 = vmatmul.mubr.f32.gmra.mxu1 %v798_v27 }
 0x206   : > { %v4539_v11 = vpop.eup %4538  ;;  %v783_v44 = vadd.f32 %v5180_v55, %v747_v38  ;;  %v1117_v31 = vadd.f32 %v5191_v6, %v1081_v1  ;;  %v714_v7 = vmul.f32 %v4537_v32, %v5144_v50 }
 0x207   : > { %v727_v14 = vmul.f32 %v4539_v11, %v5139_v25  ;;  %v1068_v25 = vmul.f32 %v5186_v21, %v784_v9 }
 0x208   : > { %1145 = vadd.xlane.f32.xlu1 %v1102_v20  ;;  %4330 = vmatprep.mubr.f32.mxu0 %v783_v44  ;;  %v1067_v62 = vmul.f32 %v5186_v21, %v783_v44  ;;  %v750_v10 = vmul.f32 %v5174_v36, %v714_v7 }
 0x209   : > { %v4541_v61 = vpop.eup %4540  ;;  %1175 = vadd.xlane.f32.xlu0 %v1117_v31  ;;  %4331 = vmatmul.mubr.f32.gmra.mxu0 %v784_v9  ;;  %v763_v2 = vmul.f32 %v5174_v36, %v727_v14  ;;  %v1104_v15 = vadd.f32 %v5191_v6, %v1068_v25 }
 0x20a   : > { %v4543_v28 = vpop.eup %4542  ;;  %v1103_v40 = vadd.f32 %v5191_v6, %v1067_v62  ;;  %v730_v5 = vmul.f32 %v4541_v61, %v5147_v57  ;;  %v1084_v57 = vmul.f32 %v5186_v21, %v800_v48  ;;  %v786_v30 = vadd.f32 %v5180_v55, %v750_v10 }
 0x20b   : > { %v799_v12 = vadd.f32 %v5180_v55, %v763_v2  ;;  %v713_v50 = vmul.f32 %v4543_v28, %v5150_v26 }
 0x20c   : > { %1177 = vadd.xlane.f32.xlu1 %v1118_v17  ;;  %v766_v24 = vmul.f32 %v5174_v36, %v730_v5  ;;  %v1120_v4 = vadd.f32 %v5191_v6, %v1084_v57  ;;  %v1070_v42 = vmul.f32 %v5186_v21, %v786_v30 }
 0x20d   : > { %v4545_v22 = vpop.eup %4544  ;;  %1147 = vadd.xlane.f32.xlu0 %v1103_v40  ;;  %4354 = vmatprep.mubr.f32.mxu1 %v799_v12  ;;  %v1083_v13 = vmul.f32 %v5186_v21, %v799_v12  ;;  %v749_v63 = vmul.f32 %v5174_v36, %v713_v50 }
 0x20e   : > { %4355 = vmatmul.mubr.f32.gmra.mxu1 %v800_v48  ;;  %v729_v59 = vmul.f32 %v4545_v22, %v5157_v52  ;;  %v802_v0 = vadd.f32 %v5180_v55, %v766_v24 }
 0x20f   : > { %v1119_v26 = vadd.f32 %v5191_v6, %v1083_v13  ;;  %v785_v18 = vadd.f32 %v5180_v55, %v749_v63 }
 0x210   : > { %1149 = vadd.xlane.f32.xlu1 %v1104_v15  ;;  %v765_v29 = vmul.f32 %v5174_v36, %v729_v59  ;;  %v1086_v23 = vmul.f32 %v5186_v21, %v802_v0 }
 0x211   : > { %1179 = vadd.xlane.f32.xlu0 %v1119_v26  ;;  %4333 = vmatprep.mubr.f32.mxu0 %v785_v18  ;;  %v1069_v19 = vmul.f32 %v5186_v21, %v785_v18 }
 0x212   : > { %4334 = vmatmul.mubr.f32.gmra.mxu0 %v786_v30  ;;  %v801_v52 = vadd.f32 %v5180_v55, %v765_v29  ;;  %v1122_v8 = vadd.f32 %v5191_v6, %v1086_v23  ;;  %v1106_v55 = vadd.f32 %v5191_v6, %v1070_v42 }
 0x213   : > { %v1105_v54 = vadd.f32 %v5191_v6, %v1069_v19 }
 0x214   : > { %1181 = vadd.xlane.f32.xlu1 %v1120_v4  ;;  %4357 = vmatprep.mubr.f32.mxu1 %v801_v52  ;;  %v1085_v27 = vmul.f32 %v5186_v21, %v801_v52 }
 0x215   : > { %1151 = vadd.xlane.f32.xlu0 %v1105_v54  ;;  %4358 = vmatmul.mubr.f32.gmra.mxu1 %v802_v0 }
 0x216   : > { %v1121_v36 = vadd.f32 %v5191_v6, %v1085_v27 }
 0x218   : > { %1183 = vadd.xlane.f32.xlu1 %v1121_v36 }
 0x219   : > { %1185 = vadd.xlane.f32.xlu0 %v1122_v8 }
 0x21c   : > { %1153 = vadd.xlane.f32.xlu1 %v1106_v55 }
 0x24d   : > { %v1124_v58 = vpop.xlane.xlu0 %1123 }
 0x252   : > { %v1156_v14 = vpop.xlane.xlu0 %1155 }
 0x255   : > { %v1126_v21 = vpop.xlane.xlu1 %1125 }
 0x259   : > { %v1158_v1 = vpop.xlane.xlu1 %1157  ;;  %v1128_v22 = vpop.xlane.xlu0 %1127 }
 0x26e   : > { %v1160_v59 = vpop.xlane.xlu0 %1159 }
 0x271   : > { %v1130_v25 = vpop.xlane.xlu1 %1129 }
 0x275   : > { %v1162_v50 = vpop.xlane.xlu1 %1161  ;;  %v1132_v42 = vpop.xlane.xlu0 %1131 }
 0x279   : > { %v1134_v54 = vpop.xlane.xlu1 %1133 }
 0x27d   : > { %v1166_v36 = vpop.xlane.xlu1 %1165 }
 0x286   : > { %v4338_v32 = vpop.f32.mrf.mxu1 }
 0x287   : > { %v5360_v6 = vadd.f32 %v4338_v32, %v5353_v46 }
 0x288   : > { %v4314_v34 = vpop.f32.mrf.mxu0  ;;  %v972_v20 = vpop.f32.mrf.mxu1 }
 0x289   : > { %v898_v60 = vadd.f32 %v4314_v34, %v5353_v46  ;;  %v5363_v11 = vmul.f32 %v1158_v1, %v5360_v6  ;;  %v5366_v44 = vadd.f32 %v5353_v46, %v972_v20 }
 0x28a   : > { %v892_v16 = vpop.f32.mrf.mxu0 }
 0x28b   : > { %v893_v38 = vadd.f32 %v5353_v46, %v892_v16  ;;  %1446 = vrot.lane.b32.xlu1 %v898_v60, %s4748_s23  ;;  %v5368_v9 = vmul.f32 %v1126_v21, %v898_v60  ;;  %v1271_v31 = vsel %vm1219_vm0, %v5363_v11, -inf  ;;  %v5375_v62 = vmul.f32 %v1156_v14, %v5366_v44  ;;  %v1164_v21 = vpop.xlane.xlu0 %1163 }
 0x28d   : > { %1444 = vrot.lane.b32.xlu0 %v893_v38, %s4748_s23  ;;  %v5370_v56 = vmul.f32 %v1124_v58, %v893_v38  ;;  %v1223_v7 = vsel %vm1219_vm0, %v5368_v9, -inf  ;;  %v1268_v17 = vsel %vm1219_vm0, %v5375_v62, -inf }
 0x28f   : > { %v1220_v61 = vsel %vm1219_vm0, %v5370_v56, -inf }
 0x2a1   : > { %v4341_v5 = vpop.f32.mrf.mxu1 }
 0x2a2   : > { %v5388_v12 = vadd.f32 %v4341_v5, %v5353_v46 }
 0x2a3   : > { %v982_v24 = vpop.f32.mrf.mxu1 }
 0x2a4   : > { %v4317_v2 = vpop.f32.mrf.mxu0  ;;  %v5391_v10 = vmul.f32 %v1162_v50, %v5388_v12  ;;  %v5394_v13 = vadd.f32 %v5353_v46, %v982_v24 }
 0x2a5   : > { %v908_v40 = vadd.f32 %v4317_v2, %v5353_v46 }
 0x2a6   : > { %v902_v28 = vpop.f32.mrf.mxu0  ;;  %v1277_v15 = vsel %vm1219_vm0, %v5391_v10, -inf  ;;  %v5405_v18 = vmul.f32 %v1160_v59, %v5394_v13 }
 0x2a7   : > { %v903_v48 = vadd.f32 %v5353_v46, %v902_v28  ;;  %v5396_v63 = vmul.f32 %v1130_v25, %v908_v40 }
 0x2a8   : > { %v1274_v30 = vsel %vm1219_vm0, %v5405_v18, -inf }
 0x2a9   : > { %v5400_v57 = vmul.f32 %v1128_v22, %v903_v48  ;;  %v1229_v26 = vsel %vm1219_vm0, %v5396_v63, -inf  ;;  %v4320_v29 = vpop.f32.mrf.mxu0 }
 0x2aa   : > { %v918_v4 = vadd.f32 %v4320_v29, %v5353_v46 }
 0x2ab   : > { %v1226_v0 = vsel %vm1219_vm0, %v5400_v57, -inf  ;;  %v912_v19 = vpop.f32.mrf.mxu0 }
 0x2ac   : > { %1272 = vmax.xlane.f32.xlu0 %v1271_v31  ;;  %v913_v52 = vadd.f32 %v5353_v46, %v912_v19  ;;  %v5421_v34 = vmul.f32 %v1134_v54, %v918_v4 }
 0x2ae   : > { %v4344_v23 = vpop.f32.mrf.mxu1  ;;  %v5426_v16 = vmul.f32 %v1132_v42, %v913_v52  ;;  %v1235_v1 = vsel %vm1219_vm0, %v5421_v34, -inf }
 0x2af   : > { %1224 = vmax.xlane.f32.xlu1 %v1223_v7  ;;  %v5416_v27 = vadd.f32 %v4344_v23, %v5353_v46 }
 0x2b0   : > { %1221 = vmax.xlane.f32.xlu0 %v1220_v61  ;;  %v992_v55 = vpop.f32.mrf.mxu1  ;;  %v1232_v58 = vsel %vm1219_vm0, %v5426_v16, -inf }
 0x2b1   : > { %v5419_v8 = vmul.f32 %v1166_v36, %v5416_v27  ;;  %v5424_v60 = vadd.f32 %v5353_v46, %v992_v55  ;;  %v4323_v31 = vpop.f32.mrf.mxu0 }
 0x2b2   : > { %v928_v7 = vadd.f32 %v4323_v31, %v5353_v46 }
 0x2b3   : > { %1269 = vmax.xlane.f32.xlu1 %v1268_v17  ;;  %v1283_v38 = vsel %vm1219_vm0, %v5419_v8, -inf  ;;  %v5431_v32 = vmul.f32 %v1164_v21, %v5424_v60  ;;  %v922_v14 = vpop.f32.mrf.mxu0  ;;  %v1138_v17 = vpop.xlane.xlu1 %1137 }
 0x2b4   : > { %v923_v61 = vadd.f32 %v5353_v46, %v922_v14  ;;  %v5449_v50 = vmul.f32 %v1138_v17, %v928_v7 }
 0x2b5   : > { %v1280_v20 = vsel %vm1219_vm0, %v5431_v32, -inf  ;;  %v4347_v2 = vpop.f32.mrf.mxu1 }
 0x2b6   : > { %v5444_v28 = vadd.f32 %v4347_v2, %v5353_v46 }
 0x2b7   : > { %v1002_v5 = vpop.f32.mrf.mxu1 }
 0x2b8   : > { %v5452_v24 = vadd.f32 %v5353_v46, %v1002_v5 }
 0x2ba   : > { %v4326_v19 = vpop.f32.mrf.mxu0 }
 0x2c4   : > { %1450 = vrot.lane.b32.xlu1 %v908_v40, %s4748_s23  ;;  %v1170_v40 = vpop.xlane.xlu1 %1169 }
 0x2c5   : > { %v5447_v25 = vmul.f32 %v1170_v40, %v5444_v28 }
 0x2c6   : > { %1448 = vrot.lane.b32.xlu0 %v903_v48, %s4748_s23  ;;  %v1136_v48 = vpop.xlane.xlu0 %1135 }
 0x2c7   : > { %v1289_v22 = vsel %vm1219_vm0, %v5447_v25, -inf }
 0x2c8   : > { %v1142_v42 = vpop.xlane.xlu1 %1141 }
 0x2ca   : > { %v1168_v59 = vpop.xlane.xlu0 %1167 }
 0x2ce   : > { %v1140_v23 = vpop.xlane.xlu0 %1139 }
 0x2d2   : > { %v1172_v14 = vpop.xlane.xlu0 %1171 }
 0x2e5   : > { %1278 = vmax.xlane.f32.xlu0 %v1277_v15  ;;  %v5456_v15 = vmul.f32 %v1136_v48, %v923_v61 }
 0x2e8   : > { %1230 = vmax.xlane.f32.xlu1 %v1229_v26  ;;  %v1241_v26 = vsel %vm1219_vm0, %v5449_v50, -inf }
 0x2e9   : > { %1227 = vmax.xlane.f32.xlu0 %v1226_v0  ;;  %v5461_v0 = vmul.f32 %v1168_v59, %v5452_v24 }
 0x2eb   : > { %v1286_v29 = vsel %vm1219_vm0, %v5461_v0, -inf }
 0x2ec   : > { %1275 = vmax.xlane.f32.xlu1 %v1274_v30  ;;  %v1238_v30 = vsel %vm1219_vm0, %v5456_v15, -inf }
 0x2fd   : > { %1454 = vrot.lane.b32.xlu1 %v918_v4, %s4748_s23  ;;  %v932_v4 = vpop.f32.mrf.mxu0 }
 0x2fe   : > { %v933_v54 = vadd.f32 %v5353_v46, %v932_v4 }
 0x2ff   : > { %1452 = vrot.lane.b32.xlu0 %v913_v52, %s4748_s23  ;;  %v938_v52 = vadd.f32 %v4326_v19, %v5353_v46 }
 0x300   : > { %v5471_v36 = vmul.f32 %v1140_v23, %v933_v54 }
 0x301   : > { %v5473_v55 = vmul.f32 %v1142_v42, %v938_v52 }
 0x303   : > { %v1247_v21 = vsel %vm1219_vm0, %v5473_v55, -inf }
 0x31e   : > { %1284 = vmax.xlane.f32.xlu0 %v1283_v38  ;;  %v1244_v38 = vsel %vm1219_vm0, %v5471_v36, -inf }
 0x321   : > { %1236 = vmax.xlane.f32.xlu1 %v1235_v1  ;;  %v4329_v1 = vpop.f32.mrf.mxu0 }
 0x322   : > { %1233 = vmax.xlane.f32.xlu0 %v1232_v58 }
 0x323   : > { %v942_v58 = vpop.f32.mrf.mxu0 }
 0x324   : > { %v943_v31 = vadd.f32 %v5353_v46, %v942_v58 }
 0x325   : > { %1281 = vmax.xlane.f32.xlu1 %v1280_v20  ;;  %v948_v20 = vadd.f32 %v4329_v1, %v5353_v46 }
 0x336   : > { %1458 = vrot.lane.b32.xlu1 %v928_v7, %s4748_s23  ;;  %v1174_v7 = vpop.xlane.xlu1 %1173 }
 0x338   : > { %1456 = vrot.lane.b32.xlu0 %v923_v61, %s4748_s23  ;;  %v1144_v61 = vpop.xlane.xlu0 %1143 }
 0x339   : > { %v5483_v17 = vmul.f32 %v1144_v61, %v943_v31 }
 0x33a   : > { %v1146_v2 = vpop.xlane.xlu1 %1145 }
 0x33b   : > { %v5485_v40 = vmul.f32 %v1146_v2, %v948_v20  ;;  %v1250_v48 = vsel %vm1219_vm0, %v5483_v17, -inf }
 0x33c   : > { %v1176_v4 = vpop.xlane.xlu0 %1175 }
 0x33d   : > { %v1253_v5 = vsel %vm1219_vm0, %v5485_v40, -inf }
 0x357   : > { %1290 = vmax.xlane.f32.xlu0 %v1289_v22  ;;  %v4332_v22 = vpop.f32.mrf.mxu0 }
 0x359   : > { %v952_v59 = vpop.f32.mrf.mxu0 }
 0x35a   : > { %1242 = vmax.xlane.f32.xlu1 %v1241_v26  ;;  %v958_v26 = vadd.f32 %v4332_v22, %v5353_v46 }
 0x35b   : > { %1239 = vmax.xlane.f32.xlu0 %v1238_v30  ;;  %v953_v30 = vadd.f32 %v5353_v46, %v952_v59  ;;  %v4335_v23 = vpop.f32.mrf.mxu0 }
 0x35c   : > { %v968_v58 = vadd.f32 %v4335_v23, %v5353_v46 }
 0x35e   : > { %1287 = vmax.xlane.f32.xlu1 %v1286_v29  ;;  %v1178_v29 = vpop.xlane.xlu1 %1177 }
 0x362   : > { %v1150_v19 = vpop.xlane.xlu1 %1149 }
 0x363   : > { %v5504_v61 = vmul.f32 %v1150_v19, %v958_v26 }
 0x36f   : > { %1462 = vrot.lane.b32.xlu1 %v938_v52, %s4748_s23  ;;  %v5495_v52 = vpop.xlane.xlu1 %1181 }
 0x371   : > { %1460 = vrot.lane.b32.xlu0 %v933_v54, %s4748_s23  ;;  %v1148_v54 = vpop.xlane.xlu0 %1147 }
 0x372   : > { %v5501_v1 = vmul.f32 %v1148_v54, %v953_v30 }
 0x373   : > { %v5497_v42 = vpop.xlane.xlu1 %1183 }
 0x374   : > { %v1256_v59 = vsel %vm1219_vm0, %v5501_v1, -inf }
 0x390   : > { %1245 = vmax.xlane.f32.xlu0 %v1244_v38  ;;  %v5499_v38 = vpop.xlane.xlu0 %1179 }
 0x393   : > { %1248 = vmax.xlane.f32.xlu1 %v1247_v21  ;;  %v4350_v21 = vpop.f32.mrf.mxu1 }
 0x3a4   : > { %1466 = vrot.lane.b32.xlu1 %v948_v20, %s4748_s23  ;;  %v962_v20 = vpop.f32.mrf.mxu0 }
 0x3a5   : > { %v963_v2 = vadd.f32 %v5353_v46, %v962_v20 }
 0x3a6   : > { %1464 = vrot.lane.b32.xlu0 %v943_v31, %s4748_s23  ;;  %v1154_v31 = vpop.xlane.xlu1 %1153 }
 0x3a7   : > { %v5510_v22 = vmul.f32 %v1154_v31, %v968_v58 }
 0x3c5   : > { %1251 = vmax.xlane.f32.xlu0 %v1250_v48  ;;  %v5508_v48 = vadd.f32 %v4350_v21, %v5353_v46  ;;  %v1265_v21 = vsel %vm1219_vm0, %v5510_v22, -inf }
 0x3c7   : > { %v5522_v23 = vmul.f32 %v1174_v7, %v5508_v48 }
 0x3c8   : > { %1254 = vmax.xlane.f32.xlu1 %v1253_v5  ;;  %v1012_v5 = vpop.f32.mrf.mxu1 }
 0x3c9   : > { %v5515_v54 = vadd.f32 %v5353_v46, %v1012_v5  ;;  %6958 = vst [vmem:[#allocation35_spill] sm:$0xff] %v5522_v23  ;;  %v1295_v5 = vsel %vm1219_vm0, %v5522_v23, -inf }
 0x3cb   : > { %v5527_v20 = vmul.f32 %v1172_v14, %v5515_v54 }
 0x3cd   : > { %6959 = vst [vmem:[#allocation36_spill] sm:$0xff] %v5527_v20  ;;  %v1292_v7 = vsel %vm1219_vm0, %v5527_v20, -inf }
 0x3d9   : > { %1470 = vrot.lane.b32.xlu1 %v958_v26, %s4748_s23  ;;  %v1259_v26 = vsel %vm1219_vm0, %v5504_v61, -inf }
 0x3db   : > { %1468 = vrot.lane.b32.xlu0 %v953_v30, %s4748_s23  ;;  %v1152_v30 = vpop.xlane.xlu0 %1151 }
 0x3dc   : > { %v5519_v19 = vmul.f32 %v1152_v30, %v963_v2 }
 0x3de   : > { %v1262_v31 = vsel %vm1219_vm0, %v5519_v19, -inf }
 0x3df   : > { %v5537_v30 = vpop.xlane.xlu0 %1185 }
 0x3fa   : > { %1257 = vmax.xlane.f32.xlu0 %v1256_v59  ;;  %v4353_v59 = vpop.f32.mrf.mxu1 }
 0x3fc   : > { %v1022_v14 = vpop.f32.mrf.mxu1 }
 0x3fd   : > { %1260 = vmax.xlane.f32.xlu1 %v1259_v26  ;;  %v5540_v26 = vadd.f32 %v5353_v46, %v1022_v14 }
 0x3fe   : > { %1266 = vmax.xlane.f32.xlu0 %v1265_v21  ;;  %v1445_v21 = vpop.permute.xlu0 %1444 }
 0x3ff   : > { %v5548_v53 = vmul.f32 %v1176_v4, %v5540_v26 }
 0x401   : > { %1263 = vmax.xlane.f32.xlu1 %v1262_v31  ;;  %v5543_v31 = vadd.f32 %v4353_v59, %v5353_v46  ;;  %6960 = vst [vmem:[#allocation37_spill] sm:$0xff] %v5548_v53 }
 0x402   : > { %1296 = vmax.xlane.f32.xlu0 %v1295_v5  ;;  %v5545_v5 = vpop.xlane.xlu0 %1272 }
 0x405   : > { %1293 = vmax.xlane.f32.xlu1 %v1292_v7  ;;  %v1447_v7 = vpop.permute.xlu1 %1446 }
 0x406   : > { %v1222_v51 = vpop.xlane.xlu0 %1221 }
 0x407   : > { %v1316_v37 = vsub.f32 %v5370_v56, %v1222_v51 }
 0x409   : > { %v1225_v59 = vpop.xlane.xlu1 %1224  ;;  %v1348_v35 = vmul.f32 1.442695, %v1316_v37 }
 0x40a   : > { %v5557_v49 = vpop.permute.xlu0 %1448  ;;  %v1317_v41 = vsub.f32 %v5368_v9, %v1225_v59 }
 0x40d   : > { %v5559_v47 = vpop.xlane.xlu1 %1269 }
 0x40e   : > { %v5561_v4 = vpop.xlane.xlu0 %1278 }
 0x411   : > { %v5563_v45 = vpop.permute.xlu1 %1450 }
 0x415   : > { %v1231_v43 = vpop.xlane.xlu1 %1230 }
 0x416   : > { %1474 = vrot.lane.b32.xlu1 %v968_v58, %s4748_s23  ;;  %v5551_v58 = vmul.f32 %v1178_v29, %v5543_v31  ;;  %v1228_v29 = vpop.xlane.xlu0 %1227  ;;  %v1319_v23 = vsub.f32 %v5396_v63, %v1231_v43 }
 0x418   : > { %1472 = vrot.lane.b32.xlu0 %v963_v2, %s4748_s23  ;;  %6961 = vst [vmem:[#allocation38_spill] sm:$0xff] %v5551_v58  ;;  %v1298_v2 = vsel %vm1219_vm0, %v5548_v53, -inf  ;;  %v1301_v14 = vsel %vm1219_vm0, %v5551_v58, -inf  ;;  %v1350_v58 = vmul.f32 1.442695, %v1317_v41 }
 0x419   : > { %v1354_v51 = vmul.f32 1.442695, %v1319_v23 }
 0x41a   : > { %4546 = vpow2.f32 %v1350_v58 }
 0x41b   : > { %4548 = vpow2.f32 %v1348_v35 }
 0x437   : > { %1299 = vmax.xlane.f32.xlu0 %v1298_v2  ;;  %v5569_v2 = vpop.permute.xlu0 %1452 }
 0x43a   : > { %1302 = vmax.xlane.f32.xlu1 %v1301_v14  ;;  %v5571_v14 = vpop.xlane.xlu1 %1275 }
 0x43b   : > { %v5574_v39 = vpop.xlane.xlu0 %1284 }
 0x43e   : > { %v5577_v53 = vpop.permute.xlu1 %1454 }
 0x43f   : > { %v1234_v33 = vpop.xlane.xlu0 %1233 }
 0x440   : > { %v1320_v9 = vsub.f32 %v5426_v16, %v1234_v33 }
 0x442   : > { %v1356_v56 = vmul.f32 1.442695, %v1320_v9 }
 0x443   : > { %v5581_v20 = vpop.permute.xlu0 %1456 }
 0x447   : > { %v5587_v41 = vpop.xlane.xlu0 %1290 }
 0x44b   : > { %1478 = vrot.lane.b32.xlu1 %v5360_v6, %s4748_s23  ;;  %v1318_v6 = vsub.f32 %v5400_v57, %v1228_v29  ;;  %v4547_v57 = vpop.eup %4546  ;;  %v1240_v63 = vpop.xlane.xlu0 %1239 }
 0x44c   : > { %v4549_v43 = vpop.eup %4548  ;;  %v1322_v33 = vsub.f32 %v5456_v15, %v1240_v63  ;;  %v1541_v23 = vmul.f32 %v4547_v57, %v1447_v7 }
 0x44d   : > { %1476 = vrot.lane.b32.xlu0 %v5366_v44, %s4748_s23  ;;  %v1237_v44 = vpop.xlane.xlu1 %1236  ;;  %v1352_v3 = vmul.f32 1.442695, %v1318_v6  ;;  %v1668_v16 = vsel %vm1219_vm0, %v4549_v43, 0.0  ;;  %v1540_v6 = vmul.f32 %v4549_v43, %v1445_v21 }
 0x44e   : > { %v1321_v37 = vsub.f32 %v5421_v34, %v1237_v44  ;;  %v1360_v44 = vmul.f32 1.442695, %v1322_v33  ;;  %v1575_v9 = vsel %vm1219_vm0, %v1541_v23, 0.0 }
 0x44f   : > { %4550 = vpow2.f32 %v1352_v3  ;;  %v1671_v3 = vsel %vm1219_vm0, %v4547_v57, 0.0 }
 0x450   : > { %4552 = vpow2.f32 %v1354_v51  ;;  %v1358_v35 = vmul.f32 1.442695, %v1321_v37  ;;  %v4356_v37 = vpop.f32.mrf.mxu1 }
 0x451   : > { %v5584_v59 = vpop.xlane.xlu1 %1281  ;;  %4554 = vpow2.f32 %v1356_v56 }
 0x452   : > { %4556 = vpow2.f32 %v1358_v35  ;;  %v1572_v35 = vsel %vm1219_vm0, %v1540_v6, 0.0 }
 0x453   : > { %4558 = vpow2.f32 %v1360_v44 }
 0x455   : > { %v5589_v58 = vpop.permute.xlu1 %1458 }
 0x459   : > { %v1243_v29 = vpop.xlane.xlu1 %1242 }
 0x45a   : > { %v1323_v34 = vsub.f32 %v5449_v50, %v1243_v29  ;;  %v1032_v50 = vpop.f32.mrf.mxu1 }
 0x45b   : > { %v5600_v43 = vadd.f32 %v5353_v46, %v1032_v50 }
 0x45c   : > { %v4551_v51 = vpop.eup %4550  ;;  %v1362_v56 = vmul.f32 1.442695, %v1323_v34 }
 0x45d   : > { %v4553_v15 = vpop.eup %4552  ;;  %v1674_v7 = vsel %vm1219_vm0, %v4551_v51, 0.0  ;;  %v1542_v34 = vmul.f32 %v4551_v51, %v5557_v49 }
 0x45e   : > { %v4555_v63 = vpop.eup %4554  ;;  %4560 = vpow2.f32 %v1362_v56  ;;  %v1677_v21 = vsel %vm1219_vm0, %v4553_v15, 0.0  ;;  %v1543_v33 = vmul.f32 %v4553_v15, %v5563_v45 }
 0x45f   : > { %v4557_v57 = vpop.eup %4556  ;;  %v1680_v29 = vsel %vm1219_vm0, %v4555_v63, 0.0  ;;  %v1578_v45 = vsel %vm1219_vm0, %v1542_v34, 0.0 }
 0x460   : > { %v1683_v23 = vsel %vm1219_vm0, %v4557_v57, 0.0  ;;  %v1581_v6 = vsel %vm1219_vm0, %v1543_v33, 0.0 }
 0x46c   : > { %1669 = vadd.xlane.f32.xlu0 %v1668_v16  ;;  %v5605_v16 = vadd.f32 %v4356_v37, %v5353_v46  ;;  %v4559_v37 = vpop.eup %4558 }
 0x46d   : > { %v1686_v51 = vsel %vm1219_vm0, %v4559_v37, 0.0 }
 0x46e   : > { %v5616_v44 = vmul.f32 %v5495_v52, %v5605_v16  ;;  %v5629_v52 = vpop.xlane.xlu1 %1287 }
 0x46f   : > { %1672 = vadd.xlane.f32.xlu1 %v1671_v3  ;;  %v5611_v3 = vmul.f32 %v5499_v38, %v5600_v43  ;;  %v4561_v38 = vpop.eup %4560 }
 0x470   : > { %1576 = vadd.xlane.f32.xlu0 %v1575_v9  ;;  %v1307_v49 = vsel %vm1219_vm0, %v5616_v44, -inf  ;;  %v1689_v56 = vsel %vm1219_vm0, %v4561_v38, 0.0 }
 0x471   : > { %v1304_v9 = vsel %vm1219_vm0, %v5611_v3, -inf }
 0x472   : > { %v5633_v15 = vpop.permute.xlu1 %1462 }
 0x473   : > { %1573 = vadd.xlane.f32.xlu1 %v1572_v35  ;;  %v5631_v35 = vpop.permute.xlu0 %1460 }
 0x474   : > { %1675 = vadd.xlane.f32.xlu0 %v1674_v7 }
 0x477   : > { %1678 = vadd.xlane.f32.xlu1 %v1677_v21  ;;  %v1246_v7 = vpop.xlane.xlu0 %1245  ;;  %v1249_v21 = vpop.xlane.xlu1 %1248 }
 0x478   : > { %1681 = vadd.xlane.f32.xlu0 %v1680_v29  ;;  %v1324_v50 = vsub.f32 %v5471_v36, %v1246_v7  ;;  %v1325_v29 = vsub.f32 %v5473_v55, %v1249_v21 }
 0x47a   : > { %v1364_v33 = vmul.f32 1.442695, %v1324_v50  ;;  %v1366_v34 = vmul.f32 1.442695, %v1325_v29 }
 0x47b   : > { %1684 = vadd.xlane.f32.xlu1 %v1683_v23  ;;  %v4359_v23 = vpop.f32.mrf.mxu1 }
 0x47c   : > { %1582 = vadd.xlane.f32.xlu0 %v1581_v6  ;;  %4562 = vpow2.f32 %v1364_v33  ;;  %v1545_v6 = vmul.f32 %v4557_v57, %v5577_v53 }
 0x47d   : > { %4564 = vpow2.f32 %v1366_v34  ;;  %v1547_v34 = vmul.f32 %v4561_v38, %v5589_v58 }
 0x47e   : > { %v1587_v36 = vsel %vm1219_vm0, %v1545_v6, 0.0 }
 0x47f   : > { %1579 = vadd.xlane.f32.xlu1 %v1578_v45  ;;  %v5642_v45 = vadd.f32 %v4359_v23, %v5353_v46 }
 0x480   : > { %1305 = vmax.xlane.f32.xlu0 %v1304_v9  ;;  %v1544_v9 = vmul.f32 %v4555_v63, %v5569_v2 }
 0x483   : > { %1308 = vmax.xlane.f32.xlu1 %v1307_v49  ;;  %v5652_v49 = vmul.f32 %v5537_v30, %v5642_v45  ;;  %v1465_v30 = vpop.permute.xlu0 %1464 }
 0x484   : > { %1687 = vadd.xlane.f32.xlu0 %v1686_v51  ;;  %v1584_v51 = vsel %vm1219_vm0, %v1544_v9, 0.0 }
 0x485   : > { %v1313_v2 = vsel %vm1219_vm0, %v5652_v49, -inf }
 0x487   : > { %1690 = vadd.xlane.f32.xlu1 %v1689_v56  ;;  %v1467_v56 = vpop.permute.xlu1 %1466  ;;  %v1252_v7 = vpop.xlane.xlu0 %1251 }
 0x488   : > { %v1326_v50 = vsub.f32 %v5483_v17, %v1252_v7 }
 0x48a   : > { %v1368_v33 = vmul.f32 1.442695, %v1326_v50 }
 0x48b   : > { %v1255_v21 = vpop.xlane.xlu1 %1254 }
 0x48c   : > { %v1327_v29 = vsub.f32 %v5485_v40, %v1255_v21  ;;  %4566 = vpow2.f32 %v1368_v33 }
 0x48e   : > { %v1370_v23 = vmul.f32 1.442695, %v1327_v29 }
 0x48f   : > { %v1471_v58 = vpop.permute.xlu1 %1470 }
 0x490   : > { %4568 = vpow2.f32 %v1370_v23 }
 0x498   : > { %1482 = vrot.lane.b32.xlu1 %v5388_v12, %s4748_s23  ;;  %v1042_v12 = vpop.f32.mrf.mxu1 }
 0x49a   : > { %1480 = vrot.lane.b32.xlu0 %v5394_v13, %s4748_s23  ;;  %v5638_v13 = vadd.f32 %v5353_v46, %v1042_v12  ;;  %v4563_v46 = vpop.eup %4562  ;;  %v1546_v12 = vmul.f32 %v4559_v37, %v5581_v20  ;;  %v1469_v20 = vpop.permute.xlu0 %1468 }
 0x49b   : > { %v4565_v63 = vpop.eup %4564 }
 0x49c   : > { %v5648_v55 = vmul.f32 %v5497_v42, %v5638_v13  ;;  %v1692_v42 = vsel %vm1219_vm0, %v4563_v46, 0.0  ;;  %v1695_v57 = vsel %vm1219_vm0, %v4565_v63, 0.0  ;;  %v4567_v6 = vpop.eup %4566 }
 0x49d   : > { %v4569_v9 = vpop.eup %4568  ;;  %v1698_v17 = vsel %vm1219_vm0, %v4567_v6, 0.0  ;;  %v1550_v23 = vmul.f32 %v4567_v6, %v1465_v30  ;;  %v1333_v30 = vsub.f32 %v5363_v11, %v5545_v5 }
 0x49e   : > { %v1310_v53 = vsel %vm1219_vm0, %v5648_v55, -inf  ;;  %v1701_v40 = vsel %vm1219_vm0, %v4569_v9, 0.0  ;;  %v1258_v37 = vpop.xlane.xlu0 %1257  ;;  %v1551_v33 = vmul.f32 %v4569_v9, %v1467_v56 }
 0x49f   : > { %v1328_v38 = vsub.f32 %v5501_v1, %v1258_v37  ;;  %v1382_v6 = vmul.f32 1.442695, %v1333_v30  ;;  %v1334_v37 = vsub.f32 %v5405_v18, %v5571_v14 }
 0x4b9   : > { %1588 = vadd.xlane.f32.xlu0 %v1587_v36  ;;  %v1261_v36 = vpop.xlane.xlu1 %1260 }
 0x4bc   : > { %1585 = vadd.xlane.f32.xlu1 %v1584_v51  ;;  %v1329_v51 = vsub.f32 %v5504_v61, %v1261_v36  ;;  %v1335_v36 = vsub.f32 %v5391_v10, %v5561_v4 }
 0x4bd   : > { %1311 = vmax.xlane.f32.xlu0 %v1310_v53  ;;  %v1372_v53 = vmul.f32 1.442695, %v1328_v38 }
 0x4bf   : > { %4570 = vpow2.f32 %v1372_v53 }
 0x4c0   : > { %1314 = vmax.xlane.f32.xlu1 %v1313_v2  ;;  %v1374_v2 = vmul.f32 1.442695, %v1329_v51 }
 0x4c1   : > { %1693 = vadd.xlane.f32.xlu0 %v1692_v42  ;;  %v1549_v42 = vmul.f32 %v4565_v63, %v5633_v15  ;;  %v1267_v15 = vpop.xlane.xlu0 %1266 }
 0x4c2   : > { %4572 = vpow2.f32 %v1374_v2  ;;  %v1331_v63 = vsub.f32 %v5510_v22, %v1267_v15  ;;  %v1332_v22 = vsub.f32 %v5375_v62, %v5559_v47  ;;  %v1386_v2 = vmul.f32 1.442695, %v1335_v36 }
 0x4c4   : > { %1696 = vadd.xlane.f32.xlu1 %v1695_v57  ;;  %v1548_v57 = vmul.f32 %v4563_v46, %v5631_v35  ;;  %v1264_v35 = vpop.xlane.xlu1 %1263  ;;  %v1378_v29 = vmul.f32 1.442695, %v1331_v63  ;;  %v1380_v56 = vmul.f32 1.442695, %v1332_v22  ;;  %v1337_v22 = vsub.f32 %v5419_v8, %v5574_v39 }
 0x4c5   : > { %v1330_v46 = vsub.f32 %v5519_v19, %v1264_v35  ;;  %v5715_v62 = vpop.xlane.xlu0 %1296 }
 0x4c7   : > { %v1376_v21 = vmul.f32 1.442695, %v1330_v46 }
 0x4c8   : > { %v5719_v5 = vpop.xlane.xlu1 %1293 }
 0x4c9   : > { %4574 = vpow2.f32 %v1376_v21 }
 0x4ca   : > { %4576 = vpow2.f32 %v1378_v29 }
 0x4cb   : > { %4578 = vpow2.f32 %v1380_v56  ;;  %v1390_v56 = vmul.f32 1.442695, %v1337_v22 }
 0x4cc   : > { %v4571_v7 = vpop.eup %4570  ;;  %4580 = vpow2.f32 %v1382_v6 }
 0x4cd   : > { %v1704_v1 = vsel %vm1219_vm0, %v4571_v7, 0.0  ;;  %v1552_v9 = vmul.f32 %v4571_v7, %v1469_v20  ;;  %v1473_v20 = vpop.permute.xlu0 %1472 }
 0x4cf   : > { %v4573_v50 = vpop.eup %4572 }
 0x4d0   : > { %v1707_v61 = vsel %vm1219_vm0, %v4573_v50, 0.0 }
 0x4d1   : > { %v5723_v38 = vpop.xlane.xlu0 %1299 }
 0x4d5   : > { %1486 = vrot.lane.b32.xlu1 %v5416_v27, %s4748_s23  ;;  %v1593_v27 = vsel %vm1219_vm0, %v1547_v34, 0.0  ;;  %v1605_v34 = vsel %vm1219_vm0, %v1551_v33, 0.0  ;;  %v1477_v53 = vpop.permute.xlu0 %1476 }
 0x4d7   : > { %1484 = vrot.lane.b32.xlu0 %v5424_v60, %s4748_s23  ;;  %v1590_v60 = vsel %vm1219_vm0, %v1546_v12, 0.0  ;;  %v4575_v12 = vpop.eup %4574 }
 0x4f6   : > { %1594 = vadd.xlane.f32.xlu0 %v1593_v27  ;;  %v4577_v27 = vpop.eup %4576 }
 0x4f7   : > { %v1713_v19 = vsel %vm1219_vm0, %v4577_v27, 0.0 }
 0x4f9   : > { %1591 = vadd.xlane.f32.xlu1 %v1590_v60  ;;  %v1553_v60 = vmul.f32 %v4573_v50, %v1471_v58  ;;  %v1475_v58 = vpop.permute.xlu1 %1474 }
 0x4fa   : > { %1699 = vadd.xlane.f32.xlu0 %v1698_v17 }
 0x4fb   : > { %v1611_v17 = vsel %vm1219_vm0, %v1553_v60, 0.0 }
 0x4fd   : > { %1702 = vadd.xlane.f32.xlu1 %v1701_v40  ;;  %v5704_v40 = vpop.eup %4578  ;;  %v5727_v51 = vpop.xlane.xlu1 %1302 }
 0x4fe   : > { %v1716_v47 = vsel %vm1219_vm0, %v5704_v40, 0.0 }
 0x50e   : > { %1490 = vrot.lane.b32.xlu1 %v5444_v28, %s4748_s23  ;;  %v1599_v28 = vsel %vm1219_vm0, %v1549_v42, 0.0  ;;  %v1479_v42 = vpop.permute.xlu1 %1478 }
 0x510   : > { %1488 = vrot.lane.b32.xlu0 %v5452_v24, %s4748_s23  ;;  %v1596_v24 = vsel %vm1219_vm0, %v1548_v57, 0.0 }
 0x512   : > { %v1673_v57 = vpop.xlane.xlu1 %1672 }
 0x516   : > { %v5731_v18 = vpop.xlane.xlu1 %1573 }
 0x51a   : > { %v1679_v35 = vpop.xlane.xlu1 %1678 }
 0x51e   : > { %v5745_v63 = vpop.xlane.xlu1 %1684 }
 0x522   : > { %v5749_v29 = vpop.xlane.xlu1 %1579 }
 0x52f   : > { %1600 = vadd.xlane.f32.xlu0 %v1599_v28  ;;  %v1555_v28 = vmul.f32 %v4577_v27, %v1475_v58 }
 0x531   : > { %v1617_v14 = vsel %vm1219_vm0, %v1555_v28, 0.0 }
 0x532   : > { %1597 = vadd.xlane.f32.xlu1 %v1596_v24  ;;  %v1554_v24 = vmul.f32 %v4575_v12, %v1473_v20 }
 0x533   : > { %1705 = vadd.xlane.f32.xlu0 %v1704_v1 }
 0x534   : > { %v1614_v4 = vsel %vm1219_vm0, %v1554_v24, 0.0 }
 0x536   : > { %1708 = vadd.xlane.f32.xlu1 %v1707_v61 }
 0x547   : > { %1494 = vrot.lane.b32.xlu1 %v5508_v48, %s4748_s23  ;;  %v1602_v48 = vsel %vm1219_vm0, %v1550_v23, 0.0  ;;  %v5753_v23 = vpop.xlane.xlu1 %1308 }
 0x549   : > { %1492 = vrot.lane.b32.xlu0 %v5515_v54, %s4748_s23  ;;  %v1710_v54 = vsel %vm1219_vm0, %v4575_v12, 0.0 }
 0x54b   : > { %v5761_v12 = vpop.xlane.xlu1 %1690 }
 0x54f   : > { %v1483_v27 = vpop.permute.xlu1 %1482 }
 0x553   : > { %v5769_v30 = vpop.xlane.xlu1 %1585 }
 0x557   : > { %v5775_v60 = vpop.xlane.xlu1 %1314 }
 0x568   : > { %1606 = vadd.xlane.f32.xlu0 %v1605_v34 }
 0x56b   : > { %1603 = vadd.xlane.f32.xlu1 %v1602_v48 }
 0x56c   : > { %1711 = vadd.xlane.f32.xlu0 %v1710_v54 }
 0x56f   : > { %1714 = vadd.xlane.f32.xlu1 %v1713_v19  ;;  %v1336_v19 = vsub.f32 %v5431_v32, %v5584_v59  ;;  %v1339_v32 = vsub.f32 %v5447_v25, %v5587_v41  ;;  %v6963_v25 = vld [vmem:[#allocation36_spill] sm:$0xff] }
 0x570   : > { %v1340_v41 = vsub.f32 %v6963_v25, %v5719_v5  ;;  %v6968_v25 = vld [vmem:[#allocation38_spill] sm:$0xff] }
 0x571   : > { %v1394_v8 = vmul.f32 1.442695, %v1339_v32  ;;  %v6966_v32 = vld [vmem:[#allocation37_spill] sm:$0xff] }
 0x580   : > { %1498 = vrot.lane.b32.xlu1 %v5543_v31, %s4748_s23  ;;  %v1608_v31 = vsel %vm1219_vm0, %v1552_v9, 0.0  ;;  %v5781_v9 = vpop.xlane.xlu1 %1696 }
 0x582   : > { %1496 = vrot.lane.b32.xlu0 %v5540_v26, %s4748_s23  ;;  %v5707_v26 = vpop.eup %4580 }
 0x583   : > { %v1719_v11 = vsel %vm1219_vm0, %v5707_v26, 0.0 }
 0x584   : > { %v1487_v20 = vpop.permute.xlu1 %1486 }
 0x588   : > { %v5801_v24 = vpop.xlane.xlu1 %1591 }
 0x5a1   : > { %1612 = vadd.xlane.f32.xlu0 %v1611_v17  ;;  %v1557_v17 = vmul.f32 %v5707_v26, %v1479_v42 }
 0x5a3   : > { %v1623_v58 = vsel %vm1219_vm0, %v1557_v17, 0.0 }
 0x5a4   : > { %1609 = vadd.xlane.f32.xlu1 %v1608_v31 }
 0x5a5   : > { %1717 = vadd.xlane.f32.xlu0 %v1716_v47 }
 0x5a8   : > { %1720 = vadd.xlane.f32.xlu1 %v1719_v11 }
 0x5b9   : > { %1502 = vrot.lane.b32.xlu1 %v5605_v16, %s4748_s23  ;;  %v1384_v16 = vmul.f32 1.442695, %v1334_v37 }
 0x5bb   : > { %1500 = vrot.lane.b32.xlu0 %v5600_v43, %s4748_s23  ;;  %4582 = vpow2.f32 %v1384_v16  ;;  %v1670_v43 = vpop.xlane.xlu0 %1669 }
 0x5bc   : > { %4584 = vpow2.f32 %v1386_v2  ;;  %v6964_v2 = vld [vmem:[#allocation35_spill] sm:$0xff] }
 0x5bd   : > { %4586 = vrcp.f32 %v1670_v43 }
 0x5bf   : > { %v5729_v7 = vpop.xlane.xlu0 %1576 }
 0x5c3   : > { %v1676_v10 = vpop.xlane.xlu0 %1675 }
 0x5c7   : > { %v5743_v46 = vpop.xlane.xlu0 %1681 }
 0x5c8   : > { %v5734_v50 = vpop.eup %4582 }
 0x5c9   : > { %v5737_v1 = vpop.eup %4584  ;;  %v1722_v61 = vsel %vm1219_vm0, %v5734_v50, 0.0 }
 0x5ca   : > { %v1725_v15 = vsel %vm1219_vm0, %v5737_v1, 0.0  ;;  %v4587_v11 = vpop.eup %4586 }
 0x5cb   : > { %v5747_v21 = vpop.xlane.xlu0 %1582  ;;  %v1796_v5 = vmul.f32 %v4587_v11, %v5731_v18  ;;  %v1559_v18 = vmul.f32 %v5737_v1, %v1483_v27 }
 0x5cd   : > { %v1629_v1 = vsel %vm1219_vm0, %v1559_v18, 0.0  ;;  %v6970_v18 = vld [vmem:[#allocation9_spill] sm:$0xff] }
 0x5cf   : > { %v5751_v33 = vpop.xlane.xlu0 %1305 }
 0x5d3   : > { %v5757_v34 = vpop.xlane.xlu0 %1687 }
 0x5d7   : > { %v1481_v48 = vpop.permute.xlu0 %1480 }
 0x5d8   : > { %v1558_v28 = vmul.f32 %v5734_v50, %v1481_v48 }
 0x5da   : > { %1618 = vadd.xlane.f32.xlu0 %v1617_v14  ;;  %v1626_v50 = vsel %vm1219_vm0, %v1558_v28, 0.0 }
 0x5db   : > { %v5763_v54 = vpop.xlane.xlu0 %1588 }
 0x5dd   : > { %1615 = vadd.xlane.f32.xlu1 %v1614_v4 }
 0x5de   : > { %1723 = vadd.xlane.f32.xlu0 %v1722_v61 }
 0x5df   : > { %v5771_v6 = vpop.xlane.xlu0 %1311 }
 0x5e1   : > { %1726 = vadd.xlane.f32.xlu1 %v1725_v15 }
 0x5e3   : > { %v5779_v59 = vpop.xlane.xlu0 %1693 }
 0x5e7   : > { %v1485_v31 = vpop.permute.xlu0 %1484 }
 0x5eb   : > { %v5789_v36 = vpop.xlane.xlu0 %1594 }
 0x5f2   : > { %1506 = vrot.lane.b32.xlu1 %v5642_v45, %s4748_s23  ;;  %v1388_v45 = vmul.f32 1.442695, %v1336_v19 }
 0x5f4   : > { %1504 = vrot.lane.b32.xlu0 %v5638_v13, %s4748_s23  ;;  %4588 = vpow2.f32 %v1388_v45  ;;  %v1338_v13 = vsub.f32 %v5461_v0, %v5629_v52  ;;  %v1556_v0 = vmul.f32 %v5704_v40, %v1477_v53  ;;  %v6962_v52 = vld [vmem:[#allocation34_spill] sm:$0xff]  ;;  %v1341_v40 = vsub.f32 %v6964_v2, %v5715_v62  ;;  %v6965_v45 = vld [vmem:[#allocation3_spill] sm:$0xff] }
 0x5f5   : > { %4590 = vpow2.f32 %v1390_v56  ;;  %v1830_v47 = vsub.s32 4, %v6962_v52  ;;  %v4738_v53 = vld [vmem:[%s6865_s1] sm:$0xff]  ;;  %v1898_v15 = vsub.s32 5, %v6962_v52 }
 0x5f6   : > { %4592 = vrcp.f32 %v1673_v57  ;;  %v1392_v39 = vmul.f32 1.442695, %v1338_v13  ;;  %v1620_v43 = vsel %vm1219_vm0, %v1556_v0, 0.0  ;;  %v1396_v57 = vmul.f32 1.442695, %v1340_v41  ;;  %v6967_v0 = vld [vmem:[#allocation5_spill] sm:$0xff] }
 0x5f7   : > { %v5796_v42 = vrot.slane %v4738_v53, %v1830_v47  ;;  %v1398_v4 = vmul.f32 1.442695, %v1341_v40  ;;  %v5819_v27 = vrot.slane %v4738_v53, %v1898_v15  ;;  %v1343_v41 = vsub.f32 %v6968_v25, %v5727_v51 }
 0x5f8   : > { %4594 = vpow2.f32 %v1392_v39  ;;  %v1342_v39 = vsub.f32 %v6966_v32, %v5723_v38 }
 0x5f9   : > { %4596 = vpow2.f32 %v1394_v8  ;;  %v1832_v61 = vmul.f32 %v5796_v42, %v1796_v5  ;;  %v1402_v5 = vmul.f32 1.442695, %v1343_v41 }
 0x5fa   : > { %4598 = vrcp.f32 %v1676_v10  ;;  %v1400_v2 = vmul.f32 1.442695, %v1342_v39 }
 0x5fb   : > { %4600 = vrcp.f32 %v1679_v35  ;;  %v5808_v35 = vpop.xlane.xlu0 %1699  ;;  %v1864_v56 = vadd.f32 %v1832_v61, %v6965_v45 }
 0x5fc   : > { %4602 = vpow2.f32 %v1396_v57 }
 0x5fd   : > { %4604 = vpow2.f32 %v1398_v4  ;;  %v5832_v38 = vadd.f32 %v5819_v27, %v1864_v56 }
 0x5fe   : > { %4606 = vrcp.f32 %v5743_v46 }
 0x5ff   : > { %v1489_v17 = vpop.permute.xlu0 %1488  ;;  %4608 = vrcp.f32 %v5745_v63 }
 0x600   : > { %4610 = vpow2.f32 %v1400_v2  ;;  %v6972_v2 = vld [vmem:[#allocation13_spill] sm:$0xff] }
 0x601   : > { %v4589_v37 = vpop.eup %4588  ;;  %4612 = vpow2.f32 %v1402_v5 }
 0x602   : > { %v4591_v16 = vpop.eup %4590  ;;  %v1728_v14 = vsel %vm1219_vm0, %v4589_v37, 0.0  ;;  %v1560_v46 = vmul.f32 %v4589_v37, %v1485_v31  ;;  %4614 = vrcp.f32 %v5757_v34 }
 0x603   : > { %v4593_v26 = vpop.eup %4592  ;;  %v1731_v10 = vsel %vm1219_vm0, %v4591_v16, 0.0  ;;  %v5835_v53 = vpop.xlane.xlu0 %1600  ;;  %v1561_v57 = vmul.f32 %v4591_v16, %v1487_v20  ;;  %v1344_v20 = vsub.f32 %v5611_v3, %v5751_v33  ;;  %4616 = vrcp.f32 %v5761_v12 }
 0x604   : > { %v1797_v62 = vmul.f32 %v4593_v26, %v5729_v7  ;;  %v5813_v7 = vpop.xlane.xlu1 %1702  ;;  %v1632_v63 = vsel %vm1219_vm0, %v1560_v46, 0.0 }
 0x605   : > { %v4595_v48 = vpop.eup %4594  ;;  %v1404_v33 = vmul.f32 1.442695, %v1344_v20 }
 0x606   : > { %v1833_v19 = vmul.f32 %v5796_v42, %v1797_v62  ;;  %v5815_v22 = vpop.eup %4596  ;;  %v1734_v8 = vsel %vm1219_vm0, %v4595_v48, 0.0  ;;  %v1562_v34 = vmul.f32 %v4595_v48, %v1489_v17 }
 0x607   : > { %v4599_v13 = vpop.eup %4598  ;;  %v1737_v26 = vsel %vm1219_vm0, %v5815_v22, 0.0  ;;  %v5849_v62 = vpop.xlane.xlu0 %1705  ;;  %4618 = vpow2.f32 %v1404_v33 }
 0x608   : > { %v1865_v47 = vadd.f32 %v1833_v19, %v6967_v0  ;;  %v4601_v11 = vpop.eup %4600  ;;  %v1491_v40 = vpop.permute.xlu1 %1490  ;;  %v1345_v19 = vsub.f32 %v5616_v44, %v5753_v23  ;;  %v1638_v12 = vsel %vm1219_vm0, %v1562_v34, 0.0  ;;  %v6971_v0 = vld [vmem:[#allocation11_spill] sm:$0xff] }
 0x609   : > { %v1799_v51 = vmul.f32 %v4601_v11, %v5747_v21  ;;  %v4603_v31 = vpop.eup %4602  ;;  %v6969_v21 = vld [vmem:[#allocation7_spill] sm:$0xff]  ;;  %v1563_v39 = vmul.f32 %v5815_v22, %v1491_v40  ;;  %v1346_v22 = vsub.f32 %v5648_v55, %v5771_v6  ;;  %v1347_v40 = vsub.f32 %v5652_v49, %v5775_v60 }
 0x60a   : > { %v4605_v4 = vpop.eup %4604  ;;  %v1740_v16 = vsel %vm1219_vm0, %v4603_v31, 0.0  ;;  %v1406_v23 = vmul.f32 1.442695, %v1345_v19  ;;  %v6974_v19 = vld [vmem:[#allocation17_spill] sm:$0xff] }
 0x60b   : > { %v1835_v37 = vmul.f32 %v5796_v42, %v1799_v51  ;;  %v4607_v61 = vpop.eup %4606  ;;  %v1743_v56 = vsel %vm1219_vm0, %v4605_v4, 0.0  ;;  %v1641_v11 = vsel %vm1219_vm0, %v1563_v39, 0.0 }
 0x60c   : > { %v5843_v28 = vpop.xlane.xlu1 %1597  ;;  %v1800_v45 = vmul.f32 %v4607_v61, %v5769_v30  ;;  %4620 = vpow2.f32 %v1406_v23 }
 0x60d   : > { %v1867_v15 = vadd.f32 %v1835_v37, %v6970_v18  ;;  %4622 = vrcp.f32 %v5779_v59 }
 0x60e   : > { %v1836_v30 = vmul.f32 %v5796_v42, %v1800_v45  ;;  %4624 = vrcp.f32 %v5781_v9 }
 0x60f   : > { %v5870_v44 = vadd.f32 %v5819_v27, %v1867_v15 }
 0x613   : > { %1624 = vadd.xlane.f32.xlu0 %v1623_v58  ;;  %v1798_v58 = vmul.f32 %v4599_v13, %v5749_v29  ;;  %v5840_v29 = vadd.f32 %v5819_v27, %v1865_v47  ;;  %v1493_v13 = vpop.permute.xlu0 %1492  ;;  %v1868_v47 = vadd.f32 %v1836_v30, %v6971_v0 }
 0x614   : > { %v1564_v59 = vmul.f32 %v4603_v31, %v1493_v13 }
 0x615   : > { %v5895_v6 = vadd.f32 %v5819_v27, %v1868_v47 }
 0x616   : > { %1621 = vadd.xlane.f32.xlu1 %v1620_v43  ;;  %v1834_v43 = vmul.f32 %v5796_v42, %v1798_v58  ;;  %v1644_v9 = vsel %vm1219_vm0, %v1564_v59, 0.0 }
 0x617   : > { %1729 = vadd.xlane.f32.xlu0 %v1728_v14  ;;  %v5876_v17 = vpop.xlane.xlu0 %1606 }
 0x618   : > { %v1866_v14 = vadd.f32 %v1834_v43, %v6969_v21  ;;  %v1408_v43 = vmul.f32 1.442695, %v1346_v22 }
 0x61a   : > { %1732 = vadd.xlane.f32.xlu1 %v1731_v10  ;;  %v1635_v10 = vsel %vm1219_vm0, %v1561_v57, 0.0  ;;  %v5864_v3 = vadd.f32 %v5819_v27, %v1866_v14  ;;  %4626 = vpow2.f32 %v1408_v43 }
 0x61b   : > { %1627 = vadd.xlane.f32.xlu0 %v1626_v50  ;;  %v5857_v50 = vpop.xlane.xlu1 %1708  ;;  %v5891_v5 = vpop.xlane.xlu0 %1711  ;;  %4628 = vrcp.f32 %v5808_v35 }
 0x61e   : > { %1630 = vadd.xlane.f32.xlu1 %v1629_v1  ;;  %v4609_v1 = vpop.eup %4608 }
 0x61f   : > { %1735 = vadd.xlane.f32.xlu0 %v1734_v8  ;;  %v1801_v32 = vmul.f32 %v4609_v1, %v5763_v54  ;;  %v1495_v8 = vpop.permute.xlu1 %1494  ;;  %v4611_v48 = vpop.eup %4610 }
 0x620   : > { %v4613_v25 = vpop.eup %4612  ;;  %v1746_v58 = vsel %vm1219_vm0, %v4611_v48, 0.0  ;;  %v1565_v21 = vmul.f32 %v4605_v4, %v1495_v8  ;;  %v1497_v14 = vpop.permute.xlu0 %1496 }
 0x621   : > { %v1837_v54 = vmul.f32 %v5796_v42, %v1801_v32  ;;  %v1749_v55 = vsel %vm1219_vm0, %v4613_v25, 0.0  ;;  %v1566_v1 = vmul.f32 %v4611_v48, %v1497_v14 }
 0x622   : > { %1738 = vadd.xlane.f32.xlu1 %v1737_v26  ;;  %v4615_v26 = vpop.eup %4614 }
 0x623   : > { %1932 = vadd.xlane.f32.xlu0 %v5832_v38  ;;  %v5883_v41 = vpop.xlane.xlu1 %1603  ;;  %v1869_v46 = vadd.f32 %v1837_v54, %v6972_v2  ;;  %v1802_v51 = vmul.f32 %v4615_v26, %v5801_v24  ;;  %v4617_v57 = vpop.eup %4616  ;;  %v1410_v24 = vmul.f32 1.442695, %v1347_v40  ;;  %v1650_v8 = vsel %vm1219_vm0, %v1566_v1, 0.0 }
 0x624   : > { %v4619_v31 = vpop.eup %4618 }
 0x625   : > { %v5903_v60 = vadd.f32 %v5819_v27, %v1869_v46  ;;  %v1838_v37 = vmul.f32 %v5796_v42, %v1802_v51  ;;  %4630 = vpow2.f32 %v1410_v24  ;;  %v4621_v61 = vpop.eup %4620  ;;  %v1752_v18 = vsel %vm1219_vm0, %v4619_v31, 0.0  ;;  %v6976_v46 = vld [vmem:[#allocation21_spill] sm:$0xff] }
 0x626   : > { %1934 = vadd.xlane.f32.xlu1 %v5840_v29  ;;  %4632 = vrcp.f32 %v5813_v7  ;;  %v4623_v35 = vpop.eup %4622  ;;  %v1755_v33 = vsel %vm1219_vm0, %v4621_v61, 0.0 }
 0x627   : > { %1633 = vadd.xlane.f32.xlu0 %v1632_v63  ;;  %v1803_v63 = vmul.f32 %v4617_v57, %v5789_v36  ;;  %v5900_v49 = vpop.xlane.xlu1 %1714  ;;  %v4625_v7 = vpop.eup %4624  ;;  %4634 = vrcp.f32 %v5849_v62 }
 0x628   : > { %v1805_v32 = vmul.f32 %v4625_v7, %v5835_v53  ;;  %v6975_v53 = vld [vmem:[#allocation19_spill] sm:$0xff]  ;;  %4636 = vrcp.f32 %v5857_v50 }
 0x629   : > { %v1839_v36 = vmul.f32 %v5796_v42, %v1803_v63  ;;  %4638 = vrcp.f32 %v5891_v5 }
 0x62a   : > { %1636 = vadd.xlane.f32.xlu1 %v1635_v10  ;;  %v6973_v10 = vld [vmem:[#allocation15_spill] sm:$0xff]  ;;  %v5914_v15 = vpop.xlane.xlu0 %1612  ;;  %v1841_v54 = vmul.f32 %v5796_v42, %v1805_v32  ;;  %4640 = vrcp.f32 %v5900_v49 }
 0x62b   : > { %1741 = vadd.xlane.f32.xlu0 %v1740_v16  ;;  %v1870_v20 = vadd.f32 %v1838_v37, %v6973_v10  ;;  %v1647_v16 = vsel %vm1219_vm0, %v1565_v21, 0.0  ;;  %v1499_v4 = vpop.permute.xlu1 %1498  ;;  %v1871_v45 = vadd.f32 %v1839_v36, %v6974_v19  ;;  %v6977_v37 = vld [vmem:[#allocation23_spill] sm:$0xff] }
 0x62c   : > { %v1567_v39 = vmul.f32 %v4613_v25, %v1499_v4  ;;  %v1873_v40 = vadd.f32 %v1841_v54, %v6976_v46 }
 0x62d   : > { %v5920_v34 = vadd.f32 %v5819_v27, %v1870_v20  ;;  %v5925_v23 = vadd.f32 %v5819_v27, %v1871_v45 }
 0x62e   : > { %1744 = vadd.xlane.f32.xlu1 %v1743_v56  ;;  %v1804_v56 = vmul.f32 %v4623_v35, %v5843_v28  ;;  %v5928_v28 = vpop.xlane.xlu0 %1717  ;;  %v1653_v22 = vsel %vm1219_vm0, %v1567_v39, 0.0  ;;  %v5949_v24 = vadd.f32 %v5819_v27, %v1873_v40 }
 0x62f   : > { %1936 = vadd.xlane.f32.xlu0 %v5864_v3  ;;  %v1610_v13 = vpop.xlane.xlu1 %1609 }
 0x630   : > { %v1840_v30 = vmul.f32 %v5796_v42, %v1804_v56 }
 0x632   : > { %1938 = vadd.xlane.f32.xlu1 %v5870_v44  ;;  %v1872_v47 = vadd.f32 %v1840_v30, %v6975_v53  ;;  %v1501_v2 = vpop.permute.xlu0 %1500  ;;  %v6979_v30 = vld [vmem:[#allocation28_spill] sm:$0xff] }
 0x633   : > { %1639 = vadd.xlane.f32.xlu0 %v1638_v12  ;;  %v4627_v12 = vpop.eup %4626  ;;  %v5933_v0 = vpop.xlane.xlu1 %1720 }
 0x634   : > { %v4629_v48 = vpop.eup %4628  ;;  %v5944_v59 = vadd.f32 %v5819_v27, %v1872_v47  ;;  %4642 = vrcp.f32 %v5933_v0 }
 0x635   : > { %v4631_v25 = vpop.eup %4630  ;;  %4644 = vrcp.f32 %v5928_v28 }
 0x636   : > { %1642 = vadd.xlane.f32.xlu1 %v1641_v11  ;;  %v1806_v11 = vmul.f32 %v4629_v48, %v5883_v41  ;;  %v4633_v26 = vpop.eup %4632  ;;  %v1761_v43 = vsel %vm1219_vm0, %v4631_v25, 0.0  ;;  %v1568_v41 = vmul.f32 %v4619_v31, %v1501_v2  ;;  %v6978_v31 = vld [vmem:[#allocation26_spill] sm:$0xff] }
 0x637   : > { %1747 = vadd.xlane.f32.xlu0 %v1746_v58  ;;  %v1758_v58 = vsel %vm1219_vm0, %v4627_v12, 0.0  ;;  %v1807_v51 = vmul.f32 %v4633_v26, %v5876_v17  ;;  %v1503_v57 = vpop.permute.xlu1 %1502 }
 0x638   : > { %v1569_v17 = vmul.f32 %v4621_v61, %v1503_v57 }
 0x639   : > { %v1843_v63 = vmul.f32 %v5796_v42, %v1807_v51 }
 0x63a   : > { %1750 = vadd.xlane.f32.xlu1 %v1749_v55  ;;  %v1842_v55 = vmul.f32 %v5796_v42, %v1806_v11  ;;  %v1659_v36 = vsel %vm1219_vm0, %v1569_v17, 0.0  ;;  %v6981_v11 = vld [vmem:[#allocation32_spill] sm:$0xff] }
 0x63b   : > { %1940 = vadd.xlane.f32.xlu0 %v5895_v6  ;;  %v1875_v14 = vadd.f32 %v1843_v63, %v6978_v31  ;;  %v6985_v17 = vld [vmem:[#allocation4_spill] sm:$0xff] }
 0x63c   : > { %v1874_v21 = vadd.f32 %v1842_v55, %v6977_v37 }
 0x63d   : > { %v5964_v20 = vadd.f32 %v5819_v27, %v1875_v14 }
 0x63e   : > { %1942 = vadd.xlane.f32.xlu1 %v5903_v60  ;;  %v5958_v10 = vadd.f32 %v5819_v27, %v1874_v21 }
 0x63f   : > { %1645 = vadd.xlane.f32.xlu0 %v1644_v9  ;;  %v1656_v9 = vsel %vm1219_vm0, %v1568_v41, 0.0 }
 0x642   : > { %1648 = vadd.xlane.f32.xlu1 %v1647_v16  ;;  %v4635_v16 = vpop.eup %4634 }
 0x643   : > { %1753 = vadd.xlane.f32.xlu0 %v1752_v18  ;;  %v1808_v61 = vmul.f32 %v4635_v16, %v1610_v13  ;;  %v4637_v18 = vpop.eup %4636 }
 0x644   : > { %v4639_v19 = vpop.eup %4638  ;;  %v1809_v50 = vmul.f32 %v4637_v18, %v5914_v15  ;;  %v6980_v15 = vld [vmem:[#allocation31_spill] sm:$0xff] }
 0x645   : > { %v1844_v5 = vmul.f32 %v5796_v42, %v1808_v61 }
 0x646   : > { %1756 = vadd.xlane.f32.xlu1 %v1755_v33  ;;  %v4641_v33 = vpop.eup %4640  ;;  %v1845_v7 = vmul.f32 %v5796_v42, %v1809_v50 }
 0x647   : > { %1944 = vadd.xlane.f32.xlu0 %v5920_v34  ;;  %v1876_v39 = vadd.f32 %v1844_v5, %v6979_v30  ;;  %v4643_v51 = vpop.eup %4642 }
 0x648   : > { %v1877_v53 = vadd.f32 %v1845_v7, %v6980_v15  ;;  %v4645_v41 = vpop.eup %4644 }
 0x649   : > { %v5979_v26 = vadd.f32 %v5819_v27, %v1876_v39 }
 0x64a   : > { %1946 = vadd.xlane.f32.xlu1 %v5925_v23  ;;  %v5984_v46 = vadd.f32 %v5819_v27, %v1877_v53 }
 0x64b   : > { %1651 = vadd.xlane.f32.xlu0 %v1650_v8 }
 0x64e   : > { %1654 = vadd.xlane.f32.xlu1 %v1653_v22 }
 0x64f   : > { %1759 = vadd.xlane.f32.xlu0 %v1758_v58 }
 0x652   : > { %1762 = vadd.xlane.f32.xlu1 %v1761_v43 }
 0x653   : > { %1948 = vadd.xlane.f32.xlu0 %v5944_v59 }
 0x656   : > { %1950 = vadd.xlane.f32.xlu1 %v5949_v24 }
 0x657   : > { %1657 = vadd.xlane.f32.xlu0 %v1656_v9 }
 0x65a   : > { %1660 = vadd.xlane.f32.xlu1 %v1659_v36  ;;  %v6987_v36 = vld [vmem:[#allocation2_spill] sm:$0xff] }
 0x65b   : > { %1952 = vadd.xlane.f32.xlu0 %v5958_v10 }
 0x65e   : > { %1954 = vadd.xlane.f32.xlu1 %v5964_v20 }
 0x663   : > { %v1619_v62 = vpop.xlane.xlu0 %1618 }
 0x664   : > { %v1811_v49 = vmul.f32 %v4641_v33, %v1619_v62 }
 0x666   : > { %v1616_v4 = vpop.xlane.xlu1 %1615  ;;  %v1847_v47 = vmul.f32 %v5796_v42, %v1811_v49  ;;  %v6991_v49 = vld [vmem:[#allocation8_spill] sm:$0xff] }
 0x667   : > { %v1724_v35 = vpop.xlane.xlu0 %1723  ;;  %v1810_v45 = vmul.f32 %v4639_v19, %v1616_v4 }
 0x668   : > { %4646 = vrcp.f32 %v1724_v35 }
 0x669   : > { %v1846_v13 = vmul.f32 %v5796_v42, %v1810_v45  ;;  %v6989_v45 = vld [vmem:[#allocation6_spill] sm:$0xff] }
 0x66a   : > { %v1727_v56 = vpop.xlane.xlu1 %1726 }
 0x66b   : > { %v1505_v1 = vpop.permute.xlu0 %1504  ;;  %v1878_v22 = vadd.f32 %v1846_v13, %v6981_v11  ;;  %4648 = vrcp.f32 %v1727_v56 }
 0x66c   : > { %v1570_v32 = vmul.f32 %v4627_v12, %v1505_v1  ;;  %v6982_v12 = vld [vmem:[#allocation33_spill] sm:$0xff] }
 0x66d   : > { %v1879_v2 = vadd.f32 %v1847_v47, %v6982_v12 }
 0x66e   : > { %v1507_v8 = vpop.permute.xlu1 %1506  ;;  %v1662_v48 = vsel %vm1219_vm0, %v1570_v32, 0.0 }
 0x66f   : > { %v1571_v54 = vmul.f32 %v4631_v25, %v1507_v8  ;;  %1663 = vadd.xlane.f32.xlu0 %v1662_v48  ;;  %v5987_v25 = vadd.f32 %v5819_v27, %v1878_v22  ;;  %v5992_v40 = vadd.f32 %v5819_v27, %v1879_v2 }
 0x671   : > { %v1665_v58 = vsel %vm1219_vm0, %v1571_v54, 0.0  ;;  %6983 = vst [vmem:[#allocation34_spill] sm:$0xff] %v5987_v25  ;;  %6984 = vst [vmem:[#allocation36_spill] sm:$0xff] %v5992_v40 }
 0x672   : > { %1666 = vadd.xlane.f32.xlu1 %v1665_v58 }
 0x673   : > { %1956 = vadd.xlane.f32.xlu0 %v5979_v26 }
 0x675   : > { %v4647_v28 = vpop.eup %4646 }
 0x676   : > { %1958 = vadd.xlane.f32.xlu1 %v5984_v46 }
 0x677   : > { %1960 = vadd.xlane.f32.xlu0 %v5987_v25 }
 0x678   : > { %v4649_v18 = vpop.eup %4648 }
 0x67a   : > { %1962 = vadd.xlane.f32.xlu1 %v5992_v40 }
 0x69c   : > { %v1625_v55 = vpop.xlane.xlu0 %1624 }
 0x69d   : > { %v1813_v43 = vmul.f32 %v4643_v51, %v1625_v55 }
 0x69f   : > { %v1849_v57 = vmul.f32 %v5796_v42, %v1813_v43  ;;  %v1622_v63 = vpop.xlane.xlu1 %1621 }
 0x6a0   : > { %v1812_v37 = vmul.f32 %v4645_v41, %v1622_v63  ;;  %v1730_v21 = vpop.xlane.xlu0 %1729  ;;  %v6993_v41 = vld [vmem:[#allocation10_spill] sm:$0xff] }
 0x6a1   : > { %v1881_v9 = vadd.f32 %v1849_v57, %v6985_v17  ;;  %4650 = vrcp.f32 %v1730_v21  ;;  %v6995_v17 = vld [vmem:[#allocation12_spill] sm:$0xff] }
 0x6a2   : > { %v1848_v31 = vmul.f32 %v5796_v42, %v1812_v37 }
 0x6a3   : > { %v1733_v14 = vpop.xlane.xlu1 %1732  ;;  %v6001_v0 = vadd.f32 %v5819_v27, %v1881_v9 }
 0x6a4   : > { %v1880_v62 = vadd.f32 %v1848_v31, %v6987_v36  ;;  %v1628_v16 = vpop.xlane.xlu0 %1627  ;;  %4652 = vrcp.f32 %v1733_v14  ;;  %v4407_v36 = vld [vmem:[%s6868_s4 + $0xec] ss:$16 sps:$4 sm:$0xff]  }
 0x6a5   : > { %6986 = vst [vmem:[#allocation35_spill] sm:$0xff] %v6001_v0  ;;  %v1814_v61 = vmul.f32 %v4647_v28, %v1628_v16  ;;  %1966 = vadd.xlane.f32.xlu1 %v6001_v0  ;;  %v4404_v28 = vld [vmem:[%s6868_s4 + $0xe4] ss:$16 sps:$4 sm:$0xff]   ;;  %v4402_v16 = vld [vmem:[%s6868_s4 + $0xe0] ss:$16 sps:$4 sm:$0xff]   ;;  %2779 = vmatprep.subr.bf16.mxu0 %v4407_v36 }
 0x6a6   : > { %v6006_v4 = vadd.f32 %v5819_v27, %v1880_v62  ;;  %2586 = vmatprep.subr.bf16.mxu1 %v4404_v28  ;;  %v4420_v36 = vld [vmem:[%s6868_s4 + $0x80] ss:$16 sps:$4 sm:$0xff]  }
 0x6a7   : > { %v1850_v35 = vmul.f32 %v5796_v42, %v1814_v61  ;;  %v1631_v19 = vpop.xlane.xlu1 %1630  ;;  %v4405_v61 = vld [vmem:[%s6868_s4 + $0xe8] ss:$16 sps:$4 sm:$0xff]   ;;  %2587 = vmatpush1.bf16.msra.mxu1 %v4402_v16 }
 0x6a8   : > { %6988 = vst [vmem:[#allocation3_spill] sm:$0xff] %v6006_v4  ;;  %v1815_v50 = vmul.f32 %v4649_v18, %v1631_v19  ;;  %1964 = vadd.xlane.f32.xlu0 %v6006_v4  ;;  %v1736_v5 = vpop.xlane.xlu0 %1735  ;;  %2780 = vmatpush1.bf16.msra.mxu0 %v4405_v61  ;;  %v4423_v16 = vld [vmem:[%s6868_s4 + $0x88] ss:$16 sps:$4 sm:$0xff]  }
 0x6a9   : > { %v1882_v56 = vadd.f32 %v1850_v35, %v6989_v45  ;;  %4654 = vrcp.f32 %v1736_v5 }
 0x6aa   : > { %v1851_v33 = vmul.f32 %v5796_v42, %v1815_v50 }
 0x6ab   : > { %v1739_v1 = vpop.xlane.xlu1 %1738  ;;  %v6013_v7 = vadd.f32 %v5819_v27, %v1882_v56 }
 0x6ac   : > { %v1883_v32 = vadd.f32 %v1851_v33, %v6991_v49  ;;  %v1933_v30 = vpop.xlane.xlu0 %1932  ;;  %4656 = vrcp.f32 %v1739_v1  ;;  %v4410_v33 = vld [vmem:[%s6868_s4 + $0xc4] ss:$16 sps:$4 sm:$0xff]   ;;  %v4413_v1 = vld [vmem:[%s6868_s4 + $0xcc] ss:$16 sps:$4 sm:$0xff]  }
 0x6ad   : > { %6990 = vst [vmem:[#allocation37_spill] sm:$0xff] %v6013_v7  ;;  %v1996_v39 = vmul.f32 0.0078125, %v1933_v30  ;;  %1968 = vadd.xlane.f32.xlu0 %v6013_v7  ;;  %v4411_v30 = vld [vmem:[%s6868_s4 + $0xc8] ss:$16 sps:$4 sm:$0xff]   ;;  %2588 = vmatprep.subr.bf16.mxu1 %v4410_v33  ;;  %v4428_v33 = vld [vmem:[%s6868_s4 + $0x64] ss:$16 sps:$4 sm:$0xff]  }
 0x6ae   : > { %v6018_v13 = vadd.f32 %v5819_v27, %v1883_v32  ;;  %v4651_v54 = vpop.eup %4650  ;;  %v4408_v32 = vld [vmem:[%s6868_s4 + $0xc0] ss:$16 sps:$4 sm:$0xff]   ;;  %2781 = vmatprep.subr.bf16.mxu0 %v4413_v1  ;;  %v4431_v1 = vld [vmem:[%s6868_s4 + $0x6c] ss:$16 sps:$4 sm:$0xff]  }
 0x6af   : > { %v6021_v8 = vsub.f32 %v5832_v38, %v1996_v39  ;;  %v1935_v48 = vpop.xlane.xlu1 %1934  ;;  %2589 = vmatpush1.bf16.msra.mxu1 %v4408_v32  ;;  %2782 = vmatpush1.bf16.msra.mxu0 %v4411_v30  ;;  %v4426_v30 = vld [vmem:[%s6868_s4 + $0x60] ss:$16 sps:$4 sm:$0xff]  }
 0x6b0   : > { %6992 = vst [vmem:[#allocation5_spill] sm:$0xff] %v6018_v13  ;;  %v1997_v15 = vmul.f32 0.0078125, %v1935_v48  ;;  %1970 = vadd.xlane.f32.xlu1 %v6018_v13  ;;  %v1634_v53 = vpop.xlane.xlu0 %1633 }
 0x6b1   : > { %v1816_v47 = vmul.f32 %v4651_v54, %v1634_v53  ;;  %v2060_v11 = vmul.f32 %v6021_v8, %v6021_v8  ;;  %v4653_v58 = vpop.eup %4652 }
 0x6b2   : > { %v6027_v22 = vsub.f32 %v5840_v29, %v1997_v15 }
 0x6b3   : > { %v1852_v12 = vmul.f32 %v5796_v42, %v1816_v47  ;;  %v1637_v2 = vpop.xlane.xlu1 %1636  ;;  %2092 = vadd.xlane.f32.xlu0 %v2060_v11  ;;  %v6997_v11 = vld [vmem:[#allocation14_spill] sm:$0xff] }
 0x6b4   : > { %v1817_v51 = vmul.f32 %v4653_v58, %v1637_v2  ;;  %v1742_v55 = vpop.xlane.xlu0 %1741  ;;  %v2061_v43 = vmul.f32 %v6027_v22, %v6027_v22  ;;  %v4419_v2 = vld [vmem:[%s6868_s4 + $0xac] ss:$16 sps:$4 sm:$0xff]  }
 0x6b5   : > { %v1884_v57 = vadd.f32 %v1852_v12, %v6993_v41  ;;  %4658 = vrcp.f32 %v1742_v55  ;;  %v4416_v12 = vld [vmem:[%s6868_s4 + $0xa4] ss:$16 sps:$4 sm:$0xff]   ;;  %v4414_v55 = vld [vmem:[%s6868_s4 + $0xa0] ss:$16 sps:$4 sm:$0xff]   ;;  %2783 = vmatprep.subr.bf16.mxu0 %v4419_v2 }
 0x6b6   : > { %v1853_v63 = vmul.f32 %v5796_v42, %v1817_v51  ;;  %2094 = vadd.xlane.f32.xlu1 %v2061_v43  ;;  %v4655_v19 = vpop.eup %4654  ;;  %v4417_v43 = vld [vmem:[%s6868_s4 + $0xa8] ss:$16 sps:$4 sm:$0xff]   ;;  %2590 = vmatprep.subr.bf16.mxu1 %v4416_v12  ;;  %v4434_v2 = vld [vmem:[%s6868_s4 + $0x44] ss:$16 sps:$4 sm:$0xff]  }
 0x6b7   : > { %v1745_v37 = vpop.xlane.xlu1 %1744  ;;  %v6035_v21 = vadd.f32 %v5819_v27, %v1884_v57  ;;  %2591 = vmatpush1.bf16.msra.mxu1 %v4414_v55  ;;  %2784 = vmatpush1.bf16.msra.mxu0 %v4417_v43  ;;  %v4432_v43 = vld [vmem:[%s6868_s4 + $0x40] ss:$16 sps:$4 sm:$0xff]  }
 0x6b8   : > { %v1885_v9 = vadd.f32 %v1853_v63, %v6995_v17  ;;  %v1937_v31 = vpop.xlane.xlu0 %1936  ;;  %4660 = vrcp.f32 %v1745_v37  ;;  %v6998_v63 = vld [vmem:[#allocation16_spill] sm:$0xff] }
 0x6b9   : > { %6994 = vst [vmem:[#allocation38_spill] sm:$0xff] %v6035_v21  ;;  %v1998_v14 = vmul.f32 0.0078125, %v1937_v31  ;;  %1972 = vadd.xlane.f32.xlu0 %v6035_v21  ;;  %v4657_v39 = vpop.eup %4656  ;;  %v4422_v31 = vld [vmem:[%s6868_s4 + $0x84] ss:$16 sps:$4 sm:$0xff]  }
 0x6ba   : > { %v6046_v62 = vadd.f32 %v5819_v27, %v1885_v9  ;;  %2592 = vmatprep.subr.bf16.mxu1 %v4422_v31 }
 0x6bb   : > { %v6055_v18 = vsub.f32 %v5864_v3, %v1998_v14  ;;  %v1939_v35 = vpop.xlane.xlu1 %1938  ;;  %v4425_v14 = vld [vmem:[%s6868_s4 + $0x8c] ss:$16 sps:$4 sm:$0xff]   ;;  %2593 = vmatpush1.bf16.msra.mxu1 %v4420_v36  ;;  %v4440_v36 = vld [vmem:[%s6868_s4 + $0x24] ss:$16 sps:$4 sm:$0xff]  }
 0x6bc   : > { %6996 = vst [vmem:[#allocation7_spill] sm:$0xff] %v6046_v62  ;;  %v1999_v50 = vmul.f32 0.0078125, %v1939_v35  ;;  %1974 = vadd.xlane.f32.xlu1 %v6046_v62  ;;  %v1640_v5 = vpop.xlane.xlu0 %1639  ;;  %2785 = vmatprep.subr.bf16.mxu0 %v4425_v14 }
 0x6bd   : > { %v1818_v45 = vmul.f32 %v4655_v19, %v1640_v5  ;;  %v2062_v56 = vmul.f32 %v6055_v18, %v6055_v18  ;;  %2786 = vmatpush1.bf16.msra.mxu0 %v4423_v16  ;;  %2594 = vmatprep.subr.bf16.mxu1 %v4428_v33  ;;  %v4443_v16 = vld [vmem:[%s6868_s4 + $0x2c] ss:$16 sps:$4 sm:$0xff]  }
 0x6be   : > { %v6067_v49 = vsub.f32 %v5870_v44, %v1999_v50  ;;  %2787 = vmatprep.subr.bf16.mxu0 %v4431_v1 }
 0x6bf   : > { %v1854_v48 = vmul.f32 %v5796_v42, %v1818_v45  ;;  %v1643_v54 = vpop.xlane.xlu1 %1642  ;;  %2096 = vadd.xlane.f32.xlu0 %v2062_v56  ;;  %2595 = vmatpush1.bf16.msra.mxu1 %v4426_v30 }
 0x6c0   : > { %v1819_v15 = vmul.f32 %v4657_v39, %v1643_v54  ;;  %v1748_v53 = vpop.xlane.xlu0 %1747  ;;  %v2063_v47 = vmul.f32 %v6067_v49, %v6067_v49  ;;  %v4429_v39 = vld [vmem:[%s6868_s4 + $0x68] ss:$16 sps:$4 sm:$0xff]   ;;  %2596 = vmatprep.subr.bf16.mxu1 %v4434_v2 }
 0x6c1   : > { %v1886_v58 = vadd.f32 %v1854_v48, %v6997_v11  ;;  %4662 = vrcp.f32 %v1748_v53  ;;  %2788 = vmatpush1.bf16.msra.mxu0 %v4429_v39 }
 0x6c2   : > { %v1855_v51 = vmul.f32 %v5796_v42, %v1819_v15  ;;  %2098 = vadd.xlane.f32.xlu1 %v2063_v47  ;;  %v4659_v19 = vpop.eup %4658 }
 0x6c3   : > { %v1751_v41 = vpop.xlane.xlu1 %1750  ;;  %v6093_v57 = vadd.f32 %v5819_v27, %v1886_v58  ;;  %v6999_v58 = vld [vmem:[#allocation18_spill] sm:$0xff]  ;;  %2597 = vmatpush1.bf16.msra.mxu1 %v4432_v43 }
 0x6c4   : > { %v1887_v37 = vadd.f32 %v1855_v51, %v6998_v63  ;;  %v1941_v17 = vpop.xlane.xlu0 %1940  ;;  %4664 = vrcp.f32 %v1751_v41  ;;  %v4437_v51 = vld [vmem:[%s6868_s4 + $0x4c] ss:$16 sps:$4 sm:$0xff]   ;;  %v4435_v41 = vld [vmem:[%s6868_s4 + $0x48] ss:$16 sps:$4 sm:$0xff]   ;;  %2598 = vmatprep.subr.bf16.mxu1 %v4440_v36  ;;  %v7002_v43 = vld [vmem:[#allocation22_spill] sm:$0xff] }
 0x6c5   : > { %v2000_v9 = vmul.f32 0.0078125, %v1941_v17  ;;  %1976 = vadd.xlane.f32.xlu0 %v6093_v57  ;;  %v4661_v48 = vpop.eup %4660  ;;  %2789 = vmatprep.subr.bf16.mxu0 %v4437_v51  ;;  %v7000_v17 = vld [vmem:[#allocation20_spill] sm:$0xff] }
 0x6c6   : > { %v6104_v28 = vadd.f32 %v5819_v27, %v1887_v37  ;;  %2790 = vmatpush1.bf16.msra.mxu0 %v4435_v41 }
 0x6c7   : > { %v6113_v61 = vsub.f32 %v5895_v6, %v2000_v9  ;;  %v1943_v35 = vpop.xlane.xlu1 %1942  ;;  %2791 = vmatprep.subr.bf16.mxu0 %v4443_v16 }
 0x6c8   : > { %v2001_v50 = vmul.f32 0.0078125, %v1943_v35  ;;  %1978 = vadd.xlane.f32.xlu1 %v6104_v28  ;;  %v1646_v5 = vpop.xlane.xlu0 %1645 }
 0x6c9   : > { %v1820_v45 = vmul.f32 %v4659_v19, %v1646_v5  ;;  %v2064_v56 = vmul.f32 %v6113_v61, %v6113_v61  ;;  %v4438_v19 = vld [vmem:[%s6868_s4 + $0x20] ss:$16 sps:$4 sm:$0xff]  }
 0x6ca   : > { %v6125_v32 = vsub.f32 %v5903_v60, %v2001_v50  ;;  %v4441_v50 = vld [vmem:[%s6868_s4 + $0x28] ss:$16 sps:$4 sm:$0xff]   ;;  %2599 = vmatpush1.bf16.msra.mxu1 %v4438_v19 }
 0x6cb   : > { %v1856_v54 = vmul.f32 %v5796_v42, %v1820_v45  ;;  %v1649_v15 = vpop.xlane.xlu1 %1648  ;;  %2100 = vadd.xlane.f32.xlu0 %v2064_v56  ;;  %2792 = vmatpush1.bf16.msra.mxu0 %v4441_v50 }
 0x6cc   : > { %v1821_v53 = vmul.f32 %v4661_v48, %v1649_v15  ;;  %v1754_v47 = vpop.xlane.xlu0 %1753  ;;  %v2065_v11 = vmul.f32 %v6125_v32, %v6125_v32  ;;  %v4446_v48 = vld [vmem:[%s6868_s4 + $0x4] ss:$16 sps:$4 sm:$0xff]  }
 0x6cd   : > { %v1888_v12 = vadd.f32 %v1856_v54, %v6999_v58  ;;  %4666 = vrcp.f32 %v1754_v47  ;;  %v4449_v54 = vld [vmem:[%s6868_s4 + $0xc] ss:$16 sps:$4 sm:$0xff]   ;;  %v4447_v47 = vld [vmem:[%s6868_s4 + $0x8] ss:$16 sps:$4 sm:$0xff]   ;;  %2600 = vmatprep.subr.bf16.mxu1 %v4446_v48 }
 0x6ce   : > { %v1857_v55 = vmul.f32 %v5796_v42, %v1821_v53  ;;  %2102 = vadd.xlane.f32.xlu1 %v2065_v11  ;;  %v4663_v56 = vpop.eup %4662  ;;  %v4444_v53 = vld [vmem:[%s6868_s4] ss:$16 sps:$4 sm:$0xff]   ;;  %2793 = vmatprep.subr.bf16.mxu0 %v4449_v54 }
 0x6cf   : > { %v1757_v63 = vpop.xlane.xlu1 %1756  ;;  %v6151_v37 = vadd.f32 %v5819_v27, %v1888_v12  ;;  %2601 = vmatpush1.bf16.msra.mxu1 %v4444_v53  ;;  %2794 = vmatpush1.bf16.msra.mxu0 %v4447_v47 }
 0x6d0   : > { %v1889_v9 = vadd.f32 %v1857_v55, %v7000_v17  ;;  %v1945_v31 = vpop.xlane.xlu0 %1944  ;;  %4668 = vrcp.f32 %v1757_v63  ;;  %v6914_v17 = vmov 0  }
 0x6d1   : > { %v2002_v14 = vmul.f32 0.0078125, %v1945_v31  ;;  %1980 = vadd.xlane.f32.xlu0 %v6151_v37  ;;  %v4665_v11 = vpop.eup %4664  ;;  %2618 = vmatprep.mubr.bf16.mxu1 %v6914_v17 }
 0x6d2   : > { %v6162_v35 = vadd.f32 %v5819_v27, %v1889_v9  ;;  %2811 = vmatprep.mubr.bf16.mxu0 %v6914_v17 }
 0x6d3   : > { %v6171_v5 = vsub.f32 %v5920_v34, %v2002_v14  ;;  %v1947_v45 = vpop.xlane.xlu1 %1946  ;;  %v7003_v14 = vld [vmem:[#allocation24_spill] sm:$0xff] }
 0x6d4   : > { %7001 = vst [vmem:[#allocation9_spill] sm:$0xff] %v6162_v35  ;;  %v2003_v33 = vmul.f32 0.0078125, %v1947_v45  ;;  %1982 = vadd.xlane.f32.xlu1 %v6162_v35  ;;  %v1652_v1 = vpop.xlane.xlu0 %1651 }
 0x6d5   : > { %v1822_v30 = vmul.f32 %v4663_v56, %v1652_v1  ;;  %v2066_v39 = vmul.f32 %v6171_v5, %v6171_v5 }
 0x6d6   : > { %v6183_v15 = vsub.f32 %v5925_v23, %v2003_v33 }
 0x6d7   : > { %v1858_v58 = vmul.f32 %v5796_v42, %v1822_v30  ;;  %v1655_v12 = vpop.xlane.xlu1 %1654  ;;  %2104 = vadd.xlane.f32.xlu0 %v2066_v39 }
 0x6d8   : > { %v1823_v2 = vmul.f32 %v4665_v11, %v1655_v12  ;;  %v1760_v51 = vpop.xlane.xlu0 %1759  ;;  %v2067_v55 = vmul.f32 %v6183_v15, %v6183_v15 }
 0x6d9   : > { %v1890_v41 = vadd.f32 %v1858_v58, %v7002_v43  ;;  %4670 = vrcp.f32 %v1760_v51 }
 0x6da   : > { %v1859_v63 = vmul.f32 %v5796_v42, %v1823_v2  ;;  %2106 = vadd.xlane.f32.xlu1 %v2067_v55  ;;  %v4667_v33 = vpop.eup %4666  ;;  %v7004_v55 = vld [vmem:[#allocation25_spill] sm:$0xff] }
 0x6db   : > { %v1763_v9 = vpop.xlane.xlu1 %1762  ;;  %v6198_v31 = vadd.f32 %v5819_v27, %v1890_v41 }
 0x6dc   : > { %v1891_v36 = vadd.f32 %v1859_v63, %v7003_v14  ;;  %v1949_v16 = vpop.xlane.xlu0 %1948  ;;  %4672 = vrcp.f32 %v1763_v9 }
 0x6dd   : > { %v2004_v19 = vmul.f32 0.0078125, %v1949_v16  ;;  %1984 = vadd.xlane.f32.xlu0 %v6198_v31  ;;  %v4669_v53 = vpop.eup %4668 }
 0x6de   : > { %v6204_v50 = vadd.f32 %v5819_v27, %v1891_v36 }
 0x6df   : > { %v6207_v45 = vsub.f32 %v5944_v59, %v2004_v19  ;;  %v1951_v56 = vpop.xlane.xlu1 %1950  ;;  %v7005_v19 = vld [vmem:[#allocation27_spill] sm:$0xff] }
 0x6e0   : > { %v2005_v1 = vmul.f32 0.0078125, %v1951_v56  ;;  %1986 = vadd.xlane.f32.xlu1 %v6204_v50  ;;  %v1658_v30 = vpop.xlane.xlu0 %1657 }
 0x6e1   : > { %v1824_v39 = vmul.f32 %v4667_v33, %v1658_v30  ;;  %v2068_v48 = vmul.f32 %v6207_v45, %v6207_v45 }
 0x6e2   : > { %v6213_v54 = vsub.f32 %v5949_v24, %v2005_v1 }
 0x6e3   : > { %v1860_v47 = vmul.f32 %v5796_v42, %v1824_v39  ;;  %v1661_v11 = vpop.xlane.xlu1 %1660  ;;  %2108 = vadd.xlane.f32.xlu0 %v2068_v48 }
 0x6e4   : > { %v1825_v58 = vmul.f32 %v4669_v53, %v1661_v11  ;;  %v1953_v12 = vpop.xlane.xlu0 %1952  ;;  %v2069_v2 = vmul.f32 %v6213_v54, %v6213_v54 }
 0x6e5   : > { %v1892_v43 = vadd.f32 %v1860_v47, %v7004_v55  ;;  %v2006_v41 = vmul.f32 0.0078125, %v1953_v12 }
 0x6e6   : > { %v1861_v63 = vmul.f32 %v5796_v42, %v1825_v58  ;;  %2110 = vadd.xlane.f32.xlu1 %v2069_v2  ;;  %v4671_v53 = vpop.eup %4670 }
 0x6e7   : > { %v6221_v14 = vsub.f32 %v5958_v10, %v2006_v41  ;;  %v1955_v36 = vpop.xlane.xlu1 %1954  ;;  %v6224_v16 = vadd.f32 %v5819_v27, %v1892_v43  ;;  %v7006_v43 = vld [vmem:[#allocation29_spill] sm:$0xff] }
 0x6e8   : > { %v1893_v56 = vadd.f32 %v1861_v63, %v7005_v19  ;;  %v2007_v33 = vmul.f32 0.0078125, %v1955_v36 }
 0x6e9   : > { %1988 = vadd.xlane.f32.xlu0 %v6224_v16  ;;  %v2070_v39 = vmul.f32 %v6221_v14, %v6221_v14  ;;  %v4673_v58 = vpop.eup %4672 }
 0x6ea   : > { %v6229_v1 = vsub.f32 %v5964_v20, %v2007_v33  ;;  %v6232_v30 = vadd.f32 %v5819_v27, %v1893_v56  ;;  %v7007_v33 = vld [vmem:[#allocation30_spill] sm:$0xff] }
 0x6ec   : > { %1990 = vadd.xlane.f32.xlu1 %v6232_v30  ;;  %v2071_v48 = vmul.f32 %v6229_v1, %v6229_v1 }
 0x6ed   : > { %2112 = vadd.xlane.f32.xlu0 %v2070_v39 }
 0x6f0   : > { %2114 = vadd.xlane.f32.xlu1 %v2071_v48 }
 0x6f8   : > { %v1664_v47 = vpop.xlane.xlu0 %1663 }
 0x6f9   : > { %v1826_v11 = vmul.f32 %v4671_v53, %v1664_v47 }
 0x6fb   : > { %v1862_v12 = vmul.f32 %v5796_v42, %v1826_v11  ;;  %v1667_v2 = vpop.xlane.xlu1 %1666 }
 0x6fc   : > { %v1827_v55 = vmul.f32 %v4673_v58, %v1667_v2  ;;  %v1957_v51 = vpop.xlane.xlu0 %1956 }
 0x6fd   : > { %v1894_v41 = vadd.f32 %v1862_v12, %v7006_v43  ;;  %v2008_v63 = vmul.f32 0.0078125, %v1957_v51 }
 0x6fe   : > { %v1863_v36 = vmul.f32 %v5796_v42, %v1827_v55 }
 0x6ff   : > { %v6243_v9 = vsub.f32 %v5979_v26, %v2008_v63  ;;  %v1959_v19 = vpop.xlane.xlu1 %1958  ;;  %v6246_v56 = vadd.f32 %v5819_v27, %v1894_v41 }
 0x700   : > { %v1895_v39 = vadd.f32 %v1863_v36, %v7007_v33  ;;  %v2009_v48 = vmul.f32 0.0078125, %v1959_v19  ;;  %v1961_v53 = vpop.xlane.xlu0 %1960 }
 0x701   : > { %v2010_v47 = vmul.f32 0.0078125, %v1961_v53  ;;  %1992 = vadd.xlane.f32.xlu0 %v6246_v56  ;;  %v2072_v2 = vmul.f32 %v6243_v9, %v6243_v9 }
 0x702   : > { %v6251_v11 = vsub.f32 %v5984_v46, %v2009_v48  ;;  %v6254_v58 = vadd.f32 %v5819_v27, %v1895_v39 }
 0x703   : > { %v6257_v42 = vsub.f32 %v5987_v25, %v2010_v47  ;;  %v1963_v12 = vpop.xlane.xlu1 %1962 }
 0x704   : > { %v2011_v55 = vmul.f32 0.0078125, %v1963_v12  ;;  %1994 = vadd.xlane.f32.xlu1 %v6254_v58  ;;  %v2073_v43 = vmul.f32 %v6251_v11, %v6251_v11 }
 0x705   : > { %2116 = vadd.xlane.f32.xlu0 %v2072_v2  ;;  %v2074_v27 = vmul.f32 %v6257_v42, %v6257_v42 }
 0x706   : > { %v6263_v51 = vsub.f32 %v5992_v40, %v2011_v55 }
 0x708   : > { %2118 = vadd.xlane.f32.xlu1 %v2073_v43  ;;  %v2075_v41 = vmul.f32 %v6263_v51, %v6263_v51 }
 0x709   : > { %2120 = vadd.xlane.f32.xlu0 %v2074_v27 }
 0x70c   : > { %2122 = vadd.xlane.f32.xlu1 %v2075_v41 }
 0x72e   : > { %v1967_v63 = vpop.xlane.xlu1 %1966 }
 0x72f   : > { %v2013_v36 = vmul.f32 0.0078125, %v1967_v63 }
 0x731   : > { %v6272_v19 = vsub.f32 %v6001_v0, %v2013_v36  ;;  %v1965_v33 = vpop.xlane.xlu0 %1964 }
 0x732   : > { %v2012_v39 = vmul.f32 0.0078125, %v1965_v33 }
 0x733   : > { %v2077_v48 = vmul.f32 %v6272_v19, %v6272_v19 }
 0x734   : > { %v6277_v53 = vsub.f32 %v6006_v4, %v2012_v39 }
 0x735   : > { %2126 = vadd.xlane.f32.xlu1 %v2077_v48 }
 0x736   : > { %v1969_v47 = vpop.xlane.xlu0 %1968  ;;  %v2076_v12 = vmul.f32 %v6277_v53, %v6277_v53 }
 0x737   : > { %v2014_v2 = vmul.f32 0.0078125, %v1969_v47 }
 0x738   : > { %2124 = vadd.xlane.f32.xlu0 %v2076_v12 }
 0x739   : > { %v6282_v55 = vsub.f32 %v6013_v7, %v2014_v2  ;;  %v1971_v43 = vpop.xlane.xlu1 %1970 }
 0x73a   : > { %v2015_v27 = vmul.f32 0.0078125, %v1971_v43 }
 0x73b   : > { %v2078_v41 = vmul.f32 %v6282_v55, %v6282_v55 }
 0x73c   : > { %v6287_v63 = vsub.f32 %v6018_v13, %v2015_v27  ;;  %v2093_v36 = vpop.xlane.xlu0 %2092 }
 0x73d   : > { %v2156_v33 = vmul.f32 0.0078125, %v2093_v36  ;;  %2128 = vadd.xlane.f32.xlu0 %v2078_v41 }
 0x73e   : > { %v2079_v39 = vmul.f32 %v6287_v63, %v6287_v63 }
 0x73f   : > { %v2188_v48 = vadd.f32 1e-05, %v2156_v33  ;;  %v2095_v47 = vpop.xlane.xlu1 %2094 }
 0x740   : > { %v2157_v12 = vmul.f32 0.0078125, %v2095_v47  ;;  %2130 = vadd.xlane.f32.xlu1 %v2079_v39 }
 0x741   : > { %4674 = vrsqrt.f32 %v2188_v48 }
 0x742   : > { %v2189_v2 = vadd.f32 1e-05, %v2157_v12  ;;  %v1973_v17 = vpop.xlane.xlu0 %1972 }
 0x743   : > { %v2016_v43 = vmul.f32 0.0078125, %v1973_v17  ;;  %v2286_v17 = vsub.s32 6, %v6962_v52 }
 0x744   : > { %4676 = vrsqrt.f32 %v2189_v2 }
 0x745   : > { %v6292_v7 = vsub.f32 %v6035_v21, %v2016_v43  ;;  %v1975_v27 = vpop.xlane.xlu1 %1974 }
 0x746   : > { %v2017_v13 = vmul.f32 0.0078125, %v1975_v27 }
 0x747   : > { %v2080_v41 = vmul.f32 %v6292_v7, %v6292_v7 }
 0x748   : > { %v6297_v36 = vsub.f32 %v6046_v62, %v2017_v13  ;;  %v2097_v33 = vpop.xlane.xlu0 %2096  ;;  %v4739_v13 = vld [vmem:[%s6865_s1] sm:$0xff] }
 0x749   : > { %v2158_v0 = vmul.f32 0.0078125, %v2097_v33  ;;  %2132 = vadd.xlane.f32.xlu0 %v2080_v41  ;;  %v6305_v62 = vrot.slane %v4739_v13, %v2286_v17  ;;  %v2322_v41 = vsub.s32 7, %v6962_v52 }
 0x74a   : > { %v2081_v39 = vmul.f32 %v6297_v36, %v6297_v36 }
 0x74b   : > { %v2190_v48 = vadd.f32 1e-05, %v2158_v0  ;;  %v2099_v47 = vpop.xlane.xlu1 %2098  ;;  %v6314_v40 = vrot.slane %v4739_v13, %v2322_v41 }
 0x74c   : > { %v2159_v12 = vmul.f32 0.0078125, %v2099_v47  ;;  %2134 = vadd.xlane.f32.xlu1 %v2081_v39 }
 0x74d   : > { %4678 = vrsqrt.f32 %v2190_v48 }
 0x74e   : > { %v4675_v2 = vpop.eup %4674  ;;  %v2191_v43 = vadd.f32 1e-05, %v2159_v12  ;;  %v1977_v27 = vpop.xlane.xlu0 %1976 }
 0x74f   : > { %v2252_v33 = vmul.f32 %v4675_v2, %v6021_v8  ;;  %v2018_v21 = vmul.f32 0.0078125, %v1977_v27 }
 0x750   : > { %4680 = vrsqrt.f32 %v2191_v43 }
 0x751   : > { %v4677_v0 = vpop.eup %4676  ;;  %v6310_v47 = vsub.f32 %v6093_v57, %v2018_v21  ;;  %v1979_v39 = vpop.xlane.xlu1 %1978  ;;  %v2288_v4 = vmul.f32 %v6305_v62, %v2252_v33 }
 0x752   : > { %v2253_v48 = vmul.f32 %v4677_v0, %v6027_v22  ;;  %v2019_v12 = vmul.f32 0.0078125, %v1979_v39 }
 0x753   : > { %v2082_v17 = vmul.f32 %v6310_v47, %v6310_v47  ;;  %v2324_v22 = vadd.f32 %v6314_v40, %v2288_v4 }
 0x754   : > { %v6319_v25 = vsub.f32 %v6104_v28, %v2019_v12  ;;  %v2101_v8 = vpop.xlane.xlu0 %2100  ;;  %v2289_v2 = vmul.f32 %v6305_v62, %v2253_v48 }
 0x755   : > { %v2160_v43 = vmul.f32 0.0078125, %v2101_v8  ;;  %2136 = vadd.xlane.f32.xlu0 %v2082_v17  ;;  %v7008_v17 = vmov 0  }
 0x756   : > { %v2083_v21 = vmul.f32 %v6319_v25, %v6319_v25  ;;  %v2325_v27 = vadd.f32 %v6314_v40, %v2289_v2 }
 0x757   : > { %v2192_v13 = vadd.f32 1e-05, %v2160_v43  ;;  %v2103_v41 = vpop.xlane.xlu1 %2102 }
 0x758   : > { %v2161_v33 = vmul.f32 0.0078125, %v2103_v41  ;;  %2138 = vadd.xlane.f32.xlu1 %v2083_v21  ;;  %v2356_v0 = vpack.c.bf16 %v2325_v27, %v2324_v22 }
 0x759   : > { %4682 = vrsqrt.f32 %v2192_v13 }
 0x75a   : > { %v4679_v39 = vpop.eup %4678  ;;  %v2193_v12 = vadd.f32 1e-05, %v2161_v33  ;;  %2619 = vmatmul.mubr.bf16.vlgmr.msra.gmra.mxu1 %v2356_v0  ;;  %2812 = vmatmul.mubr.bf16.vlgmr.msra.gmra.mxu0 %v2356_v0  ;;  %v1981_v48 = vpop.xlane.xlu0 %1980 }
 0x75b   : > { %v2020_v8 = vmul.f32 0.0078125, %v1981_v48  ;;  %2628 = vmatprep.mubr.bf16.mxu1 %v7008_v17  ;;  %2821 = vmatprep.mubr.bf16.mxu0 %v7008_v17  ;;  %v2254_v4 = vmul.f32 %v4679_v39, %v6055_v18 }
 0x75c   : > { %4684 = vrsqrt.f32 %v2193_v12 }
 0x75d   : > { %v4681_v2 = vpop.eup %4680  ;;  %v6330_v43 = vsub.f32 %v6151_v37, %v2020_v8  ;;  %v1983_v21 = vpop.xlane.xlu1 %1982  ;;  %v2290_v13 = vmul.f32 %v6305_v62, %v2254_v4 }
 0x75e   : > { %v2021_v22 = vmul.f32 0.0078125, %v1983_v21  ;;  %v2255_v27 = vmul.f32 %v4681_v2, %v6067_v49 }
 0x75f   : > { %v2084_v41 = vmul.f32 %v6330_v43, %v6330_v43  ;;  %v2326_v48 = vadd.f32 %v6314_v40, %v2290_v13 }
 0x760   : > { %v6337_v33 = vsub.f32 %v6162_v35, %v2021_v22  ;;  %v2105_v0 = vpop.xlane.xlu0 %2104  ;;  %v2291_v18 = vmul.f32 %v6305_v62, %v2255_v27 }
 0x761   : > { %v2162_v39 = vmul.f32 0.0078125, %v2105_v0  ;;  %2140 = vadd.xlane.f32.xlu0 %v2084_v41 }
 0x762   : > { %v2085_v12 = vmul.f32 %v6337_v33, %v6337_v33  ;;  %v2327_v49 = vadd.f32 %v6314_v40, %v2291_v18 }
 0x763   : > { %v2194_v8 = vadd.f32 1e-05, %v2162_v39  ;;  %v2107_v4 = vpop.xlane.xlu1 %2106 }
 0x764   : > { %v2163_v2 = vmul.f32 0.0078125, %v2107_v4  ;;  %2142 = vadd.xlane.f32.xlu1 %v2085_v12  ;;  %v2357_v21 = vpack.c.bf16 %v2327_v49, %v2326_v48 }
 0x765   : > { %4686 = vrsqrt.f32 %v2194_v8 }
 0x766   : > { %v4683_v22 = vpop.eup %4682  ;;  %v2195_v35 = vadd.f32 1e-05, %v2163_v2  ;;  %2629 = vmatmul.mubr.bf16.gmra.mxu1 %v2357_v21  ;;  %2822 = vmatmul.mubr.bf16.gmra.mxu0 %v2357_v21  ;;  %v1985_v27 = vpop.xlane.xlu0 %1984 }
 0x767   : > { %v2022_v0 = vmul.f32 0.0078125, %v1985_v27  ;;  %2638 = vmatprep.mubr.bf16.mxu1 %v7008_v17  ;;  %2831 = vmatprep.mubr.bf16.mxu0 %v7008_v17  ;;  %v2256_v13 = vmul.f32 %v4683_v22, %v6113_v61 }
 0x768   : > { %4688 = vrsqrt.f32 %v2195_v35 }
 0x769   : > { %v4685_v41 = vpop.eup %4684  ;;  %v6348_v18 = vsub.f32 %v6198_v31, %v2022_v0  ;;  %v1987_v39 = vpop.xlane.xlu1 %1986  ;;  %v2292_v49 = vmul.f32 %v6305_v62, %v2256_v13 }
 0x76a   : > { %v2023_v12 = vmul.f32 0.0078125, %v1987_v39  ;;  %v2257_v48 = vmul.f32 %v4685_v41, %v6125_v32 }
 0x76b   : > { %v2086_v8 = vmul.f32 %v6348_v18, %v6348_v18  ;;  %v2328_v22 = vadd.f32 %v6314_v40, %v2292_v49 }
 0x76c   : > { %v6355_v4 = vsub.f32 %v6204_v50, %v2023_v12  ;;  %v2109_v2 = vpop.xlane.xlu0 %2108  ;;  %v2293_v61 = vmul.f32 %v6305_v62, %v2257_v48 }
 0x76d   : > { %v2164_v35 = vmul.f32 0.0078125, %v2109_v2  ;;  %2144 = vadd.xlane.f32.xlu0 %v2086_v8 }
 0x76e   : > { %v2087_v21 = vmul.f32 %v6355_v4, %v6355_v4  ;;  %v2329_v32 = vadd.f32 %v6314_v40, %v2293_v61 }
 0x76f   : > { %v2196_v27 = vadd.f32 1e-05, %v2164_v35  ;;  %v2111_v0 = vpop.xlane.xlu1 %2110 }
 0x770   : > { %v2165_v13 = vmul.f32 0.0078125, %v2111_v0  ;;  %2146 = vadd.xlane.f32.xlu1 %v2087_v21  ;;  %v2358_v41 = vpack.c.bf16 %v2329_v32, %v2328_v22 }
 0x771   : > { %4690 = vrsqrt.f32 %v2196_v27 }
 0x772   : > { %v4687_v39 = vpop.eup %4686  ;;  %v2197_v12 = vadd.f32 1e-05, %v2165_v13  ;;  %2639 = vmatmul.mubr.bf16.gmra.mxu1 %v2358_v41  ;;  %2832 = vmatmul.mubr.bf16.gmra.mxu0 %v2358_v41  ;;  %v1989_v48 = vpop.xlane.xlu0 %1988 }
 0x773   : > { %v2024_v2 = vmul.f32 0.0078125, %v1989_v48  ;;  %2648 = vmatprep.mubr.bf16.mxu1 %v7008_v17  ;;  %2841 = vmatprep.mubr.bf16.mxu0 %v7008_v17  ;;  %v2258_v49 = vmul.f32 %v4687_v39, %v6171_v5 }
 0x774   : > { %4692 = vrsqrt.f32 %v2197_v12 }
 0x775   : > { %v4689_v8 = vpop.eup %4688  ;;  %v6366_v61 = vsub.f32 %v6224_v16, %v2024_v2  ;;  %v1991_v35 = vpop.xlane.xlu1 %1990  ;;  %v2294_v27 = vmul.f32 %v6305_v62, %v2258_v49 }
 0x776   : > { %v2025_v21 = vmul.f32 0.0078125, %v1991_v35  ;;  %v2113_v22 = vpop.xlane.xlu0 %2112  ;;  %v2259_v32 = vmul.f32 %v4689_v8, %v6183_v15 }
 0x777   : > { %v2166_v0 = vmul.f32 0.0078125, %v2113_v22  ;;  %v2088_v13 = vmul.f32 %v6366_v61, %v6366_v61  ;;  %v2330_v15 = vadd.f32 %v6314_v40, %v2294_v27 }
 0x778   : > { %v6373_v41 = vsub.f32 %v6232_v30, %v2025_v21  ;;  %v2295_v5 = vmul.f32 %v6305_v62, %v2259_v32 }
 0x779   : > { %v2198_v39 = vadd.f32 1e-05, %v2166_v0  ;;  %v2115_v12 = vpop.xlane.xlu1 %2114  ;;  %2148 = vadd.xlane.f32.xlu0 %v2088_v13 }
 0x77a   : > { %v2167_v48 = vmul.f32 0.0078125, %v2115_v12  ;;  %v2089_v2 = vmul.f32 %v6373_v41, %v6373_v41  ;;  %v2331_v49 = vadd.f32 %v6314_v40, %v2295_v5 }
 0x77b   : > { %4694 = vrsqrt.f32 %v2198_v39 }
 0x77c   : > { %v2199_v8 = vadd.f32 1e-05, %v2167_v48  ;;  %2150 = vadd.xlane.f32.xlu1 %v2089_v2  ;;  %v2359_v35 = vpack.c.bf16 %v2331_v49, %v2330_v15  ;;  %v4452_v49 = vld [vmem:[%s6870_s6 + $0xf8] sm:$0xff]  }
 0x77d   : > { %4168 = vmatprep.subr.bf16.mxu0 %v4452_v49 }
 0x77e   : > { %v4691_v22 = vpop.eup %4690  ;;  %4696 = vrsqrt.f32 %v2199_v8  ;;  %2649 = vmatmul.mubr.bf16.gmra.mxu1 %v2359_v35  ;;  %2842 = vmatmul.mubr.bf16.gmra.mxu0 %v2359_v35 }
 0x77f   : > { %2658 = vmatprep.mubr.bf16.mxu1 %v7008_v17  ;;  %2851 = vmatprep.mubr.bf16.mxu0 %v7008_v17  ;;  %v2260_v21 = vmul.f32 %v4691_v22, %v6207_v45  ;;  %v4450_v45 = vld [vmem:[%s6870_s6 + $0x78] sm:$0xff]  }
 0x780   : > { %4056 = vmatprep.subr.bf16.mxu1 %v4450_v45 }
 0x781   : > { %v4693_v32 = vpop.eup %4692  ;;  %v2296_v27 = vmul.f32 %v6305_v62, %v2260_v21 }
 0x782   : > { %v2261_v0 = vmul.f32 %v4693_v32, %v6213_v54  ;;  %v4451_v54 = vld [vmem:[%s6870_s6 + $0x38] sm:$0xff]  }
 0x783   : > { %v2332_v5 = vadd.f32 %v6314_v40, %v2296_v27  ;;  %4057 = vmatpush3.bf16.msra.mxu1 %v4451_v54 }
 0x784   : > { %v2297_v13 = vmul.f32 %v6305_v62, %v2261_v0 }
 0x786   : > { %v2333_v39 = vadd.f32 %v6314_v40, %v2297_v13 }
 0x788   : > { %v4695_v12 = vpop.eup %4694  ;;  %v2360_v48 = vpack.c.bf16 %v2333_v39, %v2332_v5 }
 0x789   : > { %v2262_v2 = vmul.f32 %v4695_v12, %v6221_v14  ;;  %v4453_v14 = vld [vmem:[%s6870_s6 + $0xb8] sm:$0xff]  }
 0x78a   : > { %2659 = vmatmul.mubr.bf16.gmra.mxu1 %v2360_v48  ;;  %2852 = vmatmul.mubr.bf16.gmra.mxu0 %v2360_v48  ;;  %v1993_v15 = vpop.xlane.xlu0 %1992 }
 0x78b   : > { %v4697_v8 = vpop.eup %4696  ;;  %v2026_v35 = vmul.f32 0.0078125, %v1993_v15  ;;  %2668 = vmatprep.mubr.bf16.mxu1 %v7008_v17  ;;  %2861 = vmatprep.mubr.bf16.mxu0 %v7008_v17  ;;  %v2298_v21 = vmul.f32 %v6305_v62, %v2262_v2 }
 0x78c   : > { %v2263_v22 = vmul.f32 %v4697_v8, %v6229_v1  ;;  %4169 = vmatpush3.bf16.msra.mxu0 %v4453_v14 }
 0x78d   : > { %v6406_v32 = vsub.f32 %v6246_v56, %v2026_v35  ;;  %v1995_v0 = vpop.xlane.xlu1 %1994  ;;  %v2334_v48 = vadd.f32 %v6314_v40, %v2298_v21 }
 0x78e   : > { %v2027_v27 = vmul.f32 0.0078125, %v1995_v0  ;;  %v2117_v13 = vpop.xlane.xlu0 %2116  ;;  %v2299_v5 = vmul.f32 %v6305_v62, %v2263_v22 }
 0x78f   : > { %v2168_v39 = vmul.f32 0.0078125, %v2117_v13  ;;  %v2090_v12 = vmul.f32 %v6406_v32, %v6406_v32 }
 0x790   : > { %v6412_v1 = vsub.f32 %v6254_v58, %v2027_v27  ;;  %v2335_v2 = vadd.f32 %v6314_v40, %v2299_v5 }
 0x791   : > { %v2200_v15 = vadd.f32 1e-05, %v2168_v39  ;;  %v2119_v45 = vpop.xlane.xlu1 %2118  ;;  %2152 = vadd.xlane.f32.xlu0 %v2090_v12  ;;  %v4454_v12 = vld [vmem:[%s6870_s6 + $0x70] sm:$0xff]  }
 0x792   : > { %v2169_v54 = vmul.f32 0.0078125, %v2119_v45  ;;  %v2121_v49 = vpop.xlane.xlu0 %2120  ;;  %v2091_v8 = vmul.f32 %v6412_v1, %v6412_v1  ;;  %v2361_v35 = vpack.c.bf16 %v2335_v2, %v2334_v48  ;;  %v4455_v2 = vld [vmem:[%s6870_s6 + $0x30] sm:$0xff]   ;;  %4058 = vmatprep.subr.bf16.mxu1 %v4454_v12 }
 0x793   : > { %4698 = vrsqrt.f32 %v2200_v15  ;;  %v2170_v14 = vmul.f32 0.0078125, %v2121_v49  ;;  %v4456_v15 = vld [vmem:[%s6870_s6 + $0xf0] sm:$0xff]   ;;  %4059 = vmatpush3.bf16.msra.mxu1 %v4455_v2  ;;  %v4464_v2 = vld [vmem:[%s6870_s6 + $0x20] sm:$0xff]  }
 0x794   : > { %v2201_v22 = vadd.f32 1e-05, %v2169_v54  ;;  %2154 = vadd.xlane.f32.xlu1 %v2091_v8  ;;  %2669 = vmatmul.mubr.bf16.gmra.mxu1 %v2361_v35  ;;  %v4457_v45 = vld [vmem:[%s6870_s6 + $0xb0] sm:$0xff]  }
 0x795   : > { %v2202_v0 = vadd.f32 1e-05, %v2170_v14  ;;  %2862 = vmatmul.mubr.bf16.gmra.mxu0 %v2361_v35  ;;  %v2123_v27 = vpop.xlane.xlu1 %2122  ;;  %2678 = vmatprep.mubr.bf16.mxu1 %v7008_v17  ;;  %v4458_v14 = vld [vmem:[%s6870_s6 + $0x68] sm:$0xff]  }
 0x796   : > { %4700 = vrsqrt.f32 %v2201_v22  ;;  %v2171_v21 = vmul.f32 0.0078125, %v2123_v27  ;;  %2871 = vmatprep.mubr.bf16.mxu0 %v7008_v17  ;;  %4170 = vmatprep.subr.bf16.mxu0 %v4456_v15  ;;  %v4459_v22 = vld [vmem:[%s6870_s6 + $0xe8] sm:$0xff]   ;;  %v4465_v15 = vld [vmem:[%s6870_s6 + $0xa0] sm:$0xff]  }
 0x797   : > { %4702 = vrsqrt.f32 %v2202_v0  ;;  %4171 = vmatpush3.bf16.msra.mxu0 %v4457_v45  ;;  %4060 = vmatprep.subr.bf16.mxu1 %v4458_v14 }
 0x798   : > { %v2203_v13 = vadd.f32 1e-05, %v2171_v21  ;;  %4172 = vmatprep.subr.bf16.mxu0 %v4459_v22  ;;  %v4470_v22 = vld [vmem:[%s6870_s6 + $0x50] sm:$0xff]  }
 0x79a   : > { %4704 = vrsqrt.f32 %v2203_v13  ;;  %v4460_v13 = vld [vmem:[%s6870_s6 + $0x28] sm:$0xff]  }
 0x79b   : > { %4061 = vmatpush3.bf16.msra.mxu1 %v4460_v13  ;;  %v4475_v13 = vld [vmem:[%s6870_s6 + $0xc8] sm:$0xff]  }
 0x7a0   : > { %v4699_v5 = vpop.eup %4698 }
 0x7a1   : > { %v2264_v39 = vmul.f32 %v4699_v5, %v6243_v9  ;;  %v4461_v5 = vld [vmem:[%s6870_s6 + $0xa8] sm:$0xff]  }
 0x7a2   : > { %4173 = vmatpush3.bf16.msra.mxu0 %v4461_v5  ;;  %v4476_v5 = vld [vmem:[%s6870_s6 + $0x8] sm:$0xff]  }
 0x7a3   : > { %v4701_v48 = vpop.eup %4700  ;;  %v2300_v9 = vmul.f32 %v6305_v62, %v2264_v39 }
 0x7a4   : > { %v2265_v54 = vmul.f32 %v4701_v48, %v6251_v11  ;;  %v4703_v49 = vpop.eup %4702 }
 0x7a5   : > { %v2336_v11 = vadd.f32 %v6314_v40, %v2300_v9  ;;  %v2266_v27 = vmul.f32 %v4703_v49, %v6257_v42  ;;  %v4462_v42 = vld [vmem:[%s6870_s6 + $0x60] sm:$0xff]   ;;  %v4467_v9 = vld [vmem:[%s6870_s6 + $0xd8] sm:$0xff]  }
 0x7a6   : > { %v2301_v8 = vmul.f32 %v6305_v62, %v2265_v54  ;;  %4062 = vmatprep.subr.bf16.mxu1 %v4462_v42  ;;  %v4466_v54 = vld [vmem:[%s6870_s6 + $0x58] sm:$0xff]   ;;  %v4479_v42 = vld [vmem:[%s6870_s6 + $0xc0] sm:$0xff]  }
 0x7a7   : > { %v4705_v35 = vpop.eup %4704  ;;  %v2302_v48 = vmul.f32 %v6305_v62, %v2266_v27  ;;  %4063 = vmatpush3.bf16.msra.mxu1 %v4464_v2  ;;  %v4468_v49 = vld [vmem:[%s6870_s6 + $0x18] sm:$0xff]   ;;  %v4473_v27 = vld [vmem:[%s6870_s6 + $0x90] sm:$0xff]  }
 0x7a8   : > { %v2337_v0 = vadd.f32 %v6314_v40, %v2301_v8  ;;  %v2267_v21 = vmul.f32 %v4705_v35, %v6263_v51  ;;  %v4463_v51 = vld [vmem:[%s6870_s6 + $0xe0] sm:$0xff]   ;;  %v4469_v35 = vld [vmem:[%s6870_s6 + $0x98] sm:$0xff]   ;;  %4064 = vmatprep.subr.bf16.mxu1 %v4466_v54 }
 0x7a9   : > { %4174 = vmatprep.subr.bf16.mxu0 %v4463_v51  ;;  %v2338_v8 = vadd.f32 %v6314_v40, %v2302_v48  ;;  %v4480_v51 = vld [vmem:[%s6870_s6] sm:$0xff]  }
 0x7aa   : > { %v2362_v39 = vpack.c.bf16 %v2337_v0, %v2336_v11  ;;  %v2303_v12 = vmul.f32 %v6305_v62, %v2267_v21  ;;  %4175 = vmatpush3.bf16.msra.mxu0 %v4465_v15  ;;  %v4471_v11 = vld [vmem:[%s6870_s6 + $0xd0] sm:$0xff]   ;;  %v4474_v21 = vld [vmem:[%s6870_s6 + $0x48] sm:$0xff]   ;;  %v4481_v48 = vld [vmem:[%s6870_s6 + $0x80] sm:$0xff]  }
 0x7ab   : > { %4176 = vmatprep.subr.bf16.mxu0 %v4467_v9  ;;  %4065 = vmatpush3.bf16.msra.mxu1 %v4468_v49  ;;  %v4472_v0 = vld [vmem:[%s6870_s6 + $0x10] sm:$0xff]  }
 0x7ac   : > { %2679 = vmatmul.mubr.bf16.gmra.mxu1 %v2362_v39  ;;  %2872 = vmatmul.mubr.bf16.gmra.mxu0 %v2362_v39  ;;  %v2339_v45 = vadd.f32 %v6314_v40, %v2303_v12  ;;  %v4477_v39 = vld [vmem:[%s6870_s6 + $0x88] sm:$0xff]   ;;  %v4478_v12 = vld [vmem:[%s6870_s6 + $0x40] sm:$0xff]  }
 0x7ad   : > { %2688 = vmatprep.mubr.bf16.mxu1 %v7008_v17  ;;  %2881 = vmatprep.mubr.bf16.mxu0 %v7008_v17 }
 0x7ae   : > { %v2363_v14 = vpack.c.bf16 %v2339_v45, %v2338_v8  ;;  %4177 = vmatpush3.bf16.msra.mxu0 %v4469_v35  ;;  %4066 = vmatprep.subr.bf16.mxu1 %v4470_v22 }
 0x7af   : > { %4178 = vmatprep.subr.bf16.mxu0 %v4471_v11  ;;  %4067 = vmatpush3.bf16.msra.mxu1 %v4472_v0 }
 0x7b0   : > { %4068 = vmatprep.subr.bf16.mxu1 %v4474_v21 }
 0x7b2   : > { %4179 = vmatpush3.bf16.msra.mxu0 %v4473_v27 }
 0x7b3   : > { %4180 = vmatprep.subr.bf16.mxu0 %v4475_v13  ;;  %4069 = vmatpush3.bf16.msra.mxu1 %v4476_v5 }
 0x7b4   : > { %2689 = vmatmul.mubr.bf16.gmra.mxu1 %v2363_v14  ;;  %2882 = vmatmul.mubr.bf16.gmra.mxu0 %v2363_v14 }
 0x7b5   : > { %2698 = vmatprep.mubr.bf16.mxu1 %v7008_v17  ;;  %2891 = vmatprep.mubr.bf16.mxu0 %v7008_v17 }
 0x7b6   : > { %4181 = vmatpush3.bf16.msra.mxu0 %v4477_v39  ;;  %4070 = vmatprep.subr.bf16.mxu1 %v4478_v12 }
 0x7b7   : > { %4182 = vmatprep.subr.bf16.mxu0 %v4479_v42  ;;  %4071 = vmatpush3.bf16.msra.mxu1 %v4480_v51 }
 0x7ba   : > { %4183 = vmatpush3.bf16.msra.mxu0 %v4481_v48 }
 0x7be   : > { %v2127_v2 = vpop.xlane.xlu1 %2126 }
 0x7bf   : > { %v2173_v15 = vmul.f32 0.0078125, %v2127_v2 }
 0x7c1   : > { %v2205_v45 = vadd.f32 1e-05, %v2173_v15  ;;  %v2125_v54 = vpop.xlane.xlu0 %2124 }
 0x7c2   : > { %v2172_v9 = vmul.f32 0.0078125, %v2125_v54 }
 0x7c3   : > { %4706 = vrsqrt.f32 %v2205_v45 }
 0x7c4   : > { %v2204_v49 = vadd.f32 1e-05, %v2172_v9 }
 0x7c6   : > { %4708 = vrsqrt.f32 %v2204_v49  ;;  %v2129_v8 = vpop.xlane.xlu0 %2128 }
 0x7c7   : > { %v2174_v35 = vmul.f32 0.0078125, %v2129_v8 }
 0x7c9   : > { %v2206_v14 = vadd.f32 1e-05, %v2174_v35  ;;  %v2131_v22 = vpop.xlane.xlu1 %2130 }
 0x7ca   : > { %v2175_v11 = vmul.f32 0.0078125, %v2131_v22 }
 0x7cb   : > { %4710 = vrsqrt.f32 %v2206_v14 }
 0x7cc   : > { %v2207_v0 = vadd.f32 1e-05, %v2175_v11 }
 0x7ce   : > { %4712 = vrsqrt.f32 %v2207_v0 }
 0x7d0   : > { %v4707_v27 = vpop.eup %4706 }
 0x7d1   : > { %v2269_v21 = vmul.f32 %v4707_v27, %v6272_v19 }
 0x7d2   : > { %v2133_v13 = vpop.xlane.xlu0 %2132 }
 0x7d3   : > { %v4709_v5 = vpop.eup %4708  ;;  %v2176_v39 = vmul.f32 0.0078125, %v2133_v13  ;;  %v2305_v42 = vmul.f32 %v6305_v62, %v2269_v21 }
 0x7d4   : > { %v2268_v12 = vmul.f32 %v4709_v5, %v6277_v53 }
 0x7d5   : > { %v2208_v51 = vadd.f32 1e-05, %v2176_v39  ;;  %v2135_v48 = vpop.xlane.xlu1 %2134  ;;  %v2341_v49 = vadd.f32 %v6314_v40, %v2305_v42 }
 0x7d6   : > { %v2177_v2 = vmul.f32 0.0078125, %v2135_v48  ;;  %v2304_v15 = vmul.f32 %v6305_v62, %v2268_v12 }
 0x7d7   : > { %4714 = vrsqrt.f32 %v2208_v51 }
 0x7d8   : > { %v4711_v45 = vpop.eup %4710  ;;  %v2209_v54 = vadd.f32 1e-05, %v2177_v2  ;;  %v2340_v9 = vadd.f32 %v6314_v40, %v2304_v15 }
 0x7d9   : > { %v2270_v19 = vmul.f32 %v4711_v45, %v6282_v55 }
 0x7da   : > { %4716 = vrsqrt.f32 %v2209_v54  ;;  %v2364_v8 = vpack.c.bf16 %v2341_v49, %v2340_v9 }
 0x7db   : > { %v4713_v35 = vpop.eup %4712  ;;  %v2306_v14 = vmul.f32 %v6305_v62, %v2270_v19 }
 0x7dc   : > { %2699 = vmatmul.mubr.bf16.gmra.mxu1 %v2364_v8  ;;  %2892 = vmatmul.mubr.bf16.gmra.mxu0 %v2364_v8  ;;  %v2271_v53 = vmul.f32 %v4713_v35, %v6287_v63 }
 0x7dd   : > { %2708 = vmatprep.mubr.bf16.mxu1 %v7008_v17  ;;  %2901 = vmatprep.mubr.bf16.mxu0 %v7008_v17  ;;  %v2342_v27 = vadd.f32 %v6314_v40, %v2306_v14 }
 0x7de   : > { %v2137_v22 = vpop.xlane.xlu0 %2136  ;;  %v2307_v11 = vmul.f32 %v6305_v62, %v2271_v53 }
 0x7df   : > { %v2178_v0 = vmul.f32 0.0078125, %v2137_v22 }
 0x7e0   : > { %v2343_v55 = vadd.f32 %v6314_v40, %v2307_v11 }
 0x7e1   : > { %v2210_v21 = vadd.f32 1e-05, %v2178_v0  ;;  %v2139_v13 = vpop.xlane.xlu1 %2138 }
 0x7e2   : > { %v2179_v5 = vmul.f32 0.0078125, %v2139_v13  ;;  %v2365_v39 = vpack.c.bf16 %v2343_v55, %v2342_v27 }
 0x7e3   : > { %4718 = vrsqrt.f32 %v2210_v21 }
 0x7e4   : > { %v4715_v63 = vpop.eup %4714  ;;  %v2211_v12 = vadd.f32 1e-05, %v2179_v5  ;;  %2709 = vmatmul.mubr.bf16.gmra.mxu1 %v2365_v39  ;;  %2902 = vmatmul.mubr.bf16.gmra.mxu0 %v2365_v39 }
 0x7e5   : > { %2718 = vmatprep.mubr.bf16.mxu1 %v7008_v17  ;;  %2911 = vmatprep.mubr.bf16.mxu0 %v7008_v17  ;;  %v2272_v42 = vmul.f32 %v4715_v63, %v6292_v7 }
 0x7e6   : > { %4720 = vrsqrt.f32 %v2211_v12 }
 0x7e7   : > { %v4717_v51 = vpop.eup %4716  ;;  %v2308_v2 = vmul.f32 %v6305_v62, %v2272_v42 }
 0x7e8   : > { %v2273_v48 = vmul.f32 %v4717_v51, %v6297_v36 }
 0x7e9   : > { %v2344_v9 = vadd.f32 %v6314_v40, %v2308_v2 }
 0x7ea   : > { %v2141_v15 = vpop.xlane.xlu0 %2140  ;;  %v2309_v45 = vmul.f32 %v6305_v62, %v2273_v48 }
 0x7eb   : > { %v2180_v54 = vmul.f32 0.0078125, %v2141_v15 }
 0x7ec   : > { %v2345_v49 = vadd.f32 %v6314_v40, %v2309_v45 }
 0x7ed   : > { %v2212_v19 = vadd.f32 1e-05, %v2180_v54  ;;  %v2143_v8 = vpop.xlane.xlu1 %2142 }
 0x7ee   : > { %v2181_v35 = vmul.f32 0.0078125, %v2143_v8  ;;  %v2366_v53 = vpack.c.bf16 %v2345_v49, %v2344_v9 }
 0x7ef   : > { %4722 = vrsqrt.f32 %v2212_v19 }
 0x7f0   : > { %v4719_v7 = vpop.eup %4718  ;;  %v2213_v14 = vadd.f32 1e-05, %v2181_v35  ;;  %2719 = vmatmul.mubr.bf16.gmra.mxu1 %v2366_v53  ;;  %2912 = vmatmul.mubr.bf16.gmra.mxu0 %v2366_v53 }
 0x7f1   : > { %2728 = vmatprep.mubr.bf16.mxu1 %v7008_v17  ;;  %2921 = vmatprep.mubr.bf16.mxu0 %v7008_v17  ;;  %v2274_v36 = vmul.f32 %v4719_v7, %v6310_v47 }
 0x7f2   : > { %4724 = vrsqrt.f32 %v2213_v14 }
 0x7f3   : > { %v4721_v22 = vpop.eup %4720  ;;  %v2310_v0 = vmul.f32 %v6305_v62, %v2274_v36 }
 0x7f4   : > { %v2275_v11 = vmul.f32 %v4721_v22, %v6319_v25 }
 0x7f5   : > { %v2346_v13 = vadd.f32 %v6314_v40, %v2310_v0 }
 0x7f6   : > { %v2145_v27 = vpop.xlane.xlu0 %2144  ;;  %v2311_v55 = vmul.f32 %v6305_v62, %v2275_v11 }
 0x7f7   : > { %v2182_v21 = vmul.f32 0.0078125, %v2145_v27 }
 0x7f8   : > { %v2347_v5 = vadd.f32 %v6314_v40, %v2311_v55 }
 0x7f9   : > { %v2214_v39 = vadd.f32 1e-05, %v2182_v21  ;;  %v2147_v63 = vpop.xlane.xlu1 %2146 }
 0x7fa   : > { %v2183_v12 = vmul.f32 0.0078125, %v2147_v63  ;;  %v2367_v42 = vpack.c.bf16 %v2347_v5, %v2346_v13 }
 0x7fb   : > { %4726 = vrsqrt.f32 %v2214_v39 }
 0x7fc   : > { %v4723_v47 = vpop.eup %4722  ;;  %v2215_v51 = vadd.f32 1e-05, %v2183_v12  ;;  %2729 = vmatmul.mubr.bf16.gmra.mxu1 %v2367_v42  ;;  %2922 = vmatmul.mubr.bf16.gmra.mxu0 %v2367_v42 }
 0x7fd   : > { %2738 = vmatprep.mubr.bf16.mxu1 %v7008_v17  ;;  %2931 = vmatprep.mubr.bf16.mxu0 %v7008_v17  ;;  %v2276_v25 = vmul.f32 %v4723_v47, %v6330_v43 }
 0x7fe   : > { %4728 = vrsqrt.f32 %v2215_v51 }
 0x7ff   : > { %v4725_v48 = vpop.eup %4724  ;;  %v2312_v15 = vmul.f32 %v6305_v62, %v2276_v25 }
 0x800   : > { %v2277_v2 = vmul.f32 %v4725_v48, %v6337_v33 }
 0x801   : > { %v2348_v49 = vadd.f32 %v6314_v40, %v2312_v15 }
 0x802   : > { %v2149_v45 = vpop.xlane.xlu0 %2148  ;;  %v2313_v54 = vmul.f32 %v6305_v62, %v2277_v2 }
 0x803   : > { %v2184_v9 = vmul.f32 0.0078125, %v2149_v45 }
 0x804   : > { %v2349_v19 = vadd.f32 %v6314_v40, %v2313_v54 }
 0x805   : > { %v2216_v8 = vadd.f32 1e-05, %v2184_v9  ;;  %v2151_v35 = vpop.xlane.xlu1 %2150 }
 0x806   : > { %v2185_v53 = vmul.f32 0.0078125, %v2151_v35  ;;  %v2368_v7 = vpack.c.bf16 %v2349_v19, %v2348_v49 }
 0x807   : > { %4730 = vrsqrt.f32 %v2216_v8 }
 0x808   : > { %v4727_v43 = vpop.eup %4726  ;;  %v2217_v14 = vadd.f32 1e-05, %v2185_v53  ;;  %2739 = vmatmul.mubr.bf16.gmra.mxu1 %v2368_v7  ;;  %2932 = vmatmul.mubr.bf16.gmra.mxu0 %v2368_v7 }
 0x809   : > { %2748 = vmatprep.mubr.bf16.mxu1 %v7008_v17  ;;  %2941 = vmatprep.mubr.bf16.mxu0 %v7008_v17  ;;  %v2278_v33 = vmul.f32 %v4727_v43, %v6348_v18 }
 0x80a   : > { %4732 = vrsqrt.f32 %v2217_v14 }
 0x80b   : > { %v4729_v36 = vpop.eup %4728  ;;  %v2314_v11 = vmul.f32 %v6305_v62, %v2278_v33  ;;  %v2404_v33 = vld [vmem:[%s6869_s5] sm:$0xf] }
 0x80c   : > { %v2279_v22 = vmul.f32 %v4729_v36, %v6355_v4 }
 0x80d   : > { %v2350_v27 = vadd.f32 %v6314_v40, %v2314_v11 }
 0x80e   : > { %v2315_v0 = vmul.f32 %v6305_v62, %v2279_v22 }
 0x810   : > { %v2351_v55 = vadd.f32 %v6314_v40, %v2315_v0  ;;  %v7009_v0 = vsub.s32 1, %v6962_v52 }
 0x812   : > { %v2369_v21 = vpack.c.bf16 %v2351_v55, %v2350_v27  ;;  %v6589_v27 = vrot.slane %v2404_v33, %v7009_v0 }
 0x814   : > { %v4731_v13 = vpop.eup %4730  ;;  %2749 = vmatmul.mubr.bf16.gmra.mxu1 %v2369_v21  ;;  %2942 = vmatmul.mubr.bf16.gmra.mxu0 %v2369_v21 }
 0x815   : > { %2758 = vmatprep.mubr.bf16.mxu1 %v7008_v17  ;;  %2951 = vmatprep.mubr.bf16.mxu0 %v7008_v17  ;;  %v2280_v18 = vmul.f32 %v4731_v13, %v6366_v61 }
 0x817   : > { %v4733_v5 = vpop.eup %4732  ;;  %v2316_v39 = vmul.f32 %v6305_v62, %v2280_v18 }
 0x818   : > { %v2281_v4 = vmul.f32 %v4733_v5, %v6373_v41 }
 0x819   : > { %v2352_v2 = vadd.f32 %v6314_v40, %v2316_v39 }
 0x81a   : > { %v6571_v63 = vpop.f32.mrf.mxu1  ;;  %v6573_v12 = vpop.f32.mrf.mxu0  ;;  %v2317_v42 = vmul.f32 %v6305_v62, %v2281_v4 }
 0x81b   : > { %v2153_v47 = vpop.xlane.xlu0 %2152 }
 0x81c   : > { %v2186_v51 = vmul.f32 0.0078125, %v2153_v47  ;;  %v2622_v25 = vpop.f32.mrf.mxu1  ;;  %v2815_v48 = vpop.f32.mrf.mxu0  ;;  %v2353_v15 = vadd.f32 %v6314_v40, %v2317_v42 }
 0x81d   : > { %v2155_v61 = vpop.xlane.xlu1 %2154 }
 0x81e   : > { %v2218_v45 = vadd.f32 1e-05, %v2186_v51  ;;  %v2187_v54 = vmul.f32 0.0078125, %v2155_v61  ;;  %v2370_v41 = vpack.c.bf16 %v2353_v15, %v2352_v2  ;;  %v2624_v49 = vpop.f32.mrf.mxu1  ;;  %v2817_v19 = vpop.f32.mrf.mxu0  ;;  %v2623_v51 = vadd.f32 %v2622_v25, %v6589_v27 }
 0x820   : > { %4734 = vrsqrt.f32 %v2218_v45  ;;  %v2219_v9 = vadd.f32 1e-05, %v2187_v54  ;;  %2759 = vmatmul.mubr.bf16.gmra.mxu1 %v2370_v41  ;;  %2952 = vmatmul.mubr.bf16.gmra.mxu0 %v2370_v41  ;;  %v2626_v8 = vpop.f32.mrf.mxu1  ;;  %v2819_v35 = vpop.f32.mrf.mxu0  ;;  %v7011_v41 = vsub.s32 0, %v6962_v52  ;;  %v2973_v0 = vmax.f32 %v2623_v51, 0.0 }
 0x821   : > { %2768 = vmatprep.mubr.bf16.mxu1 %v7008_v17  ;;  %2961 = vmatprep.mubr.bf16.mxu0 %v7008_v17  ;;  %v7010_v17 = vsub.s32 3, %v6962_v52  ;;  %v2627_v18 = vadd.f32 %v2626_v8, %v6589_v27 }
 0x822   : > { %4736 = vrsqrt.f32 %v2219_v9  ;;  %v6609_v9 = vrot.slane %v2404_v33, %v7011_v41 }
 0x823   : > { %v6593_v55 = vrot.slane %v2404_v33, %v7010_v17  ;;  %v2977_v45 = vmax.f32 %v2627_v18, 0.0 }
 0x825   : > { %v2820_v5 = vadd.f32 %v2819_v35, %v6593_v55  ;;  %v2816_v2 = vadd.f32 %v2815_v48, %v6593_v55 }
 0x826   : > { %v6580_v53 = vpop.f32.mrf.mxu1  ;;  %v6582_v7 = vpop.f32.mrf.mxu0 }
 0x827   : > { %v2979_v54 = vmax.f32 %v2820_v5, 0.0  ;;  %v2975_v17 = vmax.f32 %v2816_v2, 0.0 }
 0x828   : > { %v2632_v43 = vpop.f32.mrf.mxu1  ;;  %v2825_v14 = vpop.f32.mrf.mxu0 }
 0x82a   : > { %v2634_v36 = vpop.f32.mrf.mxu1  ;;  %v2827_v22 = vpop.f32.mrf.mxu0 }
 0x82c   : > { %v2636_v4 = vpop.f32.mrf.mxu1  ;;  %v2829_v39 = vpop.f32.mrf.mxu0 }
 0x82d   : > { %v4735_v11 = vpop.eup %4734  ;;  %v2637_v18 = vadd.f32 %v2636_v4, %v6589_v27  ;;  %v2830_v5 = vadd.f32 %v2829_v39, %v6593_v55 }
 0x82e   : > { %v2282_v21 = vmul.f32 %v4735_v11, %v6406_v32 }
 0x82f   : > { %v4737_v13 = vpop.eup %4736  ;;  %v2985_v2 = vmax.f32 %v2637_v18, 0.0 }
 0x830   : > { %v2283_v42 = vmul.f32 %v4737_v13, %v6412_v1  ;;  %v2318_v47 = vmul.f32 %v6305_v62, %v2282_v21  ;;  %v7012_v1 = vsub.s32 2, %v6962_v52  ;;  %v3101_v52 = vpack.c.bf16 %v2977_v45, %v2973_v0 }
 0x831   : > { %v2635_v0 = vadd.f32 %v2634_v36, %v6609_v9 }
 0x832   : > { %v6602_v15 = vpop.f32.mrf.mxu1  ;;  %v6604_v61 = vpop.f32.mrf.mxu0  ;;  %v2319_v32 = vmul.f32 %v6305_v62, %v2283_v42  ;;  %v6613_v8 = vrot.slane %v2404_v33, %v7012_v1  ;;  %v2354_v48 = vadd.f32 %v6314_v40, %v2318_v47  ;;  %v2625_v62 = vadd.f32 %v2624_v49, %v6609_v9 }
 0x833   : > { %v3103_v33 = vpack.c.bf16 %v2979_v54, %v2975_v17  ;;  %v2621_v42 = vadd.f32 %v6571_v63, %v6609_v9  ;;  %v2633_v49 = vadd.f32 %v2632_v43, %v6589_v27 }
 0x834   : > { %v2642_v35 = vpop.f32.mrf.mxu1  ;;  %v2835_v25 = vpop.f32.mrf.mxu0  ;;  %v2355_v11 = vadd.f32 %v6314_v40, %v2319_v32  ;;  %v2818_v21 = vadd.f32 %v2817_v19, %v6613_v8  ;;  %v2814_v47 = vadd.f32 %v6573_v12, %v6613_v8  ;;  %v2826_v19 = vadd.f32 %v2825_v14, %v6593_v55 }
 0x835   : > { %v2976_v4 = vmax.f32 %v2625_v62, 0.0  ;;  %v2987_v32 = vmax.f32 %v2830_v5, 0.0  ;;  %v2972_v45 = vmax.f32 %v2621_v42, 0.0  ;;  %v2981_v1 = vmax.f32 %v2633_v49, 0.0 }
 0x836   : > { %v2371_v13 = vpack.c.bf16 %v2355_v11, %v2354_v48  ;;  %v2644_v40 = vpop.f32.mrf.mxu1  ;;  %v2837_v51 = vpop.f32.mrf.mxu0  ;;  %v2978_v39 = vmax.f32 %v2818_v21, 0.0  ;;  %v2974_v54 = vmax.f32 %v2814_v47, 0.0  ;;  %v2983_v12 = vmax.f32 %v2826_v19, 0.0 }
 0x837   : > { %v3100_v48 = vpack.c.bf16 %v2976_v4, %v2972_v45  ;;  %v2828_v43 = vadd.f32 %v2827_v22, %v6613_v8  ;;  %v2631_v5 = vadd.f32 %v6580_v53, %v6609_v9  ;;  %v2643_v22 = vadd.f32 %v2642_v35, %v6589_v27 }
 0x838   : > { %2769 = vmatmul.mubr.bf16.gmra.mxu1 %v2371_v13  ;;  %2962 = vmatmul.mubr.bf16.gmra.mxu0 %v2371_v13  ;;  %v2646_v63 = vpop.f32.mrf.mxu1  ;;  %v2839_v41 = vpop.f32.mrf.mxu0  ;;  %v3102_v11 = vpack.c.bf16 %v2978_v39, %v2974_v54  ;;  %v3105_v13 = vpack.c.bf16 %v2985_v2, %v2981_v1  ;;  %v3107_v18 = vpack.c.bf16 %v2987_v32, %v2983_v12  ;;  %v2984_v47 = vmax.f32 %v2635_v0, 0.0 }
 0x839   : > { %3456 = vmatprep.mubr.bf16.mxu1 %v3101_v52  ;;  %3617 = vmatprep.mubr.bf16.mxu0 %v3103_v33  ;;  %v2647_v62 = vadd.f32 %v2646_v63, %v6589_v27  ;;  %v2840_v21 = vadd.f32 %v2839_v41, %v6593_v55  ;;  %v2824_v52 = vadd.f32 %v6582_v7, %v6613_v8  ;;  %v2986_v49 = vmax.f32 %v2828_v43, 0.0 }
 0x83a   : > { %v2836_v42 = vadd.f32 %v2835_v25, %v6593_v55  ;;  %v2980_v53 = vmax.f32 %v2631_v5, 0.0  ;;  %v2989_v54 = vmax.f32 %v2643_v22, 0.0  ;;  %v2645_v35 = vadd.f32 %v2644_v40, %v6609_v9 }
 0x83b   : > { %v2993_v39 = vmax.f32 %v2647_v62, 0.0  ;;  %v2995_v2 = vmax.f32 %v2840_v21, 0.0  ;;  %v2982_v32 = vmax.f32 %v2824_v52, 0.0  ;;  %v2838_v25 = vadd.f32 %v2837_v51, %v6613_v8 }
 0x83c   : > { %v2991_v63 = vmax.f32 %v2836_v42, 0.0  ;;  %v3104_v41 = vpack.c.bf16 %v2984_v47, %v2980_v53  ;;  %v2641_v43 = vadd.f32 %v6602_v15, %v6609_v9  ;;  %v2834_v62 = vadd.f32 %v6604_v61, %v6613_v8 }
 0x83d   : > { %v3106_v1 = vpack.c.bf16 %v2986_v49, %v2982_v32  ;;  %v2992_v51 = vmax.f32 %v2645_v35, 0.0 }
 0x83e   : > { %v6629_v17 = vpop.f32.mrf.mxu1  ;;  %v6631_v14 = vpop.f32.mrf.mxu0  ;;  %v3111_v0 = vpack.c.bf16 %v2995_v2, %v2991_v63  ;;  %v2988_v42 = vmax.f32 %v2641_v43, 0.0  ;;  %v2990_v47 = vmax.f32 %v2834_v62, 0.0 }
 0x83f   : > { %v2651_v63 = vadd.f32 %v6629_v17, %v6609_v9 }
 0x840   : > { %v2652_v33 = vpop.f32.mrf.mxu1  ;;  %v2845_v36 = vpop.f32.mrf.mxu0  ;;  %3457 = vmatmul.mubr.bf16.vlgmr.msra.gmra.mxu1 %v3100_v48  ;;  %3618 = vmatmul.mubr.bf16.vlgmr.msra.gmra.mxu0 %v3102_v11  ;;  %v3109_v11 = vpack.c.bf16 %v2993_v39, %v2989_v54  ;;  %v3108_v2 = vpack.c.bf16 %v2992_v51, %v2988_v42 }
 0x841   : > { %3464 = vmatprep.mubr.bf16.mxu1 %v3105_v13  ;;  %3625 = vmatprep.mubr.bf16.mxu0 %v3107_v18  ;;  %v2653_v21 = vadd.f32 %v2652_v33, %v6589_v27  ;;  %v2846_v40 = vadd.f32 %v2845_v36, %v6593_v55  ;;  %v2994_v13 = vmax.f32 %v2838_v25, 0.0  ;;  %v2996_v43 = vmax.f32 %v2651_v63, 0.0 }
 0x842   : > { %v2654_v19 = vpop.f32.mrf.mxu1  ;;  %v2847_v4 = vpop.f32.mrf.mxu0 }
 0x843   : > { %v2997_v39 = vmax.f32 %v2653_v21, 0.0  ;;  %v2999_v61 = vmax.f32 %v2846_v40, 0.0  ;;  %v3110_v53 = vpack.c.bf16 %v2994_v13, %v2990_v47  ;;  %v2655_v33 = vadd.f32 %v2654_v19, %v6609_v9 }
 0x844   : > { %v2656_v45 = vpop.f32.mrf.mxu1  ;;  %v2849_v7 = vpop.f32.mrf.mxu0  ;;  %v2848_v36 = vadd.f32 %v2847_v4, %v6613_v8 }
 0x845   : > { %v2657_v12 = vadd.f32 %v2656_v45, %v6589_v27  ;;  %v2850_v48 = vadd.f32 %v2849_v7, %v6593_v55 }
 0x847   : > { %v3001_v52 = vmax.f32 %v2657_v12, 0.0  ;;  %v3003_v22 = vmax.f32 %v2850_v48, 0.0  ;;  %v3000_v48 = vmax.f32 %v2655_v33, 0.0 }
 0x848   : > { %3465 = vmatmul.mubr.bf16.gmra.mxu1 %v3104_v41  ;;  %3626 = vmatmul.mubr.bf16.gmra.mxu0 %v3106_v1  ;;  %v2844_v41 = vadd.f32 %v6631_v14, %v6613_v8 }
 0x849   : > { %3472 = vmatprep.mubr.bf16.mxu1 %v3109_v11  ;;  %3633 = vmatprep.mubr.bf16.mxu0 %v3111_v0  ;;  %v3113_v7 = vpack.c.bf16 %v3001_v52, %v2997_v39  ;;  %v3115_v54 = vpack.c.bf16 %v3003_v22, %v2999_v61  ;;  %v3002_v11 = vmax.f32 %v2848_v36, 0.0  ;;  %v3112_v22 = vpack.c.bf16 %v3000_v48, %v2996_v43 }
 0x84a   : > { %v2660_v18 = vpop.f32.mrf.mxu1  ;;  %v2853_v5 = vpop.f32.mrf.mxu0  ;;  %v2998_v14 = vmax.f32 %v2844_v41, 0.0 }
 0x84c   : > { %v2662_v15 = vpop.f32.mrf.mxu1  ;;  %v2855_v49 = vpop.f32.mrf.mxu0  ;;  %v3114_v42 = vpack.c.bf16 %v3002_v11, %v2998_v14 }
 0x84d   : > { %v2663_v1 = vadd.f32 %v2662_v15, %v6589_v27  ;;  %v2856_v19 = vadd.f32 %v2855_v49, %v6593_v55  ;;  %v2661_v15 = vadd.f32 %v2660_v18, %v6609_v9  ;;  %v2854_v49 = vadd.f32 %v2853_v5, %v6613_v8 }
 0x84e   : > { %v2664_v32 = vpop.f32.mrf.mxu1  ;;  %v2857_v45 = vpop.f32.mrf.mxu0 }
 0x84f   : > { %v3005_v21 = vmax.f32 %v2663_v1, 0.0  ;;  %v3007_v40 = vmax.f32 %v2856_v19, 0.0  ;;  %v2665_v51 = vadd.f32 %v2664_v32, %v6609_v9  ;;  %v2858_v13 = vadd.f32 %v2857_v45, %v6613_v8 }
 0x850   : > { %v2666_v35 = vpop.f32.mrf.mxu1  ;;  %v2859_v25 = vpop.f32.mrf.mxu0  ;;  %3473 = vmatmul.mubr.bf16.gmra.mxu1 %v3108_v2  ;;  %3634 = vmatmul.mubr.bf16.gmra.mxu0 %v3110_v53  ;;  %v3004_v63 = vmax.f32 %v2661_v15, 0.0  ;;  %v3006_v18 = vmax.f32 %v2854_v49, 0.0 }
 0x851   : > { %v2667_v4 = vadd.f32 %v2666_v35, %v6589_v27  ;;  %v2860_v12 = vadd.f32 %v2859_v25, %v6593_v55  ;;  %3480 = vmatprep.mubr.bf16.mxu1 %v3113_v7  ;;  %3641 = vmatprep.mubr.bf16.mxu0 %v3115_v54  ;;  %v3008_v33 = vmax.f32 %v2665_v51, 0.0  ;;  %v3010_v36 = vmax.f32 %v2858_v13, 0.0 }
 0x853   : > { %v3009_v17 = vmax.f32 %v2667_v4, 0.0  ;;  %v3011_v0 = vmax.f32 %v2860_v12, 0.0  ;;  %v3116_v35 = vpack.c.bf16 %v3008_v33, %v3004_v63  ;;  %v3118_v25 = vpack.c.bf16 %v3010_v36, %v3006_v18 }
 0x854   : > { %v2670_v62 = vpop.f32.mrf.mxu1 }
 0x855   : > { %v2863_v52 = vpop.f32.mrf.mxu0  ;;  %v3117_v39 = vpack.c.bf16 %v3009_v17, %v3005_v21  ;;  %v3119_v61 = vpack.c.bf16 %v3011_v0, %v3007_v40  ;;  %v2671_v43 = vadd.f32 %v2670_v62, %v6609_v9 }
 0x856   : > { %v2672_v47 = vpop.f32.mrf.mxu1  ;;  %v2864_v14 = vadd.f32 %v2863_v52, %v6613_v8 }
 0x857   : > { %v2865_v2 = vpop.f32.mrf.mxu0  ;;  %v2673_v32 = vadd.f32 %v2672_v47, %v6589_v27  ;;  %v3012_v13 = vmax.f32 %v2671_v43, 0.0 }
 0x858   : > { %v2674_v53 = vpop.f32.mrf.mxu1  ;;  %3481 = vmatmul.mubr.bf16.gmra.mxu1 %v3112_v22  ;;  %3642 = vmatmul.mubr.bf16.gmra.mxu0 %v3114_v42  ;;  %v2866_v45 = vadd.f32 %v2865_v2, %v6593_v55  ;;  %v3014_v22 = vmax.f32 %v2864_v14, 0.0 }
 0x859   : > { %v2867_v7 = vpop.f32.mrf.mxu0  ;;  %3488 = vmatprep.mubr.bf16.mxu1 %v3117_v39  ;;  %3649 = vmatprep.mubr.bf16.mxu0 %v3119_v61  ;;  %v3013_v19 = vmax.f32 %v2673_v32, 0.0  ;;  %v2675_v48 = vadd.f32 %v2674_v53, %v6609_v9 }
 0x85a   : > { %v2676_v54 = vpop.f32.mrf.mxu1  ;;  %v3015_v12 = vmax.f32 %v2866_v45, 0.0  ;;  %v2868_v11 = vadd.f32 %v2867_v7, %v6613_v8 }
 0x85b   : > { %v2677_v5 = vadd.f32 %v2676_v54, %v6589_v27  ;;  %v2869_v41 = vpop.f32.mrf.mxu0  ;;  %v3016_v40 = vmax.f32 %v2675_v48, 0.0 }
 0x85c   : > { %v2870_v1 = vadd.f32 %v2869_v41, %v6593_v55  ;;  %v3018_v51 = vmax.f32 %v2868_v11, 0.0 }
 0x85d   : > { %v3017_v4 = vmax.f32 %v2677_v5, 0.0  ;;  %v3120_v42 = vpack.c.bf16 %v3016_v40, %v3012_v13 }
 0x85e   : > { %v3019_v17 = vmax.f32 %v2870_v1, 0.0  ;;  %v3122_v47 = vpack.c.bf16 %v3018_v51, %v3014_v22 }
 0x85f   : > { %v3121_v0 = vpack.c.bf16 %v3017_v4, %v3013_v19 }
 0x860   : > { %v3123_v21 = vpack.c.bf16 %v3019_v17, %v3015_v12  ;;  %3489 = vmatmul.mubr.bf16.gmra.mxu1 %v3116_v35  ;;  %3650 = vmatmul.mubr.bf16.gmra.mxu0 %v3118_v25 }
 0x861   : > { %3496 = vmatprep.mubr.bf16.mxu1 %v3121_v0 }
 0x862   : > { %3657 = vmatprep.mubr.bf16.mxu0 %v3123_v21 }
 0x868   : > { %3497 = vmatmul.mubr.bf16.gmra.mxu1 %v3120_v42  ;;  %3658 = vmatmul.mubr.bf16.gmra.mxu0 %v3122_v47 }
 0x86c   : > { %v2680_v15 = vpop.f32.mrf.mxu1  ;;  %v2873_v49 = vpop.f32.mrf.mxu0 }
 0x86d   : > { %v2681_v32 = vadd.f32 %v2680_v15, %v6609_v9  ;;  %v2874_v7 = vadd.f32 %v2873_v49, %v6613_v8 }
 0x86e   : > { %v2682_v39 = vpop.f32.mrf.mxu1  ;;  %v2875_v61 = vpop.f32.mrf.mxu0 }
 0x86f   : > { %v2683_v52 = vadd.f32 %v2682_v39, %v6589_v27  ;;  %v2876_v53 = vadd.f32 %v2875_v61, %v6593_v55  ;;  %v3020_v48 = vmax.f32 %v2681_v32, 0.0  ;;  %v3022_v11 = vmax.f32 %v2874_v7, 0.0 }
 0x870   : > { %v2684_v62 = vpop.f32.mrf.mxu1  ;;  %v2877_v2 = vpop.f32.mrf.mxu0 }
 0x871   : > { %v2685_v33 = vadd.f32 %v2684_v62, %v6609_v9  ;;  %v2878_v36 = vadd.f32 %v2877_v2, %v6613_v8  ;;  %v3021_v25 = vmax.f32 %v2683_v52, 0.0  ;;  %v3023_v19 = vmax.f32 %v2876_v53, 0.0 }
 0x872   : > { %v2686_v45 = vpop.f32.mrf.mxu1  ;;  %v2879_v54 = vpop.f32.mrf.mxu0 }
 0x873   : > { %v2687_v63 = vadd.f32 %v2686_v45, %v6589_v27  ;;  %v2880_v18 = vadd.f32 %v2879_v54, %v6593_v55  ;;  %v3024_v5 = vmax.f32 %v2685_v33, 0.0  ;;  %v3026_v41 = vmax.f32 %v2878_v36, 0.0 }
 0x874   : > { %v2690_v1 = vpop.f32.mrf.mxu1  ;;  %v2883_v35 = vpop.f32.mrf.mxu0 }
 0x875   : > { %v3025_v4 = vmax.f32 %v2687_v63, 0.0  ;;  %v3027_v12 = vmax.f32 %v2880_v18, 0.0  ;;  %v3124_v21 = vpack.c.bf16 %v3024_v5, %v3020_v48  ;;  %v3126_v40 = vpack.c.bf16 %v3026_v41, %v3022_v11 }
 0x876   : > { %v2692_v17 = vpop.f32.mrf.mxu1  ;;  %v2885_v0 = vpop.f32.mrf.mxu0  ;;  %v2691_v49 = vadd.f32 %v2690_v1, %v6609_v9  ;;  %v2884_v39 = vadd.f32 %v2883_v35, %v6613_v8 }
 0x877   : > { %v3125_v43 = vpack.c.bf16 %v3025_v4, %v3021_v25  ;;  %v3127_v14 = vpack.c.bf16 %v3027_v12, %v3023_v19  ;;  %v2693_v51 = vadd.f32 %v2692_v17, %v6589_v27  ;;  %v2886_v42 = vadd.f32 %v2885_v0, %v6593_v55 }
 0x878   : > { %v2694_v13 = vpop.f32.mrf.mxu1  ;;  %v2887_v22 = vpop.f32.mrf.mxu0  ;;  %v3028_v54 = vmax.f32 %v2691_v49, 0.0  ;;  %v3030_v63 = vmax.f32 %v2884_v39, 0.0 }
 0x879   : > { %v2695_v47 = vadd.f32 %v2694_v13, %v6609_v9  ;;  %v2888_v15 = vadd.f32 %v2887_v22, %v6613_v8  ;;  %3504 = vmatprep.mubr.bf16.mxu1 %v3125_v43  ;;  %3665 = vmatprep.mubr.bf16.mxu0 %v3127_v14  ;;  %v3029_v36 = vmax.f32 %v2693_v51, 0.0  ;;  %v3031_v32 = vmax.f32 %v2886_v42, 0.0 }
 0x87a   : > { %v2696_v61 = vpop.f32.mrf.mxu1  ;;  %v2889_v62 = vpop.f32.mrf.mxu0  ;;  %3505 = vmatmul.mubr.bf16.gmra.mxu1 %v3124_v21  ;;  %3666 = vmatmul.mubr.bf16.gmra.mxu0 %v3126_v40 }
 0x87b   : > { %v2697_v2 = vadd.f32 %v2696_v61, %v6589_v27  ;;  %v2890_v52 = vadd.f32 %v2889_v62, %v6593_v55  ;;  %v3032_v53 = vmax.f32 %v2695_v47, 0.0  ;;  %v3034_v33 = vmax.f32 %v2888_v15, 0.0 }
 0x87d   : > { %v3033_v7 = vmax.f32 %v2697_v2, 0.0  ;;  %v3035_v45 = vmax.f32 %v2890_v52, 0.0  ;;  %v3128_v41 = vpack.c.bf16 %v3032_v53, %v3028_v54  ;;  %v3130_v1 = vpack.c.bf16 %v3034_v33, %v3030_v63 }
 0x87f   : > { %v3129_v18 = vpack.c.bf16 %v3033_v7, %v3029_v36  ;;  %v3131_v5 = vpack.c.bf16 %v3035_v45, %v3031_v32 }
 0x881   : > { %3512 = vmatprep.mubr.bf16.mxu1 %v3129_v18  ;;  %3673 = vmatprep.mubr.bf16.mxu0 %v3131_v5 }
 0x882   : > { %3513 = vmatmul.mubr.bf16.gmra.mxu1 %v3128_v41  ;;  %3674 = vmatmul.mubr.bf16.gmra.mxu0 %v3130_v1 }
 0x89c   : > { %v2700_v35 = vpop.f32.mrf.mxu1  ;;  %v2893_v25 = vpop.f32.mrf.mxu0 }
 0x89d   : > { %v2701_v14 = vadd.f32 %v2700_v35, %v6609_v9  ;;  %v2894_v21 = vadd.f32 %v2893_v25, %v6613_v8 }
 0x89e   : > { %v2702_v19 = vpop.f32.mrf.mxu1  ;;  %v2895_v4 = vpop.f32.mrf.mxu0 }
 0x89f   : > { %v2703_v11 = vadd.f32 %v2702_v19, %v6589_v27  ;;  %v2896_v17 = vadd.f32 %v2895_v4, %v6593_v55  ;;  %v3036_v52 = vmax.f32 %v2701_v14, 0.0  ;;  %v3038_v53 = vmax.f32 %v2894_v21, 0.0 }
 0x8a0   : > { %v2704_v12 = vpop.f32.mrf.mxu1  ;;  %v2897_v48 = vpop.f32.mrf.mxu0 }
 0x8a1   : > { %v2705_v0 = vadd.f32 %v2704_v12, %v6609_v9  ;;  %v2898_v43 = vadd.f32 %v2897_v48, %v6613_v8  ;;  %v3037_v39 = vmax.f32 %v2703_v11, 0.0  ;;  %v3039_v61 = vmax.f32 %v2896_v17, 0.0 }
 0x8a2   : > { %v2706_v40 = vpop.f32.mrf.mxu1  ;;  %v2899_v51 = vpop.f32.mrf.mxu0 }
 0x8a3   : > { %v2707_v13 = vadd.f32 %v2706_v40, %v6589_v27  ;;  %v2900_v22 = vadd.f32 %v2899_v51, %v6593_v55  ;;  %v3040_v42 = vmax.f32 %v2705_v0, 0.0  ;;  %v3042_v47 = vmax.f32 %v2898_v43, 0.0 }
 0x8a4   : > { %v2710_v15 = vpop.f32.mrf.mxu1  ;;  %v2903_v49 = vpop.f32.mrf.mxu0 }
 0x8a5   : > { %v3041_v62 = vmax.f32 %v2707_v13, 0.0  ;;  %v3043_v2 = vmax.f32 %v2900_v22, 0.0  ;;  %v3132_v45 = vpack.c.bf16 %v3040_v42, %v3036_v52  ;;  %v3134_v54 = vpack.c.bf16 %v3042_v47, %v3038_v53 }
 0x8a6   : > { %v2712_v33 = vpop.f32.mrf.mxu1  ;;  %v2905_v36 = vpop.f32.mrf.mxu0  ;;  %v2711_v25 = vadd.f32 %v2710_v15, %v6609_v9  ;;  %v2904_v19 = vadd.f32 %v2903_v49, %v6613_v8 }
 0x8a7   : > { %v3133_v32 = vpack.c.bf16 %v3041_v62, %v3037_v39  ;;  %v3135_v7 = vpack.c.bf16 %v3043_v2, %v3039_v61  ;;  %v2713_v63 = vadd.f32 %v2712_v33, %v6589_v27  ;;  %v2906_v41 = vadd.f32 %v2905_v36, %v6593_v55 }
 0x8a8   : > { %v2714_v18 = vpop.f32.mrf.mxu1  ;;  %v2907_v5 = vpop.f32.mrf.mxu0  ;;  %v3044_v51 = vmax.f32 %v2711_v25, 0.0  ;;  %v3046_v13 = vmax.f32 %v2904_v19, 0.0 }
 0x8a9   : > { %v2715_v1 = vadd.f32 %v2714_v18, %v6609_v9  ;;  %v2908_v35 = vadd.f32 %v2907_v5, %v6613_v8  ;;  %3520 = vmatprep.mubr.bf16.mxu1 %v3133_v32  ;;  %3681 = vmatprep.mubr.bf16.mxu0 %v3135_v7  ;;  %v3045_v43 = vmax.f32 %v2713_v63, 0.0  ;;  %v3047_v14 = vmax.f32 %v2906_v41, 0.0 }
 0x8aa   : > { %v2716_v4 = vpop.f32.mrf.mxu1  ;;  %v2909_v12 = vpop.f32.mrf.mxu0  ;;  %3521 = vmatmul.mubr.bf16.gmra.mxu1 %v3132_v45  ;;  %3682 = vmatmul.mubr.bf16.gmra.mxu0 %v3134_v54 }
 0x8ab   : > { %v2717_v48 = vadd.f32 %v2716_v4, %v6589_v27  ;;  %v2910_v11 = vadd.f32 %v2909_v12, %v6593_v55  ;;  %v3048_v17 = vmax.f32 %v2715_v1, 0.0  ;;  %v3050_v0 = vmax.f32 %v2908_v35, 0.0 }
 0x8ad   : > { %v3049_v21 = vmax.f32 %v2717_v48, 0.0  ;;  %v3051_v40 = vmax.f32 %v2910_v11, 0.0  ;;  %v3136_v47 = vpack.c.bf16 %v3048_v17, %v3044_v51  ;;  %v3138_v15 = vpack.c.bf16 %v3050_v0, %v3046_v13 }
 0x8af   : > { %v3137_v22 = vpack.c.bf16 %v3049_v21, %v3045_v43  ;;  %v3139_v42 = vpack.c.bf16 %v3051_v40, %v3047_v14 }
 0x8b0   : > { %v2720_v49 = vpop.f32.mrf.mxu1  ;;  %v2913_v39 = vpop.f32.mrf.mxu0 }
 0x8b1   : > { %3528 = vmatprep.mubr.bf16.mxu1 %v3137_v22  ;;  %3689 = vmatprep.mubr.bf16.mxu0 %v3139_v42  ;;  %v2721_v7 = vadd.f32 %v2720_v49, %v6609_v9  ;;  %v2914_v45 = vadd.f32 %v2913_v39, %v6613_v8 }
 0x8b2   : > { %v2722_v61 = vpop.f32.mrf.mxu1  ;;  %v2915_v62 = vpop.f32.mrf.mxu0  ;;  %3529 = vmatmul.mubr.bf16.gmra.mxu1 %v3136_v47  ;;  %3690 = vmatmul.mubr.bf16.gmra.mxu0 %v3138_v15 }
 0x8b3   : > { %v2723_v53 = vadd.f32 %v2722_v61, %v6589_v27  ;;  %v2916_v33 = vadd.f32 %v2915_v62, %v6593_v55  ;;  %v3052_v12 = vmax.f32 %v2721_v7, 0.0  ;;  %v3054_v48 = vmax.f32 %v2914_v45, 0.0 }
 0x8b4   : > { %v2724_v2 = vpop.f32.mrf.mxu1  ;;  %v2917_v52 = vpop.f32.mrf.mxu0 }
 0x8b5   : > { %v2725_v36 = vadd.f32 %v2724_v2, %v6609_v9  ;;  %v2918_v32 = vadd.f32 %v2917_v52, %v6613_v8  ;;  %v3053_v35 = vmax.f32 %v2723_v53, 0.0  ;;  %v3055_v25 = vmax.f32 %v2916_v33, 0.0 }
 0x8b6   : > { %v2726_v54 = vpop.f32.mrf.mxu1  ;;  %v2919_v63 = vpop.f32.mrf.mxu0 }
 0x8b7   : > { %v2727_v18 = vadd.f32 %v2726_v54, %v6589_v27  ;;  %v2920_v5 = vadd.f32 %v2919_v63, %v6593_v55  ;;  %v3056_v41 = vmax.f32 %v2725_v36, 0.0  ;;  %v3058_v1 = vmax.f32 %v2918_v32, 0.0 }
 0x8b9   : > { %v3057_v19 = vmax.f32 %v2727_v18, 0.0  ;;  %v3059_v4 = vmax.f32 %v2920_v5, 0.0  ;;  %v3140_v0 = vpack.c.bf16 %v3056_v41, %v3052_v12  ;;  %v3142_v43 = vpack.c.bf16 %v3058_v1, %v3054_v48 }
 0x8bb   : > { %v3141_v11 = vpack.c.bf16 %v3057_v19, %v3053_v35  ;;  %v3143_v17 = vpack.c.bf16 %v3059_v4, %v3055_v25 }
 0x8bc   : > { %v2730_v14 = vpop.f32.mrf.mxu1  ;;  %v2923_v21 = vpop.f32.mrf.mxu0 }
 0x8bd   : > { %3536 = vmatprep.mubr.bf16.mxu1 %v3141_v11  ;;  %3697 = vmatprep.mubr.bf16.mxu0 %v3143_v17  ;;  %v2731_v39 = vadd.f32 %v2730_v14, %v6609_v9  ;;  %v2924_v61 = vadd.f32 %v2923_v21, %v6613_v8 }
 0x8be   : > { %v2732_v40 = vpop.f32.mrf.mxu1  ;;  %v2925_v51 = vpop.f32.mrf.mxu0  ;;  %3537 = vmatmul.mubr.bf16.gmra.mxu1 %v3140_v0  ;;  %3698 = vmatmul.mubr.bf16.gmra.mxu0 %v3142_v43 }
 0x8bf   : > { %v2733_v42 = vadd.f32 %v2732_v40, %v6589_v27  ;;  %v2926_v47 = vadd.f32 %v2925_v51, %v6593_v55  ;;  %v3060_v63 = vmax.f32 %v2731_v39, 0.0  ;;  %v3062_v18 = vmax.f32 %v2924_v61, 0.0 }
 0x8c0   : > { %v2734_v13 = vpop.f32.mrf.mxu1  ;;  %v2927_v22 = vpop.f32.mrf.mxu0 }
 0x8c1   : > { %v2735_v15 = vadd.f32 %v2734_v13, %v6609_v9  ;;  %v2928_v49 = vadd.f32 %v2927_v22, %v6613_v8  ;;  %v3061_v32 = vmax.f32 %v2733_v42, 0.0  ;;  %v3063_v7 = vmax.f32 %v2926_v47, 0.0 }
 0x8c2   : > { %v2736_v62 = vpop.f32.mrf.mxu1  ;;  %v2929_v2 = vpop.f32.mrf.mxu0 }
 0x8c3   : > { %v2737_v52 = vadd.f32 %v2736_v62, %v6589_v27  ;;  %v2930_v53 = vadd.f32 %v2929_v2, %v6593_v55  ;;  %v3064_v33 = vmax.f32 %v2735_v15, 0.0  ;;  %v3066_v36 = vmax.f32 %v2928_v49, 0.0 }
 0x8c5   : > { %v3065_v45 = vmax.f32 %v2737_v52, 0.0  ;;  %v3067_v54 = vmax.f32 %v2930_v53, 0.0  ;;  %v3144_v1 = vpack.c.bf16 %v3064_v33, %v3060_v63  ;;  %v3146_v35 = vpack.c.bf16 %v3066_v36, %v3062_v18 }
 0x8c7   : > { %v3145_v5 = vpack.c.bf16 %v3065_v45, %v3061_v32  ;;  %v3147_v41 = vpack.c.bf16 %v3067_v54, %v3063_v7 }
 0x8c8   : > { %v2740_v25 = vpop.f32.mrf.mxu1  ;;  %v2933_v19 = vpop.f32.mrf.mxu0 }
 0x8c9   : > { %3544 = vmatprep.mubr.bf16.mxu1 %v3145_v5  ;;  %3705 = vmatprep.mubr.bf16.mxu0 %v3147_v41  ;;  %v2741_v21 = vadd.f32 %v2740_v25, %v6609_v9  ;;  %v2934_v40 = vadd.f32 %v2933_v19, %v6613_v8 }
 0x8ca   : > { %v2742_v4 = vpop.f32.mrf.mxu1  ;;  %v2935_v12 = vpop.f32.mrf.mxu0  ;;  %3545 = vmatmul.mubr.bf16.gmra.mxu1 %v3144_v1  ;;  %3706 = vmatmul.mubr.bf16.gmra.mxu0 %v3146_v35 }
 0x8cb   : > { %v2743_v17 = vadd.f32 %v2742_v4, %v6589_v27  ;;  %v2936_v0 = vadd.f32 %v2935_v12, %v6593_v55  ;;  %v3068_v2 = vmax.f32 %v2741_v21, 0.0  ;;  %v3070_v52 = vmax.f32 %v2934_v40, 0.0 }
 0x8cc   : > { %v2744_v48 = vpop.f32.mrf.mxu1  ;;  %v2937_v11 = vpop.f32.mrf.mxu0 }
 0x8cd   : > { %v2745_v43 = vadd.f32 %v2744_v48, %v6609_v9  ;;  %v2938_v14 = vadd.f32 %v2937_v11, %v6613_v8  ;;  %v3069_v49 = vmax.f32 %v2743_v17, 0.0  ;;  %v3071_v39 = vmax.f32 %v2936_v0, 0.0 }
 0x8ce   : > { %v2746_v51 = vpop.f32.mrf.mxu1  ;;  %v2939_v13 = vpop.f32.mrf.mxu0 }
 0x8cf   : > { %v2747_v22 = vadd.f32 %v2746_v51, %v6589_v27  ;;  %v2940_v42 = vadd.f32 %v2939_v13, %v6593_v55  ;;  %v3072_v47 = vmax.f32 %v2745_v43, 0.0  ;;  %v3074_v15 = vmax.f32 %v2938_v14, 0.0 }
 0x8d1   : > { %v3073_v61 = vmax.f32 %v2747_v22, 0.0  ;;  %v3075_v62 = vmax.f32 %v2940_v42, 0.0  ;;  %v3148_v36 = vpack.c.bf16 %v3072_v47, %v3068_v2  ;;  %v3150_v32 = vpack.c.bf16 %v3074_v15, %v3070_v52 }
 0x8d3   : > { %v3149_v53 = vpack.c.bf16 %v3073_v61, %v3069_v49  ;;  %v3151_v33 = vpack.c.bf16 %v3075_v62, %v3071_v39 }
 0x8d4   : > { %v2750_v7 = vpop.f32.mrf.mxu1  ;;  %v2943_v45 = vpop.f32.mrf.mxu0 }
 0x8d5   : > { %3552 = vmatprep.mubr.bf16.mxu1 %v3149_v53  ;;  %3713 = vmatprep.mubr.bf16.mxu0 %v3151_v33  ;;  %v2751_v19 = vadd.f32 %v2750_v7, %v6609_v9  ;;  %v2944_v4 = vadd.f32 %v2943_v45, %v6613_v8 }
 0x8d6   : > { %v2752_v54 = vpop.f32.mrf.mxu1  ;;  %v2945_v63 = vpop.f32.mrf.mxu0  ;;  %3553 = vmatmul.mubr.bf16.gmra.mxu1 %v3148_v36  ;;  %3714 = vmatmul.mubr.bf16.gmra.mxu0 %v3150_v32 }
 0x8d7   : > { %v2753_v41 = vadd.f32 %v2752_v54, %v6589_v27  ;;  %v2946_v1 = vadd.f32 %v2945_v63, %v6593_v55  ;;  %v3076_v13 = vmax.f32 %v2751_v19, 0.0  ;;  %v3078_v22 = vmax.f32 %v2944_v4, 0.0 }
 0x8d8   : > { %v2754_v18 = vpop.f32.mrf.mxu1  ;;  %v2947_v5 = vpop.f32.mrf.mxu0 }
 0x8d9   : > { %v2755_v35 = vadd.f32 %v2754_v18, %v6609_v9  ;;  %v2948_v25 = vadd.f32 %v2947_v5, %v6613_v8  ;;  %v3077_v14 = vmax.f32 %v2753_v41, 0.0  ;;  %v3079_v21 = vmax.f32 %v2946_v1, 0.0 }
 0x8da   : > { %v2756_v12 = vpop.f32.mrf.mxu1  ;;  %v2949_v48 = vpop.f32.mrf.mxu0 }
 0x8db   : > { %v2757_v11 = vadd.f32 %v2756_v12, %v6589_v27  ;;  %v2950_v17 = vadd.f32 %v2949_v48, %v6593_v55  ;;  %v3080_v0 = vmax.f32 %v2755_v35, 0.0  ;;  %v3082_v43 = vmax.f32 %v2948_v25, 0.0 }
 0x8dd   : > { %v3081_v40 = vmax.f32 %v2757_v11, 0.0  ;;  %v3083_v51 = vmax.f32 %v2950_v17, 0.0  ;;  %v3152_v15 = vpack.c.bf16 %v3080_v0, %v3076_v13  ;;  %v3154_v49 = vpack.c.bf16 %v3082_v43, %v3078_v22 }
 0x8df   : > { %v3153_v42 = vpack.c.bf16 %v3081_v40, %v3077_v14  ;;  %v3155_v47 = vpack.c.bf16 %v3083_v51, %v3079_v21 }
 0x8e0   : > { %v2760_v39 = vpop.f32.mrf.mxu1  ;;  %v2953_v61 = vpop.f32.mrf.mxu0 }
 0x8e1   : > { %3560 = vmatprep.mubr.bf16.mxu1 %v3153_v42  ;;  %3721 = vmatprep.mubr.bf16.mxu0 %v3155_v47  ;;  %v2761_v45 = vadd.f32 %v2760_v39, %v6609_v9  ;;  %v2954_v54 = vadd.f32 %v2953_v61, %v6613_v8 }
 0x8e2   : > { %v2762_v62 = vpop.f32.mrf.mxu1  ;;  %v2955_v2 = vpop.f32.mrf.mxu0  ;;  %3561 = vmatmul.mubr.bf16.gmra.mxu1 %v3152_v15  ;;  %3722 = vmatmul.mubr.bf16.gmra.mxu0 %v3154_v49 }
 0x8e3   : > { %v2763_v33 = vadd.f32 %v2762_v62, %v6589_v27  ;;  %v2956_v36 = vadd.f32 %v2955_v2, %v6593_v55  ;;  %v3084_v48 = vmax.f32 %v2761_v45, 0.0  ;;  %v3086_v11 = vmax.f32 %v2954_v54, 0.0 }
 0x8e4   : > { %v2764_v52 = vpop.f32.mrf.mxu1  ;;  %v2957_v53 = vpop.f32.mrf.mxu0 }
 0x8e5   : > { %v2765_v32 = vadd.f32 %v2764_v52, %v6609_v9  ;;  %v2958_v7 = vadd.f32 %v2957_v53, %v6613_v8  ;;  %v3085_v25 = vmax.f32 %v2763_v33, 0.0  ;;  %v3087_v19 = vmax.f32 %v2956_v36, 0.0 }
 0x8e6   : > { %v2766_v63 = vpop.f32.mrf.mxu1  ;;  %v2959_v18 = vpop.f32.mrf.mxu0 }
 0x8e7   : > { %v2767_v5 = vadd.f32 %v2766_v63, %v6589_v27  ;;  %v2960_v41 = vadd.f32 %v2959_v18, %v6593_v55  ;;  %v3088_v1 = vmax.f32 %v2765_v32, 0.0  ;;  %v3090_v35 = vmax.f32 %v2958_v7, 0.0 }
 0x8e9   : > { %v3089_v4 = vmax.f32 %v2767_v5, 0.0  ;;  %v3091_v12 = vmax.f32 %v2960_v41, 0.0  ;;  %v3156_v43 = vpack.c.bf16 %v3088_v1, %v3084_v48  ;;  %v3158_v14 = vpack.c.bf16 %v3090_v35, %v3086_v11 }
 0x8eb   : > { %v3157_v17 = vpack.c.bf16 %v3089_v4, %v3085_v25  ;;  %v3159_v0 = vpack.c.bf16 %v3091_v12, %v3087_v19 }
 0x8ed   : > { %3568 = vmatprep.mubr.bf16.mxu1 %v3157_v17  ;;  %3729 = vmatprep.mubr.bf16.mxu0 %v3159_v0 }
 0x8ee   : > { %3569 = vmatmul.mubr.bf16.gmra.mxu1 %v3156_v43  ;;  %3730 = vmatmul.mubr.bf16.gmra.mxu0 %v3158_v14 }
 0x8f8   : > { %v2770_v21 = vpop.f32.mrf.mxu1  ;;  %v2963_v40 = vpop.f32.mrf.mxu0 }
 0x8f9   : > { %v2771_v61 = vadd.f32 %v2770_v21, %v6609_v9  ;;  %v2964_v62 = vadd.f32 %v2963_v40, %v6613_v8 }
 0x8fa   : > { %v2772_v51 = vpop.f32.mrf.mxu1  ;;  %v2965_v13 = vpop.f32.mrf.mxu0 }
 0x8fb   : > { %v2773_v47 = vadd.f32 %v2772_v51, %v6589_v27  ;;  %v2966_v15 = vadd.f32 %v2965_v13, %v6593_v55  ;;  %v3092_v41 = vmax.f32 %v2771_v61, 0.0  ;;  %v3094_v1 = vmax.f32 %v2964_v62, 0.0 }
 0x8fc   : > { %v2774_v22 = vpop.f32.mrf.mxu1  ;;  %v2967_v42 = vpop.f32.mrf.mxu0 }
 0x8fd   : > { %v2775_v49 = vadd.f32 %v2774_v22, %v6609_v9  ;;  %v2968_v39 = vadd.f32 %v2967_v42, %v6613_v8  ;;  %v3093_v54 = vmax.f32 %v2773_v47, 0.0  ;;  %v3095_v63 = vmax.f32 %v2966_v15, 0.0  ;;  %v6756_v9 = vld [vmem:[%s6865_s1 + $0x8] ss:$0 sm:$0xff] }
 0x8fe   : > { %v2776_v2 = vpop.f32.mrf.mxu1  ;;  %v2969_v52 = vpop.f32.mrf.mxu0 }
 0x8ff   : > { %v2777_v53 = vadd.f32 %v2776_v2, %v6589_v27  ;;  %v2970_v33 = vadd.f32 %v2969_v52, %v6593_v55  ;;  %v3096_v36 = vmax.f32 %v2775_v49, 0.0  ;;  %v3098_v32 = vmax.f32 %v2968_v39, 0.0 }
 0x900   : > { %v4072_v7 = vpop.f32.mrf.mxu1  ;;  %v4184_v45 = vpop.f32.mrf.mxu0 }
 0x901   : > { %v3097_v18 = vmax.f32 %v2777_v53, 0.0  ;;  %v3099_v5 = vmax.f32 %v2970_v33, 0.0  ;;  %v3160_v19 = vpack.c.bf16 %v3096_v36, %v3092_v41  ;;  %v3162_v4 = vpack.c.bf16 %v3098_v32, %v3094_v1 }
 0x902   : > { %v4073_v8 = vpop.f32.mrf.mxu1  ;;  %v4185_v35 = vpop.f32.mrf.mxu0 }
 0x903   : > { %v3161_v27 = vpack.c.bf16 %v3097_v18, %v3093_v54  ;;  %v3163_v25 = vpack.c.bf16 %v3099_v5, %v3095_v63  ;;  %v4074_v55 = vadd.f32 %v4073_v8, %v4072_v7  ;;  %v4186_v17 = vadd.f32 %v4185_v35, %v4184_v45 }
 0x904   : > { %v4075_v12 = vpop.f32.mrf.mxu1  ;;  %v4187_v48 = vpop.f32.mrf.mxu0 }
 0x905   : > { %v3459_v11 = vadd.f32 %v4074_v55, %v6756_v9  ;;  %3576 = vmatprep.mubr.bf16.mxu1 %v3161_v27  ;;  %3737 = vmatprep.mubr.bf16.mxu0 %v3163_v25 }
 0x906   : > { %v4076_v0 = vpop.f32.mrf.mxu1  ;;  %3577 = vmatmul.mubr.bf16.gmra.mxu1 %v3160_v19  ;;  %v4188_v43 = vpop.f32.mrf.mxu0  ;;  %3738 = vmatmul.mubr.bf16.gmra.mxu0 %v3162_v4 }
 0x907   : > { %v3620_v14 = vadd.f32 %v4186_v17, %v3459_v11  ;;  %v4077_v21 = vadd.f32 %v4076_v0, %v4075_v12  ;;  %v4189_v42 = vadd.f32 %v4188_v43, %v4187_v48 }
 0x908   : > { %v4078_v40 = vpop.f32.mrf.mxu1  ;;  %v4190_v51 = vpop.f32.mrf.mxu0 }
 0x909   : > { %v3746_v13 = vadd.f32 %v3620_v14, %v5832_v38  ;;  %v3462_v22 = vadd.f32 %v4077_v21, %v6756_v9 }
 0x90a   : > { %v4079_v47 = vpop.f32.mrf.mxu1  ;;  %v4191_v15 = vpop.f32.mrf.mxu0 }
 0x90b   : > { %v3623_v49 = vadd.f32 %v4189_v42, %v3462_v22  ;;  %v4080_v39 = vadd.f32 %v4079_v47, %v4078_v40  ;;  %3778 = vxpose.xlu0.b32.start [1/16] %v3746_v13, 128  ;;  %v4192_v53 = vadd.f32 %v4191_v15, %v4190_v51 }
 0x90c   : > { %v4081_v61 = vpop.f32.mrf.mxu1  ;;  %v4193_v62 = vpop.f32.mrf.mxu0 }
 0x90d   : > { %v3747_v2 = vadd.f32 %v3623_v49, %v5840_v29  ;;  %v3467_v52 = vadd.f32 %v4080_v39, %v6756_v9 }
 0x90e   : > { %v4082_v33 = vpop.f32.mrf.mxu1  ;;  %v4194_v36 = vpop.f32.mrf.mxu0 }
 0x90f   : > { %v3628_v32 = vadd.f32 %v4192_v53, %v3467_v52  ;;  %v4083_v7 = vadd.f32 %v4082_v33, %v4081_v61  ;;  %3779 = vxpose.xlu0.b32.cont [2/16] %v3747_v2, 128  ;;  %v4195_v18 = vadd.f32 %v4194_v36, %v4193_v62 }
 0x910   : > { %v4084_v38 = vpop.f32.mrf.mxu1  ;;  %v4196_v45 = vpop.f32.mrf.mxu0 }
 0x911   : > { %v3748_v54 = vadd.f32 %v3628_v32, %v5864_v3  ;;  %v3470_v63 = vadd.f32 %v4083_v7, %v6756_v9 }
 0x912   : > { %v4085_v5 = vpop.f32.mrf.mxu1  ;;  %v4197_v41 = vpop.f32.mrf.mxu0 }
 0x913   : > { %v3631_v1 = vadd.f32 %v4195_v18, %v3470_v63  ;;  %v4086_v8 = vadd.f32 %v4085_v5, %v4084_v38  ;;  %3780 = vxpose.xlu0.b32.cont [3/16] %v3748_v54, 128  ;;  %v4198_v55 = vadd.f32 %v4197_v41, %v4196_v45 }
 0x914   : > { %v4087_v29 = vpop.f32.mrf.mxu1  ;;  %v4199_v35 = vpop.f32.mrf.mxu0 }
 0x915   : > { %v3749_v27 = vadd.f32 %v3631_v1, %v5870_v44  ;;  %v3475_v25 = vadd.f32 %v4086_v8, %v6756_v9 }
 0x916   : > { %v4088_v19 = vpop.f32.mrf.mxu1  ;;  %v4200_v4 = vpop.f32.mrf.mxu0 }
 0x917   : > { %v3636_v12 = vadd.f32 %v4198_v55, %v3475_v25  ;;  %v4089_v48 = vadd.f32 %v4088_v19, %v4087_v29  ;;  %3781 = vxpose.xlu0.b32.cont [4/16] %v3749_v27, 128  ;;  %v4201_v43 = vadd.f32 %v4200_v4, %v4199_v35 }
 0x918   : > { %v4090_v3 = vpop.f32.mrf.mxu1  ;;  %v4202_v11 = vpop.f32.mrf.mxu0 }
 0x919   : > { %v3750_v17 = vadd.f32 %v3636_v12, %v5895_v6  ;;  %v3478_v0 = vadd.f32 %v4089_v48, %v6756_v9 }
 0x91a   : > { %v4091_v14 = vpop.f32.mrf.mxu1  ;;  %v4203_v21 = vpop.f32.mrf.mxu0 }
 0x91b   : > { %v3639_v40 = vadd.f32 %v4201_v43, %v3478_v0  ;;  %v4092_v51 = vadd.f32 %v4091_v14, %v4090_v3  ;;  %3782 = vxpose.xlu0.b32.cont [5/16] %v3750_v17, 128  ;;  %v4204_v47 = vadd.f32 %v4203_v21, %v4202_v11 }
 0x91c   : > { %v4093_v44 = vpop.f32.mrf.mxu1  ;;  %v4205_v13 = vpop.f32.mrf.mxu0 }
 0x91d   : > { %v3751_v22 = vadd.f32 %v3639_v40, %v5903_v60  ;;  %v3483_v42 = vadd.f32 %v4092_v51, %v6756_v9 }
 0x91e   : > { %v4094_v15 = vpop.f32.mrf.mxu1  ;;  %v4206_v49 = vpop.f32.mrf.mxu0 }
 0x91f   : > { %v3644_v39 = vadd.f32 %v4204_v47, %v3483_v42  ;;  %v4095_v61 = vadd.f32 %v4094_v15, %v4093_v44  ;;  %3783 = vxpose.xlu0.b32.cont [6/16] %v3751_v22, 128  ;;  %v4207_v53 = vadd.f32 %v4206_v49, %v4205_v13 }
 0x920   : > { %v4096_v6 = vpop.f32.mrf.mxu1  ;;  %v4208_v62 = vpop.f32.mrf.mxu0 }
 0x921   : > { %v3752_v2 = vadd.f32 %v3644_v39, %v5920_v34  ;;  %v3486_v52 = vadd.f32 %v4095_v61, %v6756_v9 }
 0x922   : > { %v4097_v33 = vpop.f32.mrf.mxu1  ;;  %v4209_v36 = vpop.f32.mrf.mxu0 }
 0x923   : > { %v3647_v32 = vadd.f32 %v4207_v53, %v3486_v52  ;;  %v4098_v7 = vadd.f32 %v4097_v33, %v4096_v6  ;;  %3784 = vxpose.xlu0.b32.cont [7/16] %v3752_v2, 128  ;;  %v4210_v63 = vadd.f32 %v4209_v36, %v4208_v62 }
 0x924   : > { %v4099_v60 = vpop.f32.mrf.mxu1  ;;  %v4211_v38 = vpop.f32.mrf.mxu0 }
 0x925   : > { %v3753_v45 = vadd.f32 %v3647_v32, %v5925_v23  ;;  %v3491_v54 = vadd.f32 %v4098_v7, %v6756_v9 }
 0x926   : > { %v4100_v18 = vpop.f32.mrf.mxu1  ;;  %v4212_v5 = vpop.f32.mrf.mxu0 }
 0x927   : > { %v3652_v41 = vadd.f32 %v4210_v63, %v3491_v54  ;;  %v4101_v1 = vadd.f32 %v4100_v18, %v4099_v60  ;;  %3785 = vxpose.xlu0.b32.cont [8/16] %v3753_v45, 128  ;;  %v4213_v27 = vadd.f32 %v4212_v5, %v4211_v38 }
 0x928   : > { %v4102_v34 = vpop.f32.mrf.mxu1  ;;  %v4214_v8 = vpop.f32.mrf.mxu0 }
 0x929   : > { %v3754_v29 = vadd.f32 %v3652_v41, %v5944_v59  ;;  %v3494_v35 = vadd.f32 %v4101_v1, %v6756_v9 }
 0x92a   : > { %v4103_v25 = vpop.f32.mrf.mxu1  ;;  %v4215_v55 = vpop.f32.mrf.mxu0 }
 0x92b   : > { %v3655_v19 = vadd.f32 %v4213_v27, %v3494_v35  ;;  %v4104_v4 = vadd.f32 %v4103_v25, %v4102_v34  ;;  %3786 = vxpose.xlu0.b32.cont [9/16] %v3754_v29, 128  ;;  %v4216_v11 = vadd.f32 %v4215_v55, %v4214_v8  ;;  %v7014_v55 = vld [vmem:[#allocation36_spill] sm:$0xff] }
 0x92c   : > { %v4105_v23 = vpop.f32.mrf.mxu1  ;;  %v4217_v12 = vpop.f32.mrf.mxu0 }
 0x92d   : > { %v3755_v48 = vadd.f32 %v3655_v19, %v5949_v24  ;;  %v3499_v3 = vadd.f32 %v4104_v4, %v6756_v9 }
 0x92e   : > { %v4106_v17 = vpop.f32.mrf.mxu1  ;;  %v4218_v0 = vpop.f32.mrf.mxu0 }
 0x92f   : > { %v3660_v43 = vadd.f32 %v4216_v11, %v3499_v3  ;;  %v4107_v14 = vadd.f32 %v4106_v17, %v4105_v23  ;;  %3787 = vxpose.xlu0.b32.cont [10/16] %v3755_v48, 128  ;;  %v4219_v40 = vadd.f32 %v4218_v0, %v4217_v12 }
 0x931   : > { %v3756_v59 = vadd.f32 %v3660_v43, %v5958_v10  ;;  %v3502_v21 = vadd.f32 %v4107_v14, %v6756_v9 }
 0x933   : > { %v3663_v51 = vadd.f32 %v4219_v40, %v3502_v21  ;;  %3788 = vxpose.xlu0.b32.cont [11/16] %v3756_v59, 128 }
 0x935   : > { %v3757_v44 = vadd.f32 %v3663_v51, %v5964_v20 }
 0x937   : > { %3789 = vxpose.xlu0.b32.cont [12/16] %v3757_v44, 128  ;;  %v7015_v44 = vld [vmem:[#allocation3_spill] sm:$0xff] }
 0x93a   : > { %v4108_v13 = vpop.f32.mrf.mxu1  ;;  %v4220_v24 = vpop.f32.mrf.mxu0 }
 0x93c   : > { %v4109_v22 = vpop.f32.mrf.mxu1  ;;  %v4221_v42 = vpop.f32.mrf.mxu0 }
 0x93d   : > { %v4110_v47 = vadd.f32 %v4109_v22, %v4108_v13  ;;  %v4222_v61 = vadd.f32 %v4221_v42, %v4220_v24 }
 0x93e   : > { %v4111_v15 = vpop.f32.mrf.mxu1  ;;  %v4223_v49 = vpop.f32.mrf.mxu0 }
 0x93f   : > { %v3507_v39 = vadd.f32 %v4110_v47, %v6756_v9 }
 0x940   : > { %v4112_v6 = vpop.f32.mrf.mxu1  ;;  %v4224_v10 = vpop.f32.mrf.mxu0 }
 0x941   : > { %v3668_v62 = vadd.f32 %v4222_v61, %v3507_v39  ;;  %v4113_v2 = vadd.f32 %v4112_v6, %v4111_v15  ;;  %v4225_v36 = vadd.f32 %v4224_v10, %v4223_v49  ;;  %v7016_v6 = vld [vmem:[#allocation35_spill] sm:$0xff] }
 0x942   : > { %v4114_v52 = vpop.f32.mrf.mxu1  ;;  %v4226_v53 = vpop.f32.mrf.mxu0 }
 0x943   : > { %v3758_v33 = vadd.f32 %v3668_v62, %v5979_v26  ;;  %v3510_v20 = vadd.f32 %v4113_v2, %v6756_v9  ;;  %v7013_v26 = vld [vmem:[#allocation34_spill] sm:$0xff] }
 0x944   : > { %v4115_v32 = vpop.f32.mrf.mxu1  ;;  %v4227_v7 = vpop.f32.mrf.mxu0 }
 0x945   : > { %v3671_v60 = vadd.f32 %v4225_v36, %v3510_v20  ;;  %v4116_v38 = vadd.f32 %v4115_v32, %v4114_v52  ;;  %3790 = vxpose.xlu0.b32.cont [13/16] %v3758_v33, 128  ;;  %v4228_v5 = vadd.f32 %v4227_v7, %v4226_v53  ;;  %v7017_v36 = vld [vmem:[#allocation37_spill] sm:$0xff] }
 0x946   : > { %v4117_v45 = vpop.f32.mrf.mxu1  ;;  %v4229_v54 = vpop.f32.mrf.mxu0 }
 0x947   : > { %v3759_v63 = vadd.f32 %v3671_v60, %v5984_v46  ;;  %v3515_v18 = vadd.f32 %v4116_v38, %v6756_v9 }
 0x948   : > { %v4118_v41 = vpop.f32.mrf.mxu1  ;;  %v4230_v1 = vpop.f32.mrf.mxu0 }
 0x949   : > { %v3676_v34 = vadd.f32 %v4228_v5, %v3515_v18  ;;  %v4119_v8 = vadd.f32 %v4118_v41, %v4117_v45  ;;  %3791 = vxpose.xlu0.b32.cont [14/16] %v3759_v63, 128  ;;  %v4231_v27 = vadd.f32 %v4230_v1, %v4229_v54  ;;  %v7018_v63 = vld [vmem:[#allocation5_spill] sm:$0xff] }
 0x94b   : > { %v3760_v29 = vadd.f32 %v3676_v34, %v7013_v26  ;;  %v3518_v35 = vadd.f32 %v4119_v8, %v6756_v9 }
 0x94d   : > { %v3679_v25 = vadd.f32 %v4231_v27, %v3518_v35  ;;  %3792 = vxpose.xlu0.b32.cont [15/16] %v3760_v29, 128 }
 0x94f   : > { %v3761_v19 = vadd.f32 %v3679_v25, %v7014_v55 }
 0x951   : > { %3793 = vxpose.xlu0.b32.end [16/16] %v3761_v19, 128  ;;  %v7019_v19 = vld [vmem:[#allocation38_spill] sm:$0xff] }
 0x96a   : > { %v4120_v4 = vpop.f32.mrf.mxu1  ;;  %v4232_v46 = vpop.f32.mrf.mxu0 }
 0x96c   : > { %v4121_v23 = vpop.f32.mrf.mxu1  ;;  %v4233_v12 = vpop.f32.mrf.mxu0 }
 0x96d   : > { %v4122_v48 = vadd.f32 %v4121_v23, %v4120_v4  ;;  %v4234_v0 = vadd.f32 %v4233_v12, %v4232_v46 }
 0x96e   : > { %v4123_v3 = vpop.f32.mrf.mxu1  ;;  %v4235_v11 = vpop.f32.mrf.mxu0 }
 0x96f   : > { %v3523_v17 = vadd.f32 %v4122_v48, %v6756_v9 }
 0x970   : > { %v4124_v43 = vpop.f32.mrf.mxu1  ;;  %v4236_v14 = vpop.f32.mrf.mxu0 }
 0x971   : > { %v3684_v59 = vadd.f32 %v4234_v0, %v3523_v17  ;;  %v4125_v21 = vadd.f32 %v4124_v43, %v4123_v3  ;;  %v4237_v22 = vadd.f32 %v4236_v14, %v4235_v11  ;;  %v7020_v11 = vld [vmem:[#allocation7_spill] sm:$0xff] }
 0x972   : > { %v4126_v40 = vpop.f32.mrf.mxu1  ;;  %v4238_v51 = vpop.f32.mrf.mxu0 }
 0x973   : > { %v3762_v13 = vadd.f32 %v3684_v59, %v7015_v44  ;;  %v3526_v24 = vadd.f32 %v4125_v21, %v6756_v9 }
 0x974   : > { %v4127_v42 = vpop.f32.mrf.mxu1  ;;  %v4239_v47 = vpop.f32.mrf.mxu0 }
 0x975   : > { %v3687_v15 = vadd.f32 %v4237_v22, %v3526_v24  ;;  %v4128_v49 = vadd.f32 %v4127_v42, %v4126_v40  ;;  %3810 = vxpose.xlu1.b32.start [1/16] %v3762_v13, 128  ;;  %v4240_v2 = vadd.f32 %v4239_v47, %v4238_v51 }
 0x976   : > { %v4129_v39 = vpop.f32.mrf.mxu1  ;;  %v4241_v61 = vpop.f32.mrf.mxu0 }
 0x977   : > { %v3763_v10 = vadd.f32 %v3687_v15, %v7016_v6  ;;  %v3531_v62 = vadd.f32 %v4128_v49, %v6756_v9 }
 0x978   : > { %v4130_v52 = vpop.f32.mrf.mxu1  ;;  %v4242_v53 = vpop.f32.mrf.mxu0 }
 0x979   : > { %v3692_v33 = vadd.f32 %v4240_v2, %v3531_v62  ;;  %v4131_v20 = vadd.f32 %v4130_v52, %v4129_v39  ;;  %3811 = vxpose.xlu1.b32.cont [2/16] %v3763_v10, 128  ;;  %v4243_v60 = vadd.f32 %v4242_v53, %v4241_v61 }
 0x97b   : > { %v3764_v32 = vadd.f32 %v3692_v33, %v7017_v36  ;;  %v3534_v7 = vadd.f32 %v4131_v20, %v6756_v9 }
 0x97d   : > { %v3695_v38 = vadd.f32 %v4243_v60, %v3534_v7  ;;  %3812 = vxpose.xlu1.b32.cont [3/16] %v3764_v32, 128 }
 0x97e   : > { %v4132_v45 = vpop.f32.mrf.mxu1  ;;  %v4244_v54 = vpop.f32.mrf.mxu0 }
 0x97f   : > { %v3765_v18 = vadd.f32 %v3695_v38, %v7018_v63 }
 0x980   : > { %v4133_v5 = vpop.f32.mrf.mxu1  ;;  %v4245_v41 = vpop.f32.mrf.mxu0 }
 0x981   : > { %v4134_v1 = vadd.f32 %v4133_v5, %v4132_v45  ;;  %3813 = vxpose.xlu1.b32.cont [4/16] %v3765_v18, 128  ;;  %v4246_v29 = vadd.f32 %v4245_v41, %v4244_v54 }
 0x982   : > { %v4135_v34 = vpop.f32.mrf.mxu1  ;;  %v4247_v8 = vpop.f32.mrf.mxu0 }
 0x983   : > { %v3539_v26 = vadd.f32 %v4134_v1, %v6756_v9 }
 0x984   : > { %v4136_v35 = vpop.f32.mrf.mxu1  ;;  %v4248_v27 = vpop.f32.mrf.mxu0 }
 0x985   : > { %v3700_v25 = vadd.f32 %v4246_v29, %v3539_v26  ;;  %v4137_v55 = vadd.f32 %v4136_v35, %v4135_v34  ;;  %v4249_v23 = vadd.f32 %v4248_v27, %v4247_v8  ;;  %v7021_v34 = vld [vmem:[#allocation9_spill] sm:$0xff] }
 0x987   : > { %v3766_v4 = vadd.f32 %v3700_v25, %v7019_v19  ;;  %v3542_v46 = vadd.f32 %v4137_v55, %v6756_v9 }
 0x989   : > { %v3703_v12 = vadd.f32 %v4249_v23, %v3542_v46  ;;  %3814 = vxpose.xlu1.b32.cont [5/16] %v3766_v4, 128 }
 0x98a   : > { %v4138_v48 = vpop.f32.mrf.mxu1  ;;  %v4250_v3 = vpop.f32.mrf.mxu0 }
 0x98b   : > { %v3767_v17 = vadd.f32 %v3703_v12, %v7020_v11 }
 0x98c   : > { %v4139_v0 = vpop.f32.mrf.mxu1  ;;  %v4251_v43 = vpop.f32.mrf.mxu0 }
 0x98d   : > { %v4140_v14 = vadd.f32 %v4139_v0, %v4138_v48  ;;  %3815 = vxpose.xlu1.b32.cont [6/16] %v3767_v17, 128  ;;  %v4252_v51 = vadd.f32 %v4251_v43, %v4250_v3 }
 0x98e   : > { %v4141_v59 = vpop.f32.mrf.mxu1  ;;  %v4253_v21 = vpop.f32.mrf.mxu0 }
 0x98f   : > { %v3547_v40 = vadd.f32 %v4140_v14, %v6756_v9 }
 0x990   : > { %v4142_v44 = vpop.f32.mrf.mxu1  ;;  %v4254_v13 = vpop.f32.mrf.mxu0 }
 0x991   : > { %v3708_v24 = vadd.f32 %v4252_v51, %v3547_v40  ;;  %v4143_v22 = vadd.f32 %v4142_v44, %v4141_v59  ;;  %v3794_v42 = vpop.trf.xlu0  ;;  %v4255_v49 = vadd.f32 %v4254_v13, %v4253_v21 }
 0x992   : > { %3842 = vst [vmem:[%s6808_s22] sm:$0xff] %v3794_v42 }
 0x993   : > { %v3768_v47 = vadd.f32 %v3708_v24, %v6093_v57  ;;  %v3550_v15 = vadd.f32 %v4143_v22, %v6756_v9 }
 0x995   : > { %v3711_v39 = vadd.f32 %v4255_v49, %v3550_v15  ;;  %3816 = vxpose.xlu1.b32.cont [7/16] %v3768_v47, 128  ;;  %v3795_v62 = vpop.trf.xlu0 }
 0x996   : > { %v4144_v61 = vpop.f32.mrf.mxu1  ;;  %v4256_v6 = vpop.f32.mrf.mxu0  ;;  %3844 = vst [vmem:[%s6808_s22 + $0x10] sm:$0xff] %v3795_v62 }
 0x997   : > { %v3769_v10 = vadd.f32 %v3711_v39, %v6104_v28 }
 0x998   : > { %v4145_v2 = vpop.f32.mrf.mxu1  ;;  %v4257_v52 = vpop.f32.mrf.mxu0 }
 0x999   : > { %v4146_v53 = vadd.f32 %v4145_v2, %v4144_v61  ;;  %3817 = vxpose.xlu1.b32.cont [8/16] %v3769_v10, 128  ;;  %v4258_v36 = vadd.f32 %v4257_v52, %v4256_v6  ;;  %v3796_v32 = vpop.trf.xlu0 }
 0x99a   : > { %v4147_v33 = vpop.f32.mrf.mxu1  ;;  %v4259_v20 = vpop.f32.mrf.mxu0  ;;  %3846 = vst [vmem:[%s6808_s22 + $0x20] sm:$0xff] %v3796_v32 }
 0x99b   : > { %v3555_v57 = vadd.f32 %v4146_v53, %v6756_v9 }
 0x99c   : > { %v4148_v7 = vpop.f32.mrf.mxu1  ;;  %v4260_v60 = vpop.f32.mrf.mxu0 }
 0x99d   : > { %v3716_v38 = vadd.f32 %v4258_v36, %v3555_v57  ;;  %v4149_v45 = vadd.f32 %v4148_v7, %v4147_v33  ;;  %v4261_v63 = vadd.f32 %v4260_v60, %v4259_v20  ;;  %v3797_v18 = vpop.trf.xlu0 }
 0x99e   : > { %3848 = vst [vmem:[%s6808_s22 + $0x30] sm:$0xff] %v3797_v18 }
 0x99f   : > { %v3770_v28 = vadd.f32 %v3716_v38, %v6151_v37  ;;  %v3558_v54 = vadd.f32 %v4149_v45, %v6756_v9 }
 0x9a1   : > { %v3719_v5 = vadd.f32 %v4261_v63, %v3558_v54  ;;  %3818 = vxpose.xlu1.b32.cont [9/16] %v3770_v28, 128  ;;  %v3798_v26 = vpop.trf.xlu0 }
 0x9a2   : > { %v4150_v41 = vpop.f32.mrf.mxu1  ;;  %v4262_v1 = vpop.f32.mrf.mxu0  ;;  %3850 = vst [vmem:[%s6808_s22 + $0x40] sm:$0xff] %v3798_v26 }
 0x9a3   : > { %v3771_v8 = vadd.f32 %v3719_v5, %v7021_v34 }
 0x9a4   : > { %v4151_v29 = vpop.f32.mrf.mxu1  ;;  %v4263_v35 = vpop.f32.mrf.mxu0 }
 0x9a5   : > { %v4152_v27 = vadd.f32 %v4151_v29, %v4150_v41  ;;  %3819 = vxpose.xlu1.b32.cont [10/16] %v3771_v8, 128  ;;  %v4264_v19 = vadd.f32 %v4263_v35, %v4262_v1  ;;  %v3799_v4 = vpop.trf.xlu0 }
 0x9a6   : > { %v4153_v37 = vpop.f32.mrf.mxu1  ;;  %v4265_v25 = vpop.f32.mrf.mxu0  ;;  %3852 = vst [vmem:[%s6808_s22 + $0x50] sm:$0xff] %v3799_v4 }
 0x9a7   : > { %v3563_v55 = vadd.f32 %v4152_v27, %v6756_v9 }
 0x9a8   : > { %v4154_v46 = vpop.f32.mrf.mxu1  ;;  %v4266_v23 = vpop.f32.mrf.mxu0 }
 0x9a9   : > { %v3724_v12 = vadd.f32 %v4264_v19, %v3563_v55  ;;  %v4155_v48 = vadd.f32 %v4154_v46, %v4153_v37  ;;  %v4267_v17 = vadd.f32 %v4266_v23, %v4265_v25  ;;  %v3800_v0 = vpop.trf.xlu0 }
 0x9aa   : > { %3854 = vst [vmem:[%s6808_s22 + $0x60] sm:$0xff] %v3800_v0 }
 0x9ab   : > { %v3772_v3 = vadd.f32 %v3724_v12, %v6198_v31  ;;  %v3566_v11 = vadd.f32 %v4155_v48, %v6756_v9 }
 0x9ad   : > { %v3727_v43 = vadd.f32 %v4267_v17, %v3566_v11  ;;  %3820 = vxpose.xlu1.b32.cont [11/16] %v3772_v3, 128  ;;  %v3801_v40 = vpop.trf.xlu0 }
 0x9ae   : > { %v4156_v14 = vpop.f32.mrf.mxu1  ;;  %v4268_v59 = vpop.f32.mrf.mxu0  ;;  %3856 = vst [vmem:[%s6808_s22 + $0x70] sm:$0xff] %v3801_v40 }
 0x9af   : > { %v3773_v21 = vadd.f32 %v3727_v43, %v6204_v50 }
 0x9b0   : > { %v4157_v51 = vpop.f32.mrf.mxu1  ;;  %v4269_v44 = vpop.f32.mrf.mxu0 }
 0x9b1   : > { %v4158_v13 = vadd.f32 %v4157_v51, %v4156_v14  ;;  %3821 = vxpose.xlu1.b32.cont [12/16] %v3773_v21, 128  ;;  %v4270_v42 = vadd.f32 %v4269_v44, %v4268_v59  ;;  %v3802_v47 = vpop.trf.xlu0 }
 0x9b2   : > { %v4159_v31 = vpop.f32.mrf.mxu1  ;;  %v4271_v24 = vpop.f32.mrf.mxu0  ;;  %3858 = vst [vmem:[%s6808_s22 + $0x80] sm:$0xff] %v3802_v47 }
 0x9b3   : > { %v3571_v22 = vadd.f32 %v4158_v13, %v6756_v9 }
 0x9b4   : > { %v4160_v15 = vpop.f32.mrf.mxu1  ;;  %v4272_v49 = vpop.f32.mrf.mxu0 }
 0x9b5   : > { %v3732_v39 = vadd.f32 %v4270_v42, %v3571_v22  ;;  %v4161_v50 = vadd.f32 %v4160_v15, %v4159_v31  ;;  %v4273_v10 = vadd.f32 %v4272_v49, %v4271_v24  ;;  %v3803_v62 = vpop.trf.xlu0 }
 0x9b6   : > { %3860 = vst [vmem:[%s6808_s22 + $0x90] sm:$0xff] %v3803_v62 }
 0x9b7   : > { %v3774_v61 = vadd.f32 %v3732_v39, %v6224_v16  ;;  %v3574_v6 = vadd.f32 %v4161_v50, %v6756_v9 }
 0x9b9   : > { %v3735_v2 = vadd.f32 %v4273_v10, %v3574_v6  ;;  %3822 = vxpose.xlu1.b32.cont [13/16] %v3774_v61, 128  ;;  %v3804_v53 = vpop.trf.xlu0 }
 0x9ba   : > { %3862 = vst [vmem:[%s6808_s22 + $0xa0] sm:$0xff] %v3804_v53 }
 0x9bb   : > { %v3775_v52 = vadd.f32 %v3735_v2, %v6232_v30 }
 0x9bd   : > { %3823 = vxpose.xlu1.b32.cont [14/16] %v3775_v52, 128  ;;  %v3805_v33 = vpop.trf.xlu0 }
 0x9be   : > { %3864 = vst [vmem:[%s6808_s22 + $0xb0] sm:$0xff] %v3805_v33 }
 0x9c1   : > { %v3806_v20 = vpop.trf.xlu0 }
 0x9c2   : > { %3866 = vst [vmem:[%s6808_s22 + $0xc0] sm:$0xff] %v3806_v20 }
 0x9c5   : > { %v3807_v36 = vpop.trf.xlu0 }
 0x9c6   : > { %v4162_v57 = vpop.f32.mrf.mxu1  ;;  %v4274_v16 = vpop.f32.mrf.mxu0  ;;  %3868 = vst [vmem:[%s6808_s22 + $0xd0] sm:$0xff] %v3807_v36 }
 0x9c8   : > { %v4163_v32 = vpop.f32.mrf.mxu1  ;;  %v4275_v7 = vpop.f32.mrf.mxu0 }
 0x9c9   : > { %v4164_v60 = vadd.f32 %v4163_v32, %v4162_v57  ;;  %v4276_v28 = vadd.f32 %v4275_v7, %v4274_v16  ;;  %v3808_v54 = vpop.trf.xlu0 }
 0x9ca   : > { %v4165_v38 = vpop.f32.mrf.mxu1  ;;  %v4277_v45 = vpop.f32.mrf.mxu0  ;;  %3870 = vst [vmem:[%s6808_s22 + $0xe0] sm:$0xff] %v3808_v54 }
 0x9cb   : > { %v3579_v30 = vadd.f32 %v4164_v60, %v6756_v9 }
 0x9cc   : > { %v4166_v63 = vpop.f32.mrf.mxu1  ;;  %v4278_v18 = vpop.f32.mrf.mxu0 }
 0x9cd   : > { %v3740_v5 = vadd.f32 %v4276_v28, %v3579_v30  ;;  %v4167_v41 = vadd.f32 %v4166_v63, %v4165_v38  ;;  %v4279_v8 = vadd.f32 %v4278_v18, %v4277_v45  ;;  %v3809_v26 = vpop.trf.xlu0 }
 0x9ce   : > { %3872 = vst [vmem:[%s6808_s22 + $0xf0] sm:$0xff] %v3809_v26 }
 0x9cf   : > { %v3776_v1 = vadd.f32 %v3740_v5, %v6246_v56  ;;  %v3582_v34 = vadd.f32 %v4167_v41, %v6756_v9 }
 0x9d1   : > { %v3743_v29 = vadd.f32 %v4279_v8, %v3582_v34  ;;  %3824 = vxpose.xlu1.b32.cont [15/16] %v3776_v1, 128 }
 0x9d3   : > { %v3777_v35 = vadd.f32 %v3743_v29, %v6254_v58 }
 0x9d5   : > { %3825 = vxpose.xlu1.b32.end [16/16] %v3777_v35, 128 }
 0xa15   : > { %v3826_v27 = vpop.trf.xlu1 }
 0xa16   : > { %3843 = vst [vmem:[%s6808_s22 + $0x8] sm:$0xff] %v3826_v27 }
 0xa19   : > { %v3827_v37 = vpop.trf.xlu1 }
 0xa1a   : > { %3845 = vst [vmem:[%s6808_s22 + $0x18] sm:$0xff] %v3827_v37 }
 0xa1d   : > { %v3828_v56 = vpop.trf.xlu1 }
 0xa1e   : > { %3847 = vst [vmem:[%s6808_s22 + $0x28] sm:$0xff] %v3828_v56 }
 0xa21   : > { %v3829_v9 = vpop.trf.xlu1 }
 0xa22   : > { %3849 = vst [vmem:[%s6808_s22 + $0x38] sm:$0xff] %v3829_v9 }
 0xa25   : > { %v3830_v25 = vpop.trf.xlu1 }
 0xa26   : > { %3851 = vst [vmem:[%s6808_s22 + $0x48] sm:$0xff] %v3830_v25 }
 0xa29   : > { %v3831_v55 = vpop.trf.xlu1 }
 0xa2a   : > { %3853 = vst [vmem:[%s6808_s22 + $0x58] sm:$0xff] %v3831_v55 }
 0xa2d   : > { %v3832_v58 = vpop.trf.xlu1 }
 0xa2e   : > { %3855 = vst [vmem:[%s6808_s22 + $0x68] sm:$0xff] %v3832_v58 }
 0xa31   : > { %v3833_v19 = vpop.trf.xlu1 }
 0xa32   : > { %3857 = vst [vmem:[%s6808_s22 + $0x78] sm:$0xff] %v3833_v19 }
 0xa35   : > { %v3834_v4 = vpop.trf.xlu1 }
 0xa36   : > { %3859 = vst [vmem:[%s6808_s22 + $0x88] sm:$0xff] %v3834_v4 }
 0xa39   : > { %v3835_v46 = vpop.trf.xlu1 }
 0xa3a   : > { %3861 = vst [vmem:[%s6808_s22 + $0x98] sm:$0xff] %v3835_v46 }
 0xa3d   : > { %v3836_v23 = vpop.trf.xlu1 }
 0xa3e   : > { %3863 = vst [vmem:[%s6808_s22 + $0xa8] sm:$0xff] %v3836_v23 }
 0xa41   : > { %v3837_v12 = vpop.trf.xlu1 }
 0xa42   : > { %3865 = vst [vmem:[%s6808_s22 + $0xb8] sm:$0xff] %v3837_v12 }
 0xa45   : > { %v3838_v48 = vpop.trf.xlu1 }
 0xa46   : > { %3867 = vst [vmem:[%s6808_s22 + $0xc8] sm:$0xff] %v3838_v48 }
 0xa49   : > { %v3839_v3 = vpop.trf.xlu1 }
 0xa4a   : > { %3869 = vst [vmem:[%s6808_s22 + $0xd8] sm:$0xff] %v3839_v3 }
 0xa4d   : > { %v3840_v11 = vpop.trf.xlu1 }
 0xa4e   : > { %3871 = vst [vmem:[%s6808_s22 + $0xe8] sm:$0xff] %v3840_v11 }
 0xa51   : > { %v3841_v17 = vpop.trf.xlu1 }
 0xa52   : > { %3873 = vst [vmem:[%s6808_s22 + $0xf8] sm:$0xff] %v3841_v17 }
 0xa53 PF: > { %s17_s24 = sadd.s32 1, %s4746_s24  }
 0xa54   : > { %p14_p4 = scmp.ge.s32.totalorder %s17_s24, 4  }
 0xa56   :  { %16 = sbr.rel (!%p14_p4) target bundleno = 1 (0x1), region = 78 }

</bundles_post_ra>
